<compile_context>
chip_gen: v6e
topology: v6e:2x2x1
jax: 0.10.0
libtpu: 0.0.40
codegen_flags: <defaults>
</compile_context>

<pallas_src>
import functools

import jax
import jax.numpy as jnp
from jax.experimental import pallas as pl
from jax.experimental.pallas import tpu as pltpu


RESNET_OUTPUT_SIZE = 2048
N_CLASSES = 5


def _round_up(x, m):
    return (x + m - 1) // m * m


# Padded layer widths (lane dims -> multiples of 128 for MXU / dense stores).
D0 = RESNET_OUTPUT_SIZE          # 2048
D1 = _round_up(1000, 128)        # 1024
D2 = _round_up(100, 128)         # 128
D3 = _round_up(32, 128)          # 128
D4 = _round_up(N_CLASSES, 128)   # 128


# ----------------------------------------------------------------------------
# Fused kernel: fc1+ReLU -> fc2+ReLU -> fc3+ReLU -> fc4 -> softmax(dim=1)
# ----------------------------------------------------------------------------
def _fused_mlp_softmax_kernel(x_ref, w1_ref, b1_ref, w2_ref, b2_ref,
                              w3_ref, b3_ref, w4_ref, b4_ref, o_ref,
                              *, n_classes):
    # fc1: bf16 x bf16 -> f32 accumulation on the MXU.
    h = jnp.dot(x_ref[...], w1_ref[...],
                preferred_element_type=jnp.float32) + b1_ref[...]
    h = jnp.maximum(h, 0.0).astype(jnp.bfloat16)
    # fc2
    h = jnp.dot(h, w2_ref[...],
                preferred_element_type=jnp.float32) + b2_ref[...]
    h = jnp.maximum(h, 0.0).astype(jnp.bfloat16)
    # fc3
    h = jnp.dot(h, w3_ref[...],
                preferred_element_type=jnp.float32) + b3_ref[...]
    h = jnp.maximum(h, 0.0).astype(jnp.bfloat16)
    # fc4 -> logits stay f32.
    logits = jnp.dot(h, w4_ref[...],
                     preferred_element_type=jnp.float32) + b4_ref[...]

    # Mask padded class lanes (n_classes=5 > 0, so at least one lane survives).
    col = jax.lax.broadcasted_iota(jnp.int32, logits.shape, 1)
    logits = jnp.where(col < n_classes, logits, -jnp.inf)

    # Numerically-stable softmax; divide routed to EUP via approx reciprocal.
    m = jnp.max(logits, axis=1, keepdims=True)
    e = jnp.exp(logits - m)
    inv = pl.reciprocal(jnp.sum(e, axis=1, keepdims=True), approx=True)
    o_ref[...] = (e * inv).astype(o_ref.dtype)


# ----------------------------------------------------------------------------
# One-time parameter packing (hoisted out of the forward pass).
# ----------------------------------------------------------------------------
def prepare_params(params):
    """PyTorch-layout (out,in)/(out,) -> padded bf16 (K,N) weights, f32 (1,N) biases."""
    def pack(w, b, kp, np_):
        n_out, k_in = w.shape
        wp = jnp.zeros((kp, np_), jnp.bfloat16).at[:k_in, :n_out].set(
            w.T.astype(jnp.bfloat16))
        bp = jnp.zeros((1, np_), jnp.float32).at[0, :n_out].set(
            b.astype(jnp.float32))
        return wp, bp

    w1, b1 = pack(params["fc1_w"], params["fc1_b"], D0, D1)
    w2, b2 = pack(params["fc2_w"], params["fc2_b"], D1, D2)
    w3, b3 = pack(params["fc3_w"], params["fc3_b"], D2, D3)
    w4, b4 = pack(params["fc4_w"], params["fc4_b"], D3, D4)
    return {"w1": w1, "b1": b1, "w2": w2, "b2": b2,
            "w3": w3, "b3": b3, "w4": w4, "b4": b4}


def _const_spec(shape):
    # Grid-invariant operand (constant index_map): never re-fetched across grid
    # steps, so single-buffer it to halve its VMEM footprint.
    return pl.BlockSpec(shape, lambda i: (0, 0), pipeline_mode=pl.Buffered(1))


# ----------------------------------------------------------------------------
# Forward pass.
# ----------------------------------------------------------------------------
@jax.jit
def resnet_class3_forward(x, packed):
    x = x.reshape(-1, RESNET_OUTPUT_SIZE)            # == .view(-1, 2048)
    B = x.shape[0]

    # Batch tile: single resident block for small/medium batches (keeps the
    # grid at 1 step -> no per-TC weight duplication on v7x); 512-row tiles
    # (multiple of 256 for v6e/v7x MXU) once B is large enough to amortize
    # weight DMA under "parallel" megacore sharding.
    if B <= 512:
        tm = _round_up(max(B, 8), 8)
    else:
        tm = 512
    Bp = _round_up(B, tm)

    xb = x.astype(jnp.bfloat16)                      # bf16 input: halves x DMA
    if Bp != B:                                      # skip pad when not needed
        xb = jnp.pad(xb, ((0, Bp - B), (0, 0)))

    out = pl.pallas_call(
        functools.partial(_fused_mlp_softmax_kernel, n_classes=N_CLASSES),
        out_shape=jax.ShapeDtypeStruct((Bp, D4), jnp.float32),
        grid_spec=pltpu.PrefetchScalarGridSpec(
            num_scalar_prefetch=0,
            grid=(Bp // tm,),
            in_specs=[
                pl.BlockSpec((tm, D0), lambda i: (i, 0)),   # x rows (pipelined)
                _const_spec((D0, D1)),   # fc1 W (bf16, VMEM-resident)
                _const_spec((1, D1)),    # fc1 b (f32)
                _const_spec((D1, D2)),   # fc2 W
                _const_spec((1, D2)),    # fc2 b
                _const_spec((D2, D3)),   # fc3 W
                _const_spec((1, D3)),    # fc3 b
                _const_spec((D3, D4)),   # fc4 W
                _const_spec((1, D4)),    # fc4 b
            ],
            out_specs=pl.BlockSpec((tm, D4), lambda i: (i, 0)),
        ),
        compiler_params=pltpu.CompilerParams(
            dimension_semantics=("parallel",),
            # No vmem_limit override needed: ~9 MiB resident fits every
            # generation's default scoped VMEM (16 MiB v5e, 32 MiB v6e/v7x).
        ),
    )(xb, packed["w1"], packed["b1"], packed["w2"], packed["b2"],
      packed["w3"], packed["b3"], packed["w4"], packed["b4"])

    return out[:B, :N_CLASSES]   # .squeeze(1) is a no-op on (B, 5)


def _uniform(key, shape, fan_in):
    bound = 1.0 / (fan_in ** 0.5)
    return jax.random.uniform(key, shape, jnp.float32, -bound, bound)


if __name__ == "__main__":
    key = jax.random.PRNGKey(0)
    ks = jax.random.split(key, 9)
    B = 2

    # Stand-in for the flattened ResNet feature vector (size 256 branch -> 2048).
    x = jax.random.normal(ks[0], (B, RESNET_OUTPUT_SIZE), jnp.float32)

    params = {
        "fc1_w": _uniform(ks[1], (1000, 2048), 2048),
        "fc1_b": _uniform(ks[2], (1000,), 2048),
        "fc2_w": _uniform(ks[3], (100, 1000), 1000),
        "fc2_b": _uniform(ks[4], (100,), 1000),
        "fc3_w": _uniform(ks[5], (32, 100), 100),
        "fc3_b": _uniform(ks[6], (32,), 100),
        "fc4_w": _uniform(ks[7], (5, 32), 32),
        "fc4_b": _uniform(ks[8], (5,), 32),
    }

    packed = prepare_params(params)
    out = jax.block_until_ready(resnet_class3_forward(x, packed))

    # Pure-JAX f32 reference of the PyTorch forward.
    def ref_forward(x, p):
        h = jnp.maximum(x @ p["fc1_w"].T + p["fc1_b"], 0.0)
        h = jnp.maximum(h @ p["fc2_w"].T + p["fc2_b"], 0.0)
        h = jnp.maximum(h @ p["fc3_w"].T + p["fc3_b"], 0.0)
        logits = h @ p["fc4_w"].T + p["fc4_b"]
        return jax.nn.softmax(logits, axis=1)

    ref = ref_forward(x, params)

    assert out.shape == (B, N_CLASSES), out.shape
    assert bool(jnp.all(jnp.isfinite(out)))
    # Tolerances loosened vs. the f32 version: bf16 weights/activations plus the
    # approximate reciprocal contribute ~1e-3-level error on ~0.2 probabilities.
    assert bool(jnp.allclose(jnp.sum(out, axis=1), 1.0, atol=5e-3))
    assert bool(jnp.allclose(out, ref, atol=4e-3, rtol=4e-3))
    print("KERNEL_OK")
</pallas_src>

<mosaic_0001>
module attributes {stable_mosaic.version = 11 : i64} {
  func.func @_fused_mlp_softmax_kernel(%arg0: i32, %arg1: memref<8x2048xbf16, #tpu.memory_space<vmem>>, %arg2: memref<2048x1024xbf16, #tpu.memory_space<vmem>>, %arg3: memref<1x1024xf32, #tpu.memory_space<vmem>>, %arg4: memref<1024x128xbf16, #tpu.memory_space<vmem>>, %arg5: memref<1x128xf32, #tpu.memory_space<vmem>>, %arg6: memref<128x128xbf16, #tpu.memory_space<vmem>>, %arg7: memref<1x128xf32, #tpu.memory_space<vmem>>, %arg8: memref<128x128xbf16, #tpu.memory_space<vmem>>, %arg9: memref<1x128xf32, #tpu.memory_space<vmem>>, %arg10: memref<8x128xf32, #tpu.memory_space<vmem>>) attributes {dimension_semantics = [#tpu.dimension_semantics<parallel>], iteration_bounds = array<i64: 1>, scalar_prefetch = 0 : i64, scratch_operands = 0 : i64, tpu.core_type = #tpu.core_type<tc>, window_params = [{transform_indices = @transform_0, window_bounds = array<i64: 8, 2048>}, {pipeline_mode = #tpu.pipeline_mode<synchronous>, transform_indices = @transform_1, window_bounds = array<i64: 2048, 1024>}, {pipeline_mode = #tpu.pipeline_mode<synchronous>, transform_indices = @transform_2, window_bounds = array<i64: 1, 1024>}, {pipeline_mode = #tpu.pipeline_mode<synchronous>, transform_indices = @transform_3, window_bounds = array<i64: 1024, 128>}, {pipeline_mode = #tpu.pipeline_mode<synchronous>, transform_indices = @transform_4, window_bounds = array<i64: 1, 128>}, {pipeline_mode = #tpu.pipeline_mode<synchronous>, transform_indices = @transform_5, window_bounds = array<i64: 128, 128>}, {pipeline_mode = #tpu.pipeline_mode<synchronous>, transform_indices = @transform_6, window_bounds = array<i64: 1, 128>}, {pipeline_mode = #tpu.pipeline_mode<synchronous>, transform_indices = @transform_7, window_bounds = array<i64: 128, 128>}, {pipeline_mode = #tpu.pipeline_mode<synchronous>, transform_indices = @transform_8, window_bounds = array<i64: 1, 128>}, {transform_indices = @transform_9, window_bounds = array<i64: 8, 128>}]} {
    %c0 = arith.constant 0 : index
    %c0_0 = arith.constant 0 : index
    %0 = vector.load %arg1[%c0, %c0_0] : memref<8x2048xbf16, #tpu.memory_space<vmem>>, vector<8x2048xbf16>
    %c0_1 = arith.constant 0 : index
    %c0_2 = arith.constant 0 : index
    %1 = vector.load %arg2[%c0_1, %c0_2] : memref<2048x1024xbf16, #tpu.memory_space<vmem>>, vector<2048x1024xbf16>
    %cst = arith.constant dense<0.000000e+00> : vector<8x1024xf32>
    %2 = tpu.matmul %0, %1, %cst {dimension_numbers = #tpu.dot_dimension_numbers<[1], [0], [0], [1], [0, 0, 1, 1], [], []>} : vector<8x2048xbf16>, vector<2048x1024xbf16>, vector<8x1024xf32> -> vector<8x1024xf32>
    %c0_3 = arith.constant 0 : index
    %c0_4 = arith.constant 0 : index
    %3 = vector.load %arg3[%c0_3, %c0_4] : memref<1x1024xf32, #tpu.memory_space<vmem>>, vector<1x1024xf32>
    %4 = vector.broadcast %3 : vector<1x1024xf32> to vector<8x1024xf32>
    %5 = arith.addf %2, %4 : vector<8x1024xf32>
    %cst_5 = arith.constant 0.000000e+00 : f32
    %6 = vector.broadcast %cst_5 : f32 to vector<8x1024xf32>
    %7 = arith.maximumf %5, %6 : vector<8x1024xf32>
    %8 = arith.truncf %7 : vector<8x1024xf32> to vector<8x1024xbf16>
    %c0_6 = arith.constant 0 : index
    %c0_7 = arith.constant 0 : index
    %9 = vector.load %arg4[%c0_6, %c0_7] : memref<1024x128xbf16, #tpu.memory_space<vmem>>, vector<1024x128xbf16>
    %cst_8 = arith.constant dense<0.000000e+00> : vector<8x128xf32>
    %10 = tpu.matmul %8, %9, %cst_8 {dimension_numbers = #tpu.dot_dimension_numbers<[1], [0], [0], [1], [0, 0, 1, 1], [], []>} : vector<8x1024xbf16>, vector<1024x128xbf16>, vector<8x128xf32> -> vector<8x128xf32>
    %c0_9 = arith.constant 0 : index
    %c0_10 = arith.constant 0 : index
    %11 = vector.load %arg5[%c0_9, %c0_10] : memref<1x128xf32, #tpu.memory_space<vmem>>, vector<1x128xf32>
    %12 = vector.broadcast %11 : vector<1x128xf32> to vector<8x128xf32>
    %13 = arith.addf %10, %12 : vector<8x128xf32>
    %cst_11 = arith.constant 0.000000e+00 : f32
    %14 = vector.broadcast %cst_11 : f32 to vector<8x128xf32>
    %15 = arith.maximumf %13, %14 : vector<8x128xf32>
    %16 = arith.truncf %15 : vector<8x128xf32> to vector<8x128xbf16>
    %c0_12 = arith.constant 0 : index
    %c0_13 = arith.constant 0 : index
    %17 = vector.load %arg6[%c0_12, %c0_13] : memref<128x128xbf16, #tpu.memory_space<vmem>>, vector<128x128xbf16>
    %cst_14 = arith.constant dense<0.000000e+00> : vector<8x128xf32>
    %18 = tpu.matmul %16, %17, %cst_14 {dimension_numbers = #tpu.dot_dimension_numbers<[1], [0], [0], [1], [0, 0, 1, 1], [], []>} : vector<8x128xbf16>, vector<128x128xbf16>, vector<8x128xf32> -> vector<8x128xf32>
    %c0_15 = arith.constant 0 : index
    %c0_16 = arith.constant 0 : index
    %19 = vector.load %arg7[%c0_15, %c0_16] : memref<1x128xf32, #tpu.memory_space<vmem>>, vector<1x128xf32>
    %20 = vector.broadcast %19 : vector<1x128xf32> to vector<8x128xf32>
    %21 = arith.addf %18, %20 : vector<8x128xf32>
    %cst_17 = arith.constant 0.000000e+00 : f32
    %22 = vector.broadcast %cst_17 : f32 to vector<8x128xf32>
    %23 = arith.maximumf %21, %22 : vector<8x128xf32>
    %24 = arith.truncf %23 : vector<8x128xf32> to vector<8x128xbf16>
    %c0_18 = arith.constant 0 : index
    %c0_19 = arith.constant 0 : index
    %25 = vector.load %arg8[%c0_18, %c0_19] : memref<128x128xbf16, #tpu.memory_space<vmem>>, vector<128x128xbf16>
    %cst_20 = arith.constant dense<0.000000e+00> : vector<8x128xf32>
    %26 = tpu.matmul %24, %25, %cst_20 {dimension_numbers = #tpu.dot_dimension_numbers<[1], [0], [0], [1], [0, 0, 1, 1], [], []>} : vector<8x128xbf16>, vector<128x128xbf16>, vector<8x128xf32> -> vector<8x128xf32>
    %c0_21 = arith.constant 0 : index
    %c0_22 = arith.constant 0 : index
    %27 = vector.load %arg9[%c0_21, %c0_22] : memref<1x128xf32, #tpu.memory_space<vmem>>, vector<1x128xf32>
    %28 = vector.broadcast %27 : vector<1x128xf32> to vector<8x128xf32>
    %29 = arith.addf %26, %28 : vector<8x128xf32>
    %30 = tpu.iota {dimensions = array<i32: 1>} : vector<8x128xi32>
    %c5_i32 = arith.constant 5 : i32
    %31 = vector.broadcast %c5_i32 : i32 to vector<8x128xi32>
    %32 = arith.cmpi slt, %30, %31 : vector<8x128xi32>
    %cst_23 = arith.constant 0xFF800000 : f32
    %33 = vector.broadcast %cst_23 : f32 to vector<8x128xf32>
    %34 = arith.select %32, %29, %33 : vector<8x128xi1>, vector<8x128xf32>
    %cst_24 = arith.constant dense<0xFF800000> : vector<8xf32>
    %35 = vector.multi_reduction <maximumf>, %34, %cst_24 [1] : vector<8x128xf32> to vector<8xf32>
    %36 = vector.shape_cast %35 : vector<8xf32> to vector<8x1xf32>
    %37 = vector.broadcast %36 : vector<8x1xf32> to vector<8x128xf32>
    %38 = arith.subf %34, %37 : vector<8x128xf32>
    %39 = math.exp %38 : vector<8x128xf32>
    %cst_25 = arith.constant dense<0.000000e+00> : vector<8xf32>
    %40 = vector.multi_reduction <add>, %39, %cst_25 [1] : vector<8x128xf32> to vector<8xf32>
    %41 = vector.shape_cast %40 : vector<8xf32> to vector<8x1xf32>
    %42 = tpu.reciprocal %41 {approx = true} : vector<8x1xf32> -> vector<8x1xf32>
    %43 = vector.broadcast %42 : vector<8x1xf32> to vector<8x128xf32>
    %44 = arith.mulf %39, %43 : vector<8x128xf32>
    %c0_26 = arith.constant 0 : index
    %c0_27 = arith.constant 0 : index
    %45 = vector.load %arg10[%c0_26, %c0_27] : memref<8x128xf32, #tpu.memory_space<vmem>>, vector<8x128xf32>
    tpu.vector_store %arg10[%c0_26, %c0_27], %44 {strides = array<i32>} : memref<8x128xf32, #tpu.memory_space<vmem>>, vector<8x128xf32>,
    return
  }
  func.func @transform_0(%arg0: i32) -> (i32, i32) {
    %c0_i32 = arith.constant 0 : i32
    %c0_i32_0 = arith.constant 0 : i32
    return %arg0, %c0_i32 : i32, i32
  }
  func.func @transform_1(%arg0: i32) -> (i32, i32) {
    %c0_i32 = arith.constant 0 : i32
    %c0_i32_0 = arith.constant 0 : i32
    %c0_i32_1 = arith.constant 0 : i32
    return %c0_i32, %c0_i32_0 : i32, i32
  }
  func.func @transform_2(%arg0: i32) -> (i32, i32) {
    %c0_i32 = arith.constant 0 : i32
    %c0_i32_0 = arith.constant 0 : i32
    %c0_i32_1 = arith.constant 0 : i32
    return %c0_i32, %c0_i32_0 : i32, i32
  }
  func.func @transform_3(%arg0: i32) -> (i32, i32) {
    %c0_i32 = arith.constant 0 : i32
    %c0_i32_0 = arith.constant 0 : i32
    %c0_i32_1 = arith.constant 0 : i32
    return %c0_i32, %c0_i32_0 : i32, i32
  }
  func.func @transform_4(%arg0: i32) -> (i32, i32) {
    %c0_i32 = arith.constant 0 : i32
    %c0_i32_0 = arith.constant 0 : i32
    %c0_i32_1 = arith.constant 0 : i32
    return %c0_i32, %c0_i32_0 : i32, i32
  }
  func.func @transform_5(%arg0: i32) -> (i32, i32) {
    %c0_i32 = arith.constant 0 : i32
    %c0_i32_0 = arith.constant 0 : i32
    %c0_i32_1 = arith.constant 0 : i32
    return %c0_i32, %c0_i32_0 : i32, i32
  }
  func.func @transform_6(%arg0: i32) -> (i32, i32) {
    %c0_i32 = arith.constant 0 : i32
    %c0_i32_0 = arith.constant 0 : i32
    %c0_i32_1 = arith.constant 0 : i32
    return %c0_i32, %c0_i32_0 : i32, i32
  }
  func.func @transform_7(%arg0: i32) -> (i32, i32) {
    %c0_i32 = arith.constant 0 : i32
    %c0_i32_0 = arith.constant 0 : i32
    %c0_i32_1 = arith.constant 0 : i32
    return %c0_i32, %c0_i32_0 : i32, i32
  }
  func.func @transform_8(%arg0: i32) -> (i32, i32) {
    %c0_i32 = arith.constant 0 : i32
    %c0_i32_0 = arith.constant 0 : i32
    %c0_i32_1 = arith.constant 0 : i32
    return %c0_i32, %c0_i32_0 : i32, i32
  }
  func.func @transform_9(%arg0: i32) -> (i32, i32) {
    %c0_i32 = arith.constant 0 : i32
    %c0_i32_0 = arith.constant 0 : i32
    return %arg0, %c0_i32 : i32, i32
  }
}

</mosaic_0001>

<bundles_post_ra>
// kernel: resnet_class3_forward.1
= control target key start
LH: loop header
LB: loop body
LE: loop exit
PB: predicated region body
PF: predicated region fallthrough
CT: control target
= control target key end

     0   :  { %14 = vsyncpa [#allocation3], 0  ;;  %s10563_s0 = inlined_call_operand.vmem [shape: bf16[8,2048], index: 0, kind: input, shape index: {}]   ;;  %s10564_s1 = inlined_call_operand.hbm [shape: bf16[2048,1024], index: 1, kind: input, shape index: {}]   ;;  %s10565_s2 = inlined_call_operand.hbm [shape: f32[1,1024], index: 2, kind: input, shape index: {}]   ;;  %s10566_s3 = inlined_call_operand.hbm [shape: bf16[1024,128], index: 3, kind: input, shape index: {}]   ;;  %s10567_s4 = inlined_call_operand.hbm [shape: f32[1,128], index: 4, kind: input, shape index: {}]   ;;  %s10568_s5 = inlined_call_operand.hbm [shape: bf16[128,128], index: 5, kind: input, shape index: {}]   ;;  %s10569_s6 = inlined_call_operand.hbm [shape: f32[1,128], index: 6, kind: input, shape index: {}]   ;;  %s10570_s7 = inlined_call_operand.hbm [shape: bf16[128,128], index: 7, kind: input, shape index: {}]   ;;  %s10571_s8 = inlined_call_operand.hbm [shape: f32[1,128], index: 8, kind: input, shape index: {}]   ;;  %s10572_s9 = inlined_call_operand.vmem [shape: f32[8,128], index: 9, kind: output, shape index: {}]  }
   0x1   :  { %15 = vsyncpa [#allocation5], 0 }
   0x2   :  { %16 = vsyncpa [#allocation8], 0 }
   0x3   :  { %17 = vsyncpa [#allocation11], 0 }
   0x4   :  { %18 = vsyncpa [#allocation14], 0  ;;  %s10196_s30 = smov [#allocation4]   ;;  %s10197_s11 = smov [#allocation7]  }
   0x5   :  { %s39_s10 = sshll.u32 %s10196_s30, 4  ;;  %s61_s12 = sshll.u32 %s10197_s11, 4  ;;  %s40_s10 = int_to_ptr.vmem [resolvable:$true] %s39_s10  ;;  %s62_s12 = int_to_ptr.vmem [resolvable:$true] %s61_s12 }
   0x6   :  { %s10034_s13 = scalar_lea.vmem %s40_s10, 128  ;;  %p10039_p1 = scmp.lt.s32.totalorder %s40_s10, %s40_s10 }
   0x7   :  { %p10035_p0 = scmp.ne.s32.totalorder %s40_s10, %s10034_s13  ;;  %p10040_p2 = scmp.lt.s32.totalorder %s10034_s13, %s10034_s13 }
   0x9   :  { %p10041_p3 = por %p10040_p2, %p10039_p1 }
   0xb   :  { %p10042_p4 = pnand %p10041_p3, %p10035_p0 }
   0xd   :  { %10045 = shalt.err (!%p10042_p4)
}
   0xe   :  { %42 = dma.hbm_to_vmem [thread:$0]  %s10565_s2, 128, %s40_s10, [#allocation5]  }
   0xf   :  { %s10054_s16 = scalar_lea.vmem %s62_s12, 16  ;;  %s10058_s17 = scalar_lea.vmem %s62_s12, 32 }
  0x10   :  { %p10055_p5 = scmp.ne.s32.totalorder %s62_s12, %s10054_s16  ;;  %p10059_p6 = scmp.lt.s32.totalorder %s62_s12, %s62_s12 }
  0x11   :  { %p10060_p7 = scmp.lt.s32.totalorder %s10058_s17, %s10054_s16 }
  0x13   :  { %p10061_p8 = por %p10060_p7, %p10059_p6 }
  0x15   :  { %p10062_p9 = pnand %p10061_p8, %p10055_p5 }
  0x17   :  { %10065 = shalt.err (!%p10062_p9)
}
  0x18   :  { %64 = dma.hbm_to_vmem [thread:$0]  %s10567_s4, 16, %s62_s12, [#allocation8]  }
  0x19   :  { %s10198_s20 = smov [#allocation10]   ;;  %s10199_s22 = smov [#allocation2]  }
  0x1a   :  { %s83_s21 = sshll.u32 %s10198_s20, 4  ;;  %s26_s23 = sshll.u32 %s10199_s22, 4  ;;  %s84_s21 = int_to_ptr.vmem [resolvable:$true] %s83_s21  ;;  %s27_s23 = int_to_ptr.vmem [resolvable:$true] %s26_s23 }
  0x1b   :  { %s10074_s24 = scalar_lea.vmem %s84_s21, 16  ;;  %s10078_s2 = scalar_lea.vmem %s84_s21, 32 }
  0x1c   :  { %p10075_p10 = scmp.ne.s32.totalorder %s84_s21, %s10074_s24  ;;  %p10079_p11 = scmp.lt.s32.totalorder %s84_s21, %s84_s21 }
  0x1d   :  { %p10080_p12 = scmp.lt.s32.totalorder %s10078_s2, %s10074_s24 }
  0x1f   :  { %p10081_p13 = por %p10080_p12, %p10079_p11 }
  0x21   :  { %p10082_p0 = pnand %p10081_p13, %p10075_p10 }
  0x23   :  { %10085 = shalt.err (!%p10082_p0)
}
  0x24   :  { %86 = dma.hbm_to_vmem [thread:$0]  %s10569_s6, 16, %s84_s21, [#allocation11]  }
  0x25   :  { %s10094_s27 = scalar_lea.vmem %s27_s23, 131072  ;;  %p10099_p2 = scmp.lt.s32.totalorder %s27_s23, %s27_s23 }
  0x26   :  { %p10095_p1 = scmp.ne.s32.totalorder %s27_s23, %s10094_s27  ;;  %p10100_p3 = scmp.lt.s32.totalorder %s10094_s27, %s10094_s27 }
  0x28   :  { %p10101_p4 = por %p10100_p3, %p10099_p2 }
  0x2a   :  { %p10102_p5 = pnand %p10101_p4, %p10095_p1 }
  0x2c   :  { %10105 = shalt.err (!%p10102_p5)
}
  0x2d   :  { %s10200_s4 = smov 512   ;;  %s10201_s28 = smov 32  }
  0x2e   :  { %32 = dma.hbm_to_vmem [thread:$0]  %s10564_s1, 131072, %s27_s23, [#allocation3], %s10200_s4, %s10200_s4, %s10201_s28  }
  0x2f   :  { %s10202_s10 = smov [#allocation6]  }
  0x30   :  { %s48_s11 = sshll.u32 %s10202_s10, 4  ;;  %s49_s11 = int_to_ptr.vmem [resolvable:$true] %s48_s11 }
  0x31   :  { %s10114_s12 = scalar_lea.vmem %s49_s11, 8192  ;;  %p10119_p7 = scmp.lt.s32.totalorder %s49_s11, %s49_s11 }
  0x32   :  { %p10115_p6 = scmp.ne.s32.totalorder %s49_s11, %s10114_s12  ;;  %p10120_p8 = scmp.lt.s32.totalorder %s10114_s12, %s10114_s12 }
  0x34   :  { %p10121_p9 = por %p10120_p8, %p10119_p7 }
  0x36   :  { %p10122_p10 = pnand %p10121_p9, %p10115_p6 }
  0x38   :  { %10125 = shalt.err (!%p10122_p10)
}
  0x39   :  { %s10203_s6 = smov 64   ;;  %s10204_s13 = smov 4  }
  0x3a   :  { %54 = dma.hbm_to_vmem [thread:$0]  %s10566_s3, 8192, %s49_s11, [#allocation5], %s10203_s6, %s10203_s6, %s10204_s13  }
  0x3b   :  { %s10205_s16 = smov [#allocation9]   ;;  %s10206_s1 = smov [#allocation12]  }
  0x3c   :  { %s70_s17 = sshll.u32 %s10205_s16, 4  ;;  %s92_s18 = sshll.u32 %s10206_s1, 4  ;;  %s71_s17 = int_to_ptr.vmem [resolvable:$true] %s70_s17  ;;  %s93_s18 = int_to_ptr.vmem [resolvable:$true] %s92_s18 }
  0x3d   :  { %s10134_s19 = scalar_lea.vmem %s71_s17, 1024  ;;  %p10139_p12 = scmp.lt.s32.totalorder %s71_s17, %s71_s17 }
  0x3e   :  { %p10135_p11 = scmp.ne.s32.totalorder %s71_s17, %s10134_s19  ;;  %p10140_p13 = scmp.lt.s32.totalorder %s10134_s19, %s10134_s19 }
  0x40   :  { %p10141_p0 = por %p10140_p13, %p10139_p12 }
  0x42   :  { %p10142_p1 = pnand %p10141_p0, %p10135_p11 }
  0x44   :  { %10145 = shalt.err (!%p10142_p1)
}
  0x45   :  { %76 = dma.hbm_to_vmem [thread:$0]  %s10568_s5, 1024, %s71_s17, [#allocation8], %s10203_s6, %s10203_s6, %s10204_s13  }
  0x46   :  { %s10154_s22 = scalar_lea.vmem %s93_s18, 1024  ;;  %p10159_p3 = scmp.lt.s32.totalorder %s93_s18, %s93_s18 }
  0x47   :  { %p10155_p2 = scmp.ne.s32.totalorder %s93_s18, %s10154_s22  ;;  %p10160_p4 = scmp.lt.s32.totalorder %s10154_s22, %s10154_s22 }
  0x49   :  { %p10161_p5 = por %p10160_p4, %p10159_p3 }
  0x4b   :  { %p10162_p6 = pnand %p10161_p5, %p10155_p2 }
  0x4d   :  { %10165 = shalt.err (!%p10162_p6)
}
  0x4e   :  { %98 = dma.hbm_to_vmem [thread:$0]  %s10570_s7, 1024, %s93_s18, [#allocation11], %s10203_s6, %s10203_s6, %s10204_s13  }
  0x4f   :  { %s10207_s24 = smov [#allocation13]  }
  0x50   :  { %s105_s2 = sshll.u32 %s10207_s24, 4  ;;  %s106_s2 = int_to_ptr.vmem [resolvable:$true] %s105_s2 }
  0x51   :  { %s10174_s25 = scalar_lea.vmem %s106_s2, 16  ;;  %s10178_s26 = scalar_lea.vmem %s106_s2, 32 }
  0x52   :  { %p10175_p7 = scmp.ne.s32.totalorder %s106_s2, %s10174_s25  ;;  %p10179_p8 = scmp.lt.s32.totalorder %s106_s2, %s106_s2 }
  0x53   :  { %p10180_p9 = scmp.lt.s32.totalorder %s10178_s26, %s10174_s25 }
  0x55   :  { %p10181_p10 = por %p10180_p9, %p10179_p8 }
  0x57   :  { %p10182_p11 = pnand %p10181_p10, %p10175_p7 }
  0x59   :  { %10185 = shalt.err (!%p10182_p11)
}
  0x5a   :  { %108 = dma.hbm_to_vmem [thread:$0]  %s10571_s8, 16, %s106_s2, [#allocation14]  }
  0x5b   :  { %10186 = dma.done.wait [#allocation3], 131072  }
  0x5c   :  { %10187 = vsyncadd [#allocation3], 4294836224 }
  0x5d   :  { %10188 = dma.done.wait [#allocation5], 8320  }
  0x5e   :  { %10189 = vsyncadd [#allocation5], 4294958976 }
  0x5f   :  { %10190 = dma.done.wait [#allocation8], 1040  }
  0x60   :  { %10191 = vsyncadd [#allocation8], 4294966256 }
  0x61   :  { %10192 = dma.done.wait [#allocation11], 1040  }
  0x62   :  { %10193 = vsyncadd [#allocation11], 4294966256 }
  0x63   :  { %10194 = dma.done.wait [#allocation14], 16  }
  0x64   :  { %10195 = vsyncadd [#allocation14], 4294967280  ;;  %v198_v0 = vld [vmem:[#allocation2 + $0x1c0] sm:$0xff]  ;;  %v10292_v54 = vld [vmem:[%s10563_s0 + $0x8] sm:$0xff]  ;;  %vm10209_vm0 = vmmov 0  }
  0x65   :  { %v202_v1 = vld [vmem:[#allocation2 + $0x1e0] sm:$0xff]  ;;  %v10300_v59 = vcombine.high %v10292_v54, %v10292_v54 }
  0x66   :  { %v326_v2 = vld [vmem:[#allocation2 + $0x5c0] sm:$0xff]  ;;  %v8713_v3 = vcombine.high %v198_v0, %v202_v1  ;;  %v8712_v5 = vcombine.low %v198_v0, %v202_v1 }
  0x67   :  { %v330_v4 = vld [vmem:[#allocation2 + $0x5e0] sm:$0xff]  ;;  %6457 = vmatprep.mubr.bf16.mxu1 %v10300_v59 }
  0x68   :  { %v190_v6 = vld [vmem:[#allocation2 + $0x180] sm:$0xff]  ;;  %v8841_v8 = vcombine.high %v326_v2, %v330_v4  ;;  %v8840_v9 = vcombine.low %v326_v2, %v330_v4  ;;  %6384 = vmatprep.subr.bf16.mxu0 %v8713_v3 }
  0x69   :  { %v194_v7 = vld [vmem:[#allocation2 + $0x1a0] sm:$0xff]  ;;  %6385 = vmatpush1.bf16.msra.mxu0 %v8712_v5 }
  0x6a   :  { %v8705_v10 = vcombine.high %v190_v6, %v194_v7  ;;  %v318_v11 = vld [vmem:[#allocation2 + $0x580] sm:$0xff]  ;;  %6425 = vmatprep.subr.bf16.mxu1 %v8841_v8  ;;  %v8704_v18 = vcombine.low %v190_v6, %v194_v7 }
  0x6b   :  { %v322_v12 = vld [vmem:[#allocation2 + $0x5a0] sm:$0xff]  ;;  %6426 = vmatpush1.bf16.msra.mxu1 %v8840_v9 }
  0x6c   :  { %v182_v13 = vld [vmem:[#allocation2 + $0x140] sm:$0xff]  ;;  %v8833_v14 = vcombine.high %v318_v11, %v322_v12  ;;  %6386 = vmatprep.subr.bf16.mxu0 %v8705_v10  ;;  %v8832_v19 = vcombine.low %v318_v11, %v322_v12 }
  0x6d   :  { %v186_v15 = vld [vmem:[#allocation2 + $0x160] sm:$0xff]  ;;  %6387 = vmatpush1.bf16.msra.mxu0 %v8704_v18 }
  0x6e   :  { %v310_v16 = vld [vmem:[#allocation2 + $0x540] sm:$0xff]  ;;  %v8697_v20 = vcombine.high %v182_v13, %v186_v15  ;;  %6427 = vmatprep.subr.bf16.mxu1 %v8833_v14  ;;  %v8696_v26 = vcombine.low %v182_v13, %v186_v15 }
  0x6f   :  { %v314_v17 = vld [vmem:[#allocation2 + $0x560] sm:$0xff]  ;;  %6428 = vmatpush1.bf16.msra.mxu1 %v8832_v19 }
  0x70   :  { %v8825_v21 = vcombine.high %v310_v16, %v314_v17  ;;  %v174_v22 = vld [vmem:[#allocation2 + $0x100] sm:$0xff]  ;;  %6388 = vmatprep.subr.bf16.mxu0 %v8697_v20  ;;  %v8824_v27 = vcombine.low %v310_v16, %v314_v17 }
  0x71   :  { %v178_v23 = vld [vmem:[#allocation2 + $0x120] sm:$0xff]  ;;  %6389 = vmatpush1.bf16.msra.mxu0 %v8696_v26 }
  0x72   :  { %v302_v24 = vld [vmem:[#allocation2 + $0x500] sm:$0xff]  ;;  %v8689_v28 = vcombine.high %v174_v22, %v178_v23  ;;  %6429 = vmatprep.subr.bf16.mxu1 %v8825_v21  ;;  %v8688_v34 = vcombine.low %v174_v22, %v178_v23 }
  0x73   :  { %v306_v25 = vld [vmem:[#allocation2 + $0x520] sm:$0xff]  ;;  %6430 = vmatpush1.bf16.msra.mxu1 %v8824_v27 }
  0x74   :  { %v8817_v29 = vcombine.high %v302_v24, %v306_v25  ;;  %v166_v30 = vld [vmem:[#allocation2 + $0xc0] sm:$0xff]  ;;  %6390 = vmatprep.subr.bf16.mxu0 %v8689_v28  ;;  %v8816_v35 = vcombine.low %v302_v24, %v306_v25 }
  0x75   :  { %v170_v31 = vld [vmem:[#allocation2 + $0xe0] sm:$0xff]  ;;  %6391 = vmatpush1.bf16.msra.mxu0 %v8688_v34 }
  0x76   :  { %v294_v32 = vld [vmem:[#allocation2 + $0x4c0] sm:$0xff]  ;;  %v8681_v36 = vcombine.high %v166_v30, %v170_v31  ;;  %6431 = vmatprep.subr.bf16.mxu1 %v8817_v29  ;;  %v8680_v42 = vcombine.low %v166_v30, %v170_v31 }
  0x77   :  { %v298_v33 = vld [vmem:[#allocation2 + $0x4e0] sm:$0xff]  ;;  %6432 = vmatpush1.bf16.msra.mxu1 %v8816_v35 }
  0x78   :  { %v8809_v37 = vcombine.high %v294_v32, %v298_v33  ;;  %v158_v38 = vld [vmem:[#allocation2 + $0x80] sm:$0xff]  ;;  %6392 = vmatprep.subr.bf16.mxu0 %v8681_v36  ;;  %v8808_v43 = vcombine.low %v294_v32, %v298_v33 }
  0x79   :  { %v162_v39 = vld [vmem:[#allocation2 + $0xa0] sm:$0xff]  ;;  %6393 = vmatpush1.bf16.msra.mxu0 %v8680_v42 }
  0x7a   :  { %v286_v40 = vld [vmem:[#allocation2 + $0x480] sm:$0xff]  ;;  %v8673_v44 = vcombine.high %v158_v38, %v162_v39  ;;  %6433 = vmatprep.subr.bf16.mxu1 %v8809_v37  ;;  %v8672_v50 = vcombine.low %v158_v38, %v162_v39 }
  0x7b   :  { %v290_v41 = vld [vmem:[#allocation2 + $0x4a0] sm:$0xff]  ;;  %6434 = vmatpush1.bf16.msra.mxu1 %v8808_v43 }
  0x7c   :  { %v8801_v45 = vcombine.high %v286_v40, %v290_v41  ;;  %v150_v46 = vld [vmem:[#allocation2 + $0x40] sm:$0xff]  ;;  %6394 = vmatprep.subr.bf16.mxu0 %v8673_v44  ;;  %v8800_v51 = vcombine.low %v286_v40, %v290_v41 }
  0x7d   :  { %v154_v47 = vld [vmem:[#allocation2 + $0x60] sm:$0xff]  ;;  %6395 = vmatpush1.bf16.msra.mxu0 %v8672_v50 }
  0x7e   :  { %v278_v48 = vld [vmem:[#allocation2 + $0x440] sm:$0xff]  ;;  %v8665_v52 = vcombine.high %v150_v46, %v154_v47  ;;  %6435 = vmatprep.subr.bf16.mxu1 %v8801_v45  ;;  %v8664_v62 = vcombine.low %v150_v46, %v154_v47 }
  0x7f   :  { %v282_v49 = vld [vmem:[#allocation2 + $0x460] sm:$0xff]  ;;  %6436 = vmatpush1.bf16.msra.mxu1 %v8800_v51 }
  0x80   :  { %v10287_v53 = vld [vmem:[%s10563_s0] sm:$0xff]  ;;  %v8793_v55 = vcombine.high %v278_v48, %v282_v49  ;;  %6396 = vmatprep.subr.bf16.mxu0 %v8665_v52  ;;  %v8792_v63 = vcombine.low %v278_v48, %v282_v49 }
  0x81   :  { %v142_v56 = vld [vmem:[#allocation2] sm:$0xff]  ;;  %v10296_v58 = vcombine.high %v10287_v53, %v10287_v53  ;;  %6397 = vmatpush1.bf16.msra.mxu0 %v8664_v62 }
  0x82   :  { %v146_v57 = vld [vmem:[#allocation2 + $0x20] sm:$0xff]  ;;  %6437 = vmatprep.subr.bf16.mxu1 %v8793_v55 }
  0x83   :  { %v270_v60 = vld [vmem:[#allocation2 + $0x400] sm:$0xff]  ;;  %6416 = vmatprep.mubr.bf16.mxu0 %v10296_v58  ;;  %v8657_v0 = vcombine.high %v142_v56, %v146_v57  ;;  %v8656_v6 = vcombine.low %v142_v56, %v146_v57  ;;  %6438 = vmatpush1.bf16.msra.mxu1 %v8792_v63 }
  0x84   :  { %v274_v61 = vld [vmem:[#allocation2 + $0x420] sm:$0xff] }
  0x85   :  { %v8785_v1 = vcombine.high %v270_v60, %v274_v61  ;;  %v262_v2 = vld [vmem:[#allocation2 + $0x3c0] sm:$0xff]  ;;  %6398 = vmatprep.subr.bf16.mxu0 %v8657_v0  ;;  %v8784_v7 = vcombine.low %v270_v60, %v274_v61 }
  0x86   :  { %v266_v3 = vld [vmem:[#allocation2 + $0x3e0] sm:$0xff]  ;;  %6399 = vmatpush1.bf16.msra.mxu0 %v8656_v6 }
  0x87   :  { %v390_v4 = vld [vmem:[#allocation2 + $0x7c0] sm:$0xff]  ;;  %v8777_v8 = vcombine.high %v262_v2, %v266_v3  ;;  %6439 = vmatprep.subr.bf16.mxu1 %v8785_v1  ;;  %v8776_v14 = vcombine.low %v262_v2, %v266_v3 }
  0x88   :  { %v394_v5 = vld [vmem:[#allocation2 + $0x7e0] sm:$0xff]  ;;  %6440 = vmatpush1.bf16.msra.mxu1 %v8784_v7 }
  0x89   :  { %v8905_v9 = vcombine.high %v390_v4, %v394_v5  ;;  %v254_v10 = vld [vmem:[#allocation2 + $0x380] sm:$0xff]  ;;  %6400 = vmatprep.subr.bf16.mxu0 %v8777_v8  ;;  %v8904_v15 = vcombine.low %v390_v4, %v394_v5 }
  0x8a   :  { %v258_v11 = vld [vmem:[#allocation2 + $0x3a0] sm:$0xff]  ;;  %6401 = vmatpush2.bf16.msra.mxu0 %v8776_v14 }
  0x8b   :  { %v382_v12 = vld [vmem:[#allocation2 + $0x780] sm:$0xff]  ;;  %v8769_v16 = vcombine.high %v254_v10, %v258_v11  ;;  %6441 = vmatprep.subr.bf16.mxu1 %v8905_v9  ;;  %v8768_v22 = vcombine.low %v254_v10, %v258_v11 }
  0x8c   :  { %v386_v13 = vld [vmem:[#allocation2 + $0x7a0] sm:$0xff]  ;;  %6442 = vmatpush2.bf16.msra.mxu1 %v8904_v15 }
  0x8d   :  { %v8897_v17 = vcombine.high %v382_v12, %v386_v13  ;;  %v246_v18 = vld [vmem:[#allocation2 + $0x340] sm:$0xff]  ;;  %6402 = vmatprep.subr.bf16.mxu0 %v8769_v16  ;;  %v8896_v23 = vcombine.low %v382_v12, %v386_v13  ;;  %v10306_v16 = vcombine.low %v10287_v53, %v10287_v53 }
  0x8e   :  { %v250_v19 = vld [vmem:[#allocation2 + $0x360] sm:$0xff]  ;;  %6403 = vmatpush2.bf16.msra.mxu0 %v8768_v22  ;;  %v10320_v22 = vld [vmem:[%s10563_s0 + $0x18] sm:$0xff] }
  0x8f   :  { %v374_v20 = vld [vmem:[#allocation2 + $0x740] sm:$0xff]  ;;  %v8761_v24 = vcombine.high %v246_v18, %v250_v19  ;;  %6443 = vmatprep.subr.bf16.mxu1 %v8897_v17  ;;  %v8760_v30 = vcombine.low %v246_v18, %v250_v19  ;;  %v10311_v19 = vld [vmem:[%s10563_s0 + $0x10] sm:$0xff] }
  0x90   :  { %v378_v21 = vld [vmem:[#allocation2 + $0x760] sm:$0xff]  ;;  %6444 = vmatpush2.bf16.msra.mxu1 %v8896_v23 }
  0x91   :  { %v8889_v25 = vcombine.high %v374_v20, %v378_v21  ;;  %v238_v26 = vld [vmem:[#allocation2 + $0x300] sm:$0xff]  ;;  %6404 = vmatprep.subr.bf16.mxu0 %v8761_v24  ;;  %v8888_v31 = vcombine.low %v374_v20, %v378_v21  ;;  %v10315_v20 = vcombine.low %v10292_v54, %v10292_v54 }
  0x92   :  { %v242_v27 = vld [vmem:[#allocation2 + $0x320] sm:$0xff]  ;;  %6405 = vmatpush2.bf16.msra.mxu0 %v8760_v30 }
  0x93   :  { %v366_v28 = vld [vmem:[#allocation2 + $0x700] sm:$0xff]  ;;  %v8753_v32 = vcombine.high %v238_v26, %v242_v27  ;;  %6445 = vmatprep.subr.bf16.mxu1 %v8889_v25  ;;  %v8752_v38 = vcombine.low %v238_v26, %v242_v27 }
  0x94   :  { %v370_v29 = vld [vmem:[#allocation2 + $0x720] sm:$0xff]  ;;  %6446 = vmatpush2.bf16.msra.mxu1 %v8888_v31 }
  0x95   :  { %v8881_v33 = vcombine.high %v366_v28, %v370_v29  ;;  %v230_v34 = vld [vmem:[#allocation2 + $0x2c0] sm:$0xff]  ;;  %6406 = vmatprep.subr.bf16.mxu0 %v8753_v32  ;;  %v8880_v39 = vcombine.low %v366_v28, %v370_v29  ;;  %v10324_v28 = vcombine.high %v10311_v19, %v10311_v19  ;;  %v10329_v29 = vcombine.high %v10320_v22, %v10320_v22 }
  0x96   :  { %v234_v35 = vld [vmem:[#allocation2 + $0x2e0] sm:$0xff]  ;;  %6407 = vmatpush2.bf16.msra.mxu0 %v8752_v38 }
  0x97   :  { %v358_v36 = vld [vmem:[#allocation2 + $0x6c0] sm:$0xff]  ;;  %v8745_v40 = vcombine.high %v230_v34, %v234_v35  ;;  %6447 = vmatprep.subr.bf16.mxu1 %v8881_v33  ;;  %v8744_v46 = vcombine.low %v230_v34, %v234_v35 }
  0x98   :  { %v362_v37 = vld [vmem:[#allocation2 + $0x6e0] sm:$0xff]  ;;  %6448 = vmatpush2.bf16.msra.mxu1 %v8880_v39 }
  0x99   :  { %v8873_v41 = vcombine.high %v358_v36, %v362_v37  ;;  %v222_v42 = vld [vmem:[#allocation2 + $0x280] sm:$0xff]  ;;  %6408 = vmatprep.subr.bf16.mxu0 %v8745_v40  ;;  %v8872_v47 = vcombine.low %v358_v36, %v362_v37 }
  0x9a   :  { %v226_v43 = vld [vmem:[#allocation2 + $0x2a0] sm:$0xff]  ;;  %6409 = vmatpush2.bf16.msra.mxu0 %v8744_v46 }
  0x9b   :  { %v350_v44 = vld [vmem:[#allocation2 + $0x680] sm:$0xff]  ;;  %v8737_v48 = vcombine.high %v222_v42, %v226_v43  ;;  %6449 = vmatprep.subr.bf16.mxu1 %v8873_v41  ;;  %v8736_v56 = vcombine.low %v222_v42, %v226_v43 }
  0x9c   :  { %v354_v45 = vld [vmem:[#allocation2 + $0x6a0] sm:$0xff]  ;;  %6450 = vmatpush2.bf16.msra.mxu1 %v8872_v47 }
  0x9d   :  { %v8865_v49 = vcombine.high %v350_v44, %v354_v45  ;;  %v214_v50 = vld [vmem:[#allocation2 + $0x240] sm:$0xff]  ;;  %6410 = vmatprep.subr.bf16.mxu0 %v8737_v48  ;;  %v8864_v57 = vcombine.low %v350_v44, %v354_v45 }
  0x9e   :  { %v218_v51 = vld [vmem:[#allocation2 + $0x260] sm:$0xff]  ;;  %6411 = vmatpush2.bf16.msra.mxu0 %v8736_v56 }
  0x9f   :  { %v342_v52 = vld [vmem:[#allocation2 + $0x640] sm:$0xff]  ;;  %v8729_v60 = vcombine.high %v214_v50, %v218_v51  ;;  %6451 = vmatprep.subr.bf16.mxu1 %v8865_v49  ;;  %v8728_v2 = vcombine.low %v214_v50, %v218_v51 }
  0xa0   :  { %v346_v55 = vld [vmem:[#allocation2 + $0x660] sm:$0xff]  ;;  %6452 = vmatpush2.bf16.msra.mxu1 %v8864_v57 }
  0xa1   :  { %v8857_v61 = vcombine.high %v342_v52, %v346_v55  ;;  %v206_v62 = vld [vmem:[#allocation2 + $0x200] sm:$0xff]  ;;  %6412 = vmatprep.subr.bf16.mxu0 %v8729_v60  ;;  %v8856_v3 = vcombine.low %v342_v52, %v346_v55 }
  0xa2   :  { %v210_v63 = vld [vmem:[#allocation2 + $0x220] sm:$0xff]  ;;  %6413 = vmatpush2.bf16.msra.mxu0 %v8728_v2 }
  0xa3   :  { %v334_v0 = vld [vmem:[#allocation2 + $0x600] sm:$0xff]  ;;  %v8721_v4 = vcombine.high %v206_v62, %v210_v63  ;;  %6453 = vmatprep.subr.bf16.mxu1 %v8857_v61  ;;  %v8720_v10 = vcombine.low %v206_v62, %v210_v63 }
  0xa4   :  { %v338_v1 = vld [vmem:[#allocation2 + $0x620] sm:$0xff]  ;;  %6454 = vmatpush2.bf16.msra.mxu1 %v8856_v3 }
  0xa5   :  { %v8849_v5 = vcombine.high %v334_v0, %v338_v1  ;;  %v454_v6 = vld [vmem:[#allocation2 + $0x9c0] sm:$0xff]  ;;  %6414 = vmatprep.subr.bf16.mxu0 %v8721_v4  ;;  %v8848_v11 = vcombine.low %v334_v0, %v338_v1 }
  0xa6   :  { %v458_v7 = vld [vmem:[#allocation2 + $0x9e0] sm:$0xff]  ;;  %6415 = vmatpush2.bf16.msra.mxu0 %v8720_v10 }
  0xa7   :  { %v582_v8 = vld [vmem:[#allocation2 + $0xdc0] sm:$0xff]  ;;  %v8969_v12 = vcombine.high %v454_v6, %v458_v7  ;;  %6455 = vmatprep.subr.bf16.mxu1 %v8849_v5  ;;  %v8968_v21 = vcombine.low %v454_v6, %v458_v7 }
  0xa8   :  { %v586_v9 = vld [vmem:[#allocation2 + $0xde0] sm:$0xff]  ;;  %6456 = vmatpush2.bf16.msra.mxu1 %v8848_v11 }
  0xa9   :  { %v9097_v13 = vcombine.high %v582_v8, %v586_v9  ;;  %v446_v14 = vld [vmem:[#allocation2 + $0x980] sm:$0xff]  ;;  %6466 = vmatprep.subr.bf16.mxu0 %v8969_v12  ;;  %v9096_v53 = vcombine.low %v582_v8, %v586_v9  ;;  %6417 = vmatmul.mubr.bf16.vlgmr.msra.gmra.mxu0 %v10306_v16 }
  0xaa   :  { %v450_v15 = vld [vmem:[#allocation2 + $0x9a0] sm:$0xff]  ;;  %6467 = vmatpush1.bf16.msra.mxu0 %v8968_v21  ;;  %6498 = vmatprep.mubr.bf16.mxu0 %v10324_v28 }
  0xab   :  { %v574_v17 = vld [vmem:[#allocation2 + $0xd80] sm:$0xff]  ;;  %v8961_v23 = vcombine.high %v446_v14, %v450_v15  ;;  %6507 = vmatprep.subr.bf16.mxu1 %v9097_v13  ;;  %6458 = vmatmul.mubr.bf16.vlgmr.msra.gmra.mxu1 %v10315_v20  ;;  %v8960_v30 = vcombine.low %v446_v14, %v450_v15 }
  0xac   :  { %v578_v18 = vld [vmem:[#allocation2 + $0xda0] sm:$0xff]  ;;  %6508 = vmatpush1.bf16.msra.mxu1 %v9096_v53  ;;  %6539 = vmatprep.mubr.bf16.mxu1 %v10329_v29 }
  0xad   :  { %v9089_v24 = vcombine.high %v574_v17, %v578_v18  ;;  %v438_v25 = vld [vmem:[#allocation2 + $0x940] sm:$0xff]  ;;  %6468 = vmatprep.subr.bf16.mxu0 %v8961_v23  ;;  %v9088_v31 = vcombine.low %v574_v17, %v578_v18 }
  0xae   :  { %v442_v26 = vld [vmem:[#allocation2 + $0x960] sm:$0xff]  ;;  %6469 = vmatpush1.bf16.msra.mxu0 %v8960_v30 }
  0xaf   :  { %v566_v27 = vld [vmem:[#allocation2 + $0xd40] sm:$0xff]  ;;  %v8953_v32 = vcombine.high %v438_v25, %v442_v26  ;;  %6509 = vmatprep.subr.bf16.mxu1 %v9089_v24  ;;  %v8952_v38 = vcombine.low %v438_v25, %v442_v26 }
  0xb0   :  { %v570_v54 = vld [vmem:[#allocation2 + $0xd60] sm:$0xff]  ;;  %6510 = vmatpush1.bf16.msra.mxu1 %v9088_v31 }
  0xb1   :  { %v430_v33 = vld [vmem:[#allocation2 + $0x900] sm:$0xff]  ;;  %v9081_v36 = vcombine.high %v566_v27, %v570_v54  ;;  %6470 = vmatprep.subr.bf16.mxu0 %v8953_v32  ;;  %v9080_v39 = vcombine.low %v566_v27, %v570_v54 }
  0xb2   :  { %v434_v34 = vld [vmem:[#allocation2 + $0x920] sm:$0xff]  ;;  %6471 = vmatpush1.bf16.msra.mxu0 %v8952_v38 }
  0xb3   :  { %v558_v35 = vld [vmem:[#allocation2 + $0xd00] sm:$0xff]  ;;  %v8945_v40 = vcombine.high %v430_v33, %v434_v34  ;;  %6511 = vmatprep.subr.bf16.mxu1 %v9081_v36  ;;  %v8944_v46 = vcombine.low %v430_v33, %v434_v34 }
  0xb4   :  { %v562_v37 = vld [vmem:[#allocation2 + $0xd20] sm:$0xff]  ;;  %6512 = vmatpush1.bf16.msra.mxu1 %v9080_v39 }
  0xb5   :  { %v422_v41 = vld [vmem:[#allocation2 + $0x8c0] sm:$0xff]  ;;  %v9073_v44 = vcombine.high %v558_v35, %v562_v37  ;;  %6472 = vmatprep.subr.bf16.mxu0 %v8945_v40  ;;  %v9072_v47 = vcombine.low %v558_v35, %v562_v37 }
  0xb6   :  { %v426_v42 = vld [vmem:[#allocation2 + $0x8e0] sm:$0xff]  ;;  %6473 = vmatpush1.bf16.msra.mxu0 %v8944_v46 }
  0xb7   :  { %v550_v43 = vld [vmem:[#allocation2 + $0xcc0] sm:$0xff]  ;;  %v8937_v48 = vcombine.high %v422_v41, %v426_v42  ;;  %6513 = vmatprep.subr.bf16.mxu1 %v9073_v44  ;;  %v8936_v56 = vcombine.low %v422_v41, %v426_v42 }
  0xb8   :  { %v554_v45 = vld [vmem:[#allocation2 + $0xce0] sm:$0xff]  ;;  %6514 = vmatpush1.bf16.msra.mxu1 %v9072_v47 }
  0xb9   :  { %v414_v49 = vld [vmem:[#allocation2 + $0x880] sm:$0xff]  ;;  %v9065_v52 = vcombine.high %v550_v43, %v554_v45  ;;  %6474 = vmatprep.subr.bf16.mxu0 %v8937_v48  ;;  %v9064_v57 = vcombine.low %v550_v43, %v554_v45 }
  0xba   :  { %v418_v50 = vld [vmem:[#allocation2 + $0x8a0] sm:$0xff]  ;;  %6475 = vmatpush1.bf16.msra.mxu0 %v8936_v56 }
  0xbb   :  { %v542_v51 = vld [vmem:[#allocation2 + $0xc80] sm:$0xff]  ;;  %v8929_v60 = vcombine.high %v414_v49, %v418_v50  ;;  %6515 = vmatprep.subr.bf16.mxu1 %v9065_v52  ;;  %v8928_v2 = vcombine.low %v414_v49, %v418_v50 }
  0xbc   :  { %v546_v55 = vld [vmem:[#allocation2 + $0xca0] sm:$0xff]  ;;  %6516 = vmatpush1.bf16.msra.mxu1 %v9064_v57 }
  0xbd   :  { %v406_v61 = vld [vmem:[#allocation2 + $0x840] sm:$0xff]  ;;  %v9057_v0 = vcombine.high %v542_v51, %v546_v55  ;;  %6476 = vmatprep.subr.bf16.mxu0 %v8929_v60  ;;  %v9056_v3 = vcombine.low %v542_v51, %v546_v55 }
  0xbe   :  { %v410_v62 = vld [vmem:[#allocation2 + $0x860] sm:$0xff]  ;;  %6477 = vmatpush1.bf16.msra.mxu0 %v8928_v2 }
  0xbf   :  { %v534_v63 = vld [vmem:[#allocation2 + $0xc40] sm:$0xff]  ;;  %v8921_v4 = vcombine.high %v406_v61, %v410_v62  ;;  %6517 = vmatprep.subr.bf16.mxu1 %v9057_v0  ;;  %v8920_v10 = vcombine.low %v406_v61, %v410_v62 }
  0xc0   :  { %v538_v1 = vld [vmem:[#allocation2 + $0xc60] sm:$0xff]  ;;  %6518 = vmatpush1.bf16.msra.mxu1 %v9056_v3 }
  0xc1   :  { %v398_v5 = vld [vmem:[#allocation2 + $0x800] sm:$0xff]  ;;  %v9049_v8 = vcombine.high %v534_v63, %v538_v1  ;;  %6478 = vmatprep.subr.bf16.mxu0 %v8921_v4  ;;  %v9048_v11 = vcombine.low %v534_v63, %v538_v1 }
  0xc2   :  { %v402_v6 = vld [vmem:[#allocation2 + $0x820] sm:$0xff]  ;;  %6479 = vmatpush1.bf16.msra.mxu0 %v8920_v10 }
  0xc3   :  { %v526_v7 = vld [vmem:[#allocation2 + $0xc00] sm:$0xff]  ;;  %v8913_v12 = vcombine.high %v398_v5, %v402_v6  ;;  %6519 = vmatprep.subr.bf16.mxu1 %v9049_v8  ;;  %v8912_v21 = vcombine.low %v398_v5, %v402_v6 }
  0xc4   :  { %v530_v9 = vld [vmem:[#allocation2 + $0xc20] sm:$0xff]  ;;  %6520 = vmatpush1.bf16.msra.mxu1 %v9048_v11 }
  0xc5   :  { %v518_v13 = vld [vmem:[#allocation2 + $0xbc0] sm:$0xff]  ;;  %v9041_v17 = vcombine.high %v526_v7, %v530_v9  ;;  %6480 = vmatprep.subr.bf16.mxu0 %v8913_v12  ;;  %v9040_v53 = vcombine.low %v526_v7, %v530_v9 }
  0xc6   :  { %v522_v14 = vld [vmem:[#allocation2 + $0xbe0] sm:$0xff]  ;;  %6481 = vmatpush1.bf16.msra.mxu0 %v8912_v21 }
  0xc7   :  { %v646_v15 = vld [vmem:[#allocation2 + $0xfc0] sm:$0xff]  ;;  %v9033_v23 = vcombine.high %v518_v13, %v522_v14  ;;  %6521 = vmatprep.subr.bf16.mxu1 %v9041_v17  ;;  %v9032_v30 = vcombine.low %v518_v13, %v522_v14 }
  0xc8   :  { %v650_v18 = vld [vmem:[#allocation2 + $0xfe0] sm:$0xff]  ;;  %6522 = vmatpush1.bf16.msra.mxu1 %v9040_v53 }
  0xc9   :  { %v510_v24 = vld [vmem:[#allocation2 + $0xb80] sm:$0xff]  ;;  %v9161_v27 = vcombine.high %v646_v15, %v650_v18  ;;  %6482 = vmatprep.subr.bf16.mxu0 %v9033_v23  ;;  %v9160_v31 = vcombine.low %v646_v15, %v650_v18 }
  0xca   :  { %v514_v25 = vld [vmem:[#allocation2 + $0xba0] sm:$0xff]  ;;  %6483 = vmatpush2.bf16.msra.mxu0 %v9032_v30 }
  0xcb   :  { %v638_v26 = vld [vmem:[#allocation2 + $0xf80] sm:$0xff]  ;;  %v9025_v32 = vcombine.high %v510_v24, %v514_v25  ;;  %6523 = vmatprep.subr.bf16.mxu1 %v9161_v27  ;;  %v9024_v38 = vcombine.low %v510_v24, %v514_v25 }
  0xcc   :  { %v642_v54 = vld [vmem:[#allocation2 + $0xfa0] sm:$0xff]  ;;  %6524 = vmatpush2.bf16.msra.mxu1 %v9160_v31 }
  0xcd   :  { %v502_v33 = vld [vmem:[#allocation2 + $0xb40] sm:$0xff]  ;;  %v9153_v36 = vcombine.high %v638_v26, %v642_v54  ;;  %6484 = vmatprep.subr.bf16.mxu0 %v9025_v32  ;;  %v9152_v39 = vcombine.low %v638_v26, %v642_v54 }
  0xce   :  { %v506_v34 = vld [vmem:[#allocation2 + $0xb60] sm:$0xff]  ;;  %6485 = vmatpush2.bf16.msra.mxu0 %v9024_v38 }
  0xcf   :  { %v630_v35 = vld [vmem:[#allocation2 + $0xf40] sm:$0xff]  ;;  %v9017_v40 = vcombine.high %v502_v33, %v506_v34  ;;  %6525 = vmatprep.subr.bf16.mxu1 %v9153_v36  ;;  %v9016_v46 = vcombine.low %v502_v33, %v506_v34 }
  0xd0   :  { %v634_v37 = vld [vmem:[#allocation2 + $0xf60] sm:$0xff]  ;;  %6526 = vmatpush2.bf16.msra.mxu1 %v9152_v39  ;;  %v10341_v39 = vcombine.low %v10311_v19, %v10311_v19 }
  0xd1   :  { %v494_v41 = vld [vmem:[#allocation2 + $0xb00] sm:$0xff]  ;;  %v9145_v44 = vcombine.high %v630_v35, %v634_v37  ;;  %6486 = vmatprep.subr.bf16.mxu0 %v9017_v40  ;;  %v9144_v47 = vcombine.low %v630_v35, %v634_v37  ;;  %v10345_v40 = vcombine.low %v10320_v22, %v10320_v22 }
  0xd2   :  { %v498_v42 = vld [vmem:[#allocation2 + $0xb20] sm:$0xff]  ;;  %6487 = vmatpush2.bf16.msra.mxu0 %v9016_v46 }
  0xd3   :  { %v622_v43 = vld [vmem:[#allocation2 + $0xf00] sm:$0xff]  ;;  %v9009_v48 = vcombine.high %v494_v41, %v498_v42  ;;  %6527 = vmatprep.subr.bf16.mxu1 %v9145_v44  ;;  %v9008_v56 = vcombine.low %v494_v41, %v498_v42  ;;  %v10350_v42 = vld [vmem:[%s10563_s0 + $0x28] sm:$0xff] }
  0xd4   :  { %v626_v45 = vld [vmem:[#allocation2 + $0xf20] sm:$0xff]  ;;  %6528 = vmatpush2.bf16.msra.mxu1 %v9144_v47 }
  0xd5   :  { %v486_v49 = vld [vmem:[#allocation2 + $0xac0] sm:$0xff]  ;;  %v9137_v52 = vcombine.high %v622_v43, %v626_v45  ;;  %6488 = vmatprep.subr.bf16.mxu0 %v9009_v48  ;;  %v9136_v57 = vcombine.low %v622_v43, %v626_v45 }
  0xd6   :  { %v490_v50 = vld [vmem:[#allocation2 + $0xae0] sm:$0xff]  ;;  %6489 = vmatpush2.bf16.msra.mxu0 %v9008_v56 }
  0xd7   :  { %v614_v51 = vld [vmem:[#allocation2 + $0xec0] sm:$0xff]  ;;  %v9001_v60 = vcombine.high %v486_v49, %v490_v50  ;;  %6529 = vmatprep.subr.bf16.mxu1 %v9137_v52  ;;  %v9000_v2 = vcombine.low %v486_v49, %v490_v50  ;;  %v10359_v49 = vcombine.high %v10350_v42, %v10350_v42 }
  0xd8   :  { %v618_v55 = vld [vmem:[#allocation2 + $0xee0] sm:$0xff]  ;;  %6530 = vmatpush2.bf16.msra.mxu1 %v9136_v57 }
  0xd9   :  { %v478_v61 = vld [vmem:[#allocation2 + $0xa80] sm:$0xff]  ;;  %v9129_v0 = vcombine.high %v614_v51, %v618_v55  ;;  %6490 = vmatprep.subr.bf16.mxu0 %v9001_v60  ;;  %v9128_v3 = vcombine.low %v614_v51, %v618_v55 }
  0xda   :  { %v482_v62 = vld [vmem:[#allocation2 + $0xaa0] sm:$0xff]  ;;  %6491 = vmatpush2.bf16.msra.mxu0 %v9000_v2 }
  0xdb   :  { %v606_v63 = vld [vmem:[#allocation2 + $0xe80] sm:$0xff]  ;;  %v8993_v4 = vcombine.high %v478_v61, %v482_v62  ;;  %6531 = vmatprep.subr.bf16.mxu1 %v9129_v0  ;;  %v8992_v10 = vcombine.low %v478_v61, %v482_v62 }
  0xdc   :  { %v610_v1 = vld [vmem:[#allocation2 + $0xea0] sm:$0xff]  ;;  %6532 = vmatpush2.bf16.msra.mxu1 %v9128_v3 }
  0xdd   :  { %v470_v5 = vld [vmem:[#allocation2 + $0xa40] sm:$0xff]  ;;  %v9121_v8 = vcombine.high %v606_v63, %v610_v1  ;;  %6492 = vmatprep.subr.bf16.mxu0 %v8993_v4  ;;  %v9120_v11 = vcombine.low %v606_v63, %v610_v1 }
  0xde   :  { %v474_v6 = vld [vmem:[#allocation2 + $0xa60] sm:$0xff]  ;;  %6493 = vmatpush2.bf16.msra.mxu0 %v8992_v10 }
  0xdf   :  { %v598_v7 = vld [vmem:[#allocation2 + $0xe40] sm:$0xff]  ;;  %v8985_v12 = vcombine.high %v470_v5, %v474_v6  ;;  %6533 = vmatprep.subr.bf16.mxu1 %v9121_v8  ;;  %v8984_v21 = vcombine.low %v470_v5, %v474_v6 }
  0xe0   :  { %v602_v9 = vld [vmem:[#allocation2 + $0xe60] sm:$0xff]  ;;  %6534 = vmatpush2.bf16.msra.mxu1 %v9120_v11 }
  0xe1   :  { %v462_v13 = vld [vmem:[#allocation2 + $0xa00] sm:$0xff]  ;;  %v9113_v17 = vcombine.high %v598_v7, %v602_v9  ;;  %6494 = vmatprep.subr.bf16.mxu0 %v8985_v12  ;;  %v9112_v53 = vcombine.low %v598_v7, %v602_v9 }
  0xe2   :  { %v466_v14 = vld [vmem:[#allocation2 + $0xa20] sm:$0xff]  ;;  %6495 = vmatpush2.bf16.msra.mxu0 %v8984_v21 }
  0xe3   :  { %v590_v15 = vld [vmem:[#allocation2 + $0xe00] sm:$0xff]  ;;  %v8977_v23 = vcombine.high %v462_v13, %v466_v14  ;;  %6535 = vmatprep.subr.bf16.mxu1 %v9113_v17  ;;  %v8976_v30 = vcombine.low %v462_v13, %v466_v14 }
  0xe4   :  { %v594_v18 = vld [vmem:[#allocation2 + $0xe20] sm:$0xff]  ;;  %6536 = vmatpush2.bf16.msra.mxu1 %v9112_v53 }
  0xe5   :  { %v710_v24 = vld [vmem:[#allocation2 + $0x11c0] sm:$0xff]  ;;  %v9105_v27 = vcombine.high %v590_v15, %v594_v18  ;;  %6496 = vmatprep.subr.bf16.mxu0 %v8977_v23  ;;  %v9104_v32 = vcombine.low %v590_v15, %v594_v18 }
  0xe6   :  { %v714_v25 = vld [vmem:[#allocation2 + $0x11e0] sm:$0xff]  ;;  %6497 = vmatpush2.bf16.msra.mxu0 %v8976_v30 }
  0xe7   :  { %v838_v26 = vld [vmem:[#allocation2 + $0x15c0] sm:$0xff]  ;;  %v9225_v33 = vcombine.high %v710_v24, %v714_v25  ;;  %6537 = vmatprep.subr.bf16.mxu1 %v9105_v27  ;;  %v9224_v41 = vcombine.low %v710_v24, %v714_v25 }
  0xe8   :  { %v842_v54 = vld [vmem:[#allocation2 + $0x15e0] sm:$0xff]  ;;  %6538 = vmatpush2.bf16.msra.mxu1 %v9104_v32 }
  0xe9   :  { %v702_v31 = vld [vmem:[#allocation2 + $0x1180] sm:$0xff]  ;;  %v9353_v37 = vcombine.high %v838_v26, %v842_v54  ;;  %6548 = vmatprep.subr.bf16.mxu0 %v9225_v33  ;;  %v9352_v43 = vcombine.low %v838_v26, %v842_v54  ;;  %6499 = vmatmul.mubr.bf16.vlgmr.msra.gmra.mxu0 %v10341_v39 }
  0xea   :  { %v706_v34 = vld [vmem:[#allocation2 + $0x11a0] sm:$0xff]  ;;  %6549 = vmatpush1.bf16.msra.mxu0 %v9224_v41 }
  0xeb   :  { %v830_v35 = vld [vmem:[#allocation2 + $0x1580] sm:$0xff]  ;;  %v9217_v44 = vcombine.high %v702_v31, %v706_v34  ;;  %6589 = vmatprep.subr.bf16.mxu1 %v9353_v37  ;;  %6540 = vmatmul.mubr.bf16.vlgmr.msra.gmra.mxu1 %v10345_v40  ;;  %v9216_v50 = vcombine.low %v702_v31, %v706_v34 }
  0xec   :  { %v834_v36 = vld [vmem:[#allocation2 + $0x15a0] sm:$0xff]  ;;  %6590 = vmatpush1.bf16.msra.mxu1 %v9352_v43  ;;  %6621 = vmatprep.mubr.bf16.mxu1 %v10359_v49 }
  0xed   :  { %v10337_v38 = vld [vmem:[%s10563_s0 + $0x20] sm:$0xff]  ;;  %v9345_v46 = vcombine.high %v830_v35, %v834_v36  ;;  %6550 = vmatprep.subr.bf16.mxu0 %v9217_v44  ;;  %v9344_v51 = vcombine.low %v830_v35, %v834_v36 }
  0xee   :  { %v694_v45 = vld [vmem:[#allocation2 + $0x1140] sm:$0xff]  ;;  %v10354_v48 = vcombine.high %v10337_v38, %v10337_v38  ;;  %6551 = vmatpush1.bf16.msra.mxu0 %v9216_v50 }
  0xef   :  { %v698_v19 = vld [vmem:[#allocation2 + $0x1160] sm:$0xff]  ;;  %6591 = vmatprep.subr.bf16.mxu1 %v9345_v46 }
  0xf0   :  { %v822_v47 = vld [vmem:[#allocation2 + $0x1540] sm:$0xff]  ;;  %v9209_v52 = vcombine.high %v694_v45, %v698_v19  ;;  %6580 = vmatprep.mubr.bf16.mxu0 %v10354_v48  ;;  %v9208_v62 = vcombine.low %v694_v45, %v698_v19  ;;  %6592 = vmatpush1.bf16.msra.mxu1 %v9344_v51 }
  0xf1   :  { %v826_v22 = vld [vmem:[#allocation2 + $0x1560] sm:$0xff] }
  0xf2   :  { %v686_v55 = vld [vmem:[#allocation2 + $0x1100] sm:$0xff]  ;;  %v9337_v60 = vcombine.high %v822_v47, %v826_v22  ;;  %6552 = vmatprep.subr.bf16.mxu0 %v9209_v52  ;;  %v9336_v63 = vcombine.low %v822_v47, %v826_v22 }
  0xf3   :  { %v690_v56 = vld [vmem:[#allocation2 + $0x1120] sm:$0xff]  ;;  %6553 = vmatpush1.bf16.msra.mxu0 %v9208_v62 }
  0xf4   :  { %v814_v57 = vld [vmem:[#allocation2 + $0x1500] sm:$0xff]  ;;  %v9201_v0 = vcombine.high %v686_v55, %v690_v56  ;;  %6593 = vmatprep.subr.bf16.mxu1 %v9337_v60  ;;  %v9200_v6 = vcombine.low %v686_v55, %v690_v56 }
  0xf5   :  { %v818_v61 = vld [vmem:[#allocation2 + $0x1520] sm:$0xff]  ;;  %6594 = vmatpush1.bf16.msra.mxu1 %v9336_v63 }
  0xf6   :  { %v678_v1 = vld [vmem:[#allocation2 + $0x10c0] sm:$0xff]  ;;  %v9329_v4 = vcombine.high %v814_v57, %v818_v61  ;;  %6554 = vmatprep.subr.bf16.mxu0 %v9201_v0  ;;  %v9328_v7 = vcombine.low %v814_v57, %v818_v61 }
  0xf7   :  { %v682_v2 = vld [vmem:[#allocation2 + $0x10e0] sm:$0xff]  ;;  %6555 = vmatpush1.bf16.msra.mxu0 %v9200_v6 }
  0xf8   :  { %v806_v3 = vld [vmem:[#allocation2 + $0x14c0] sm:$0xff]  ;;  %v9193_v8 = vcombine.high %v678_v1, %v682_v2  ;;  %6595 = vmatprep.subr.bf16.mxu1 %v9329_v4  ;;  %v9192_v14 = vcombine.low %v678_v1, %v682_v2 }
  0xf9   :  { %v810_v5 = vld [vmem:[#allocation2 + $0x14e0] sm:$0xff]  ;;  %6596 = vmatpush1.bf16.msra.mxu1 %v9328_v7 }
  0xfa   :  { %v670_v9 = vld [vmem:[#allocation2 + $0x1080] sm:$0xff]  ;;  %v9321_v12 = vcombine.high %v806_v3, %v810_v5  ;;  %6556 = vmatprep.subr.bf16.mxu0 %v9193_v8  ;;  %v9320_v15 = vcombine.low %v806_v3, %v810_v5 }
  0xfb   :  { %v674_v10 = vld [vmem:[#allocation2 + $0x10a0] sm:$0xff]  ;;  %6557 = vmatpush1.bf16.msra.mxu0 %v9192_v14 }
  0xfc   :  { %v798_v11 = vld [vmem:[#allocation2 + $0x1480] sm:$0xff]  ;;  %v9185_v17 = vcombine.high %v670_v9, %v674_v10  ;;  %6597 = vmatprep.subr.bf16.mxu1 %v9321_v12  ;;  %v9184_v25 = vcombine.low %v670_v9, %v674_v10 }
  0xfd   :  { %v802_v13 = vld [vmem:[#allocation2 + $0x14a0] sm:$0xff]  ;;  %6598 = vmatpush1.bf16.msra.mxu1 %v9320_v15 }
  0xfe   :  { %v662_v18 = vld [vmem:[#allocation2 + $0x1040] sm:$0xff]  ;;  %v9313_v23 = vcombine.high %v798_v11, %v802_v13  ;;  %6558 = vmatprep.subr.bf16.mxu0 %v9185_v17  ;;  %v9312_v26 = vcombine.low %v798_v11, %v802_v13 }
  0xff   :  { %v666_v21 = vld [vmem:[#allocation2 + $0x1060] sm:$0xff]  ;;  %6559 = vmatpush1.bf16.msra.mxu0 %v9184_v25 }
 0x100   :  { %v790_v53 = vld [vmem:[#allocation2 + $0x1440] sm:$0xff]  ;;  %v9177_v27 = vcombine.high %v662_v18, %v666_v21  ;;  %6599 = vmatprep.subr.bf16.mxu1 %v9313_v23  ;;  %v9176_v34 = vcombine.low %v662_v18, %v666_v21 }
 0x101   :  { %v794_v24 = vld [vmem:[#allocation2 + $0x1460] sm:$0xff]  ;;  %6600 = vmatpush1.bf16.msra.mxu1 %v9312_v26 }
 0x102   :  { %v9305_v54 = vcombine.high %v790_v53, %v794_v24  ;;  %v654_v30 = vld [vmem:[#allocation2 + $0x1000] sm:$0xff]  ;;  %6560 = vmatprep.subr.bf16.mxu0 %v9177_v27  ;;  %v9304_v35 = vcombine.low %v790_v53, %v794_v24 }
 0x103   :  { %v658_v31 = vld [vmem:[#allocation2 + $0x1020] sm:$0xff]  ;;  %6561 = vmatpush1.bf16.msra.mxu0 %v9176_v34 }
 0x104   :  { %v782_v32 = vld [vmem:[#allocation2 + $0x1400] sm:$0xff]  ;;  %v9169_v36 = vcombine.high %v654_v30, %v658_v31  ;;  %6601 = vmatprep.subr.bf16.mxu1 %v9305_v54  ;;  %v9168_v46 = vcombine.low %v654_v30, %v658_v31 }
 0x105   :  { %v786_v33 = vld [vmem:[#allocation2 + $0x1420] sm:$0xff]  ;;  %6602 = vmatpush1.bf16.msra.mxu1 %v9304_v35 }
 0x106   :  { %v9297_v37 = vcombine.high %v782_v32, %v786_v33  ;;  %v774_v41 = vld [vmem:[#allocation2 + $0x13c0] sm:$0xff]  ;;  %6562 = vmatprep.subr.bf16.mxu0 %v9169_v36  ;;  %v9296_v19 = vcombine.low %v782_v32, %v786_v33 }
 0x107   :  { %v778_v43 = vld [vmem:[#allocation2 + $0x13e0] sm:$0xff]  ;;  %6563 = vmatpush1.bf16.msra.mxu0 %v9168_v46 }
 0x108   :  { %v902_v44 = vld [vmem:[#allocation2 + $0x17c0] sm:$0xff]  ;;  %v9289_v47 = vcombine.high %v774_v41, %v778_v43  ;;  %6603 = vmatprep.subr.bf16.mxu1 %v9297_v37  ;;  %v9288_v56 = vcombine.low %v774_v41, %v778_v43 }
 0x109   :  { %v906_v45 = vld [vmem:[#allocation2 + $0x17e0] sm:$0xff]  ;;  %6604 = vmatpush1.bf16.msra.mxu1 %v9296_v19 }
 0x10a   :  { %v9417_v22 = vcombine.high %v902_v44, %v906_v45  ;;  %v766_v50 = vld [vmem:[#allocation2 + $0x1380] sm:$0xff]  ;;  %6564 = vmatprep.subr.bf16.mxu0 %v9289_v47  ;;  %v9416_v57 = vcombine.low %v902_v44, %v906_v45 }
 0x10b   :  { %v770_v51 = vld [vmem:[#allocation2 + $0x13a0] sm:$0xff]  ;;  %6565 = vmatpush2.bf16.msra.mxu0 %v9288_v56 }
 0x10c   :  { %v894_v52 = vld [vmem:[#allocation2 + $0x1780] sm:$0xff]  ;;  %v9281_v60 = vcombine.high %v766_v50, %v770_v51  ;;  %6605 = vmatprep.subr.bf16.mxu1 %v9417_v22  ;;  %v9280_v2 = vcombine.low %v766_v50, %v770_v51 }
 0x10d   :  { %v898_v55 = vld [vmem:[#allocation2 + $0x17a0] sm:$0xff]  ;;  %6606 = vmatpush2.bf16.msra.mxu1 %v9416_v57 }
 0x10e   :  { %v9409_v61 = vcombine.high %v894_v52, %v898_v55  ;;  %v758_v62 = vld [vmem:[#allocation2 + $0x1340] sm:$0xff]  ;;  %6566 = vmatprep.subr.bf16.mxu0 %v9281_v60  ;;  %v9408_v3 = vcombine.low %v894_v52, %v898_v55 }
 0x10f   :  { %v762_v63 = vld [vmem:[#allocation2 + $0x1360] sm:$0xff]  ;;  %6567 = vmatpush2.bf16.msra.mxu0 %v9280_v2 }
 0x110   :  { %v886_v0 = vld [vmem:[#allocation2 + $0x1740] sm:$0xff]  ;;  %v9273_v4 = vcombine.high %v758_v62, %v762_v63  ;;  %6607 = vmatprep.subr.bf16.mxu1 %v9409_v61  ;;  %v9272_v10 = vcombine.low %v758_v62, %v762_v63 }
 0x111   :  { %v890_v1 = vld [vmem:[#allocation2 + $0x1760] sm:$0xff]  ;;  %6608 = vmatpush2.bf16.msra.mxu1 %v9408_v3 }
 0x112   :  { %v9401_v5 = vcombine.high %v886_v0, %v890_v1  ;;  %v750_v6 = vld [vmem:[#allocation2 + $0x1300] sm:$0xff]  ;;  %6568 = vmatprep.subr.bf16.mxu0 %v9273_v4  ;;  %v9400_v11 = vcombine.low %v886_v0, %v890_v1  ;;  %v10366_v4 = vcombine.low %v10337_v38, %v10337_v38 }
 0x113   :  { %v754_v7 = vld [vmem:[#allocation2 + $0x1320] sm:$0xff]  ;;  %6569 = vmatpush2.bf16.msra.mxu0 %v9272_v10  ;;  %v10380_v10 = vld [vmem:[%s10563_s0 + $0x38] sm:$0xff] }
 0x114   :  { %v878_v8 = vld [vmem:[#allocation2 + $0x1700] sm:$0xff]  ;;  %v9265_v12 = vcombine.high %v750_v6, %v754_v7  ;;  %6609 = vmatprep.subr.bf16.mxu1 %v9401_v5  ;;  %v9264_v21 = vcombine.low %v750_v6, %v754_v7  ;;  %v10371_v7 = vld [vmem:[%s10563_s0 + $0x30] sm:$0xff] }
 0x115   :  { %v882_v9 = vld [vmem:[#allocation2 + $0x1720] sm:$0xff]  ;;  %6610 = vmatpush2.bf16.msra.mxu1 %v9400_v11 }
 0x116   :  { %v9393_v13 = vcombine.high %v878_v8, %v882_v9  ;;  %v742_v14 = vld [vmem:[#allocation2 + $0x12c0] sm:$0xff]  ;;  %6570 = vmatprep.subr.bf16.mxu0 %v9265_v12  ;;  %v9392_v53 = vcombine.low %v878_v8, %v882_v9  ;;  %v10375_v8 = vcombine.low %v10350_v42, %v10350_v42 }
 0x117   :  { %v746_v15 = vld [vmem:[#allocation2 + $0x12e0] sm:$0xff]  ;;  %6571 = vmatpush2.bf16.msra.mxu0 %v9264_v21 }
 0x118   :  { %v870_v17 = vld [vmem:[#allocation2 + $0x16c0] sm:$0xff]  ;;  %v9257_v23 = vcombine.high %v742_v14, %v746_v15  ;;  %6611 = vmatprep.subr.bf16.mxu1 %v9393_v13  ;;  %v9256_v30 = vcombine.low %v742_v14, %v746_v15  ;;  %v10384_v15 = vcombine.high %v10371_v7, %v10371_v7 }
 0x119   :  { %v874_v18 = vld [vmem:[#allocation2 + $0x16e0] sm:$0xff]  ;;  %6612 = vmatpush2.bf16.msra.mxu1 %v9392_v53 }
 0x11a   :  { %v9385_v24 = vcombine.high %v870_v17, %v874_v18  ;;  %v734_v25 = vld [vmem:[#allocation2 + $0x1280] sm:$0xff]  ;;  %6572 = vmatprep.subr.bf16.mxu0 %v9257_v23  ;;  %v9384_v31 = vcombine.low %v870_v17, %v874_v18  ;;  %v10389_v18 = vcombine.high %v10380_v10, %v10380_v10 }
 0x11b   :  { %v738_v26 = vld [vmem:[#allocation2 + $0x12a0] sm:$0xff]  ;;  %6573 = vmatpush2.bf16.msra.mxu0 %v9256_v30 }
 0x11c   :  { %v862_v27 = vld [vmem:[#allocation2 + $0x1680] sm:$0xff]  ;;  %v9249_v32 = vcombine.high %v734_v25, %v738_v26  ;;  %6613 = vmatprep.subr.bf16.mxu1 %v9385_v24  ;;  %v9248_v41 = vcombine.low %v734_v25, %v738_v26 }
 0x11d   :  { %v866_v54 = vld [vmem:[#allocation2 + $0x16a0] sm:$0xff]  ;;  %6614 = vmatpush2.bf16.msra.mxu1 %v9384_v31 }
 0x11e   :  { %v9377_v33 = vcombine.high %v862_v27, %v866_v54  ;;  %v726_v34 = vld [vmem:[#allocation2 + $0x1240] sm:$0xff]  ;;  %6574 = vmatprep.subr.bf16.mxu0 %v9249_v32  ;;  %v9376_v43 = vcombine.low %v862_v27, %v866_v54 }
 0x11f   :  { %v730_v35 = vld [vmem:[#allocation2 + $0x1260] sm:$0xff]  ;;  %6575 = vmatpush2.bf16.msra.mxu0 %v9248_v41 }
 0x120   :  { %v854_v36 = vld [vmem:[#allocation2 + $0x1640] sm:$0xff]  ;;  %v9241_v44 = vcombine.high %v726_v34, %v730_v35  ;;  %6615 = vmatprep.subr.bf16.mxu1 %v9377_v33  ;;  %v9240_v50 = vcombine.low %v726_v34, %v730_v35 }
 0x121   :  { %v858_v37 = vld [vmem:[#allocation2 + $0x1660] sm:$0xff]  ;;  %6616 = vmatpush2.bf16.msra.mxu1 %v9376_v43 }
 0x122   :  { %v9369_v45 = vcombine.high %v854_v36, %v858_v37  ;;  %v718_v46 = vld [vmem:[#allocation2 + $0x1200] sm:$0xff]  ;;  %6576 = vmatprep.subr.bf16.mxu0 %v9241_v44  ;;  %v9368_v51 = vcombine.low %v854_v36, %v858_v37 }
 0x123   :  { %v722_v19 = vld [vmem:[#allocation2 + $0x1220] sm:$0xff]  ;;  %6577 = vmatpush2.bf16.msra.mxu0 %v9240_v50 }
 0x124   :  { %v846_v47 = vld [vmem:[#allocation2 + $0x1600] sm:$0xff]  ;;  %v9233_v52 = vcombine.high %v718_v46, %v722_v19  ;;  %6617 = vmatprep.subr.bf16.mxu1 %v9369_v45  ;;  %v9232_v62 = vcombine.low %v718_v46, %v722_v19 }
 0x125   :  { %v850_v22 = vld [vmem:[#allocation2 + $0x1620] sm:$0xff]  ;;  %6618 = vmatpush2.bf16.msra.mxu1 %v9368_v51 }
 0x126   :  { %v9361_v55 = vcombine.high %v846_v47, %v850_v22  ;;  %v966_v56 = vld [vmem:[#allocation2 + $0x19c0] sm:$0xff]  ;;  %6578 = vmatprep.subr.bf16.mxu0 %v9233_v52  ;;  %v9360_v63 = vcombine.low %v846_v47, %v850_v22 }
 0x127   :  { %v970_v57 = vld [vmem:[#allocation2 + $0x19e0] sm:$0xff]  ;;  %6579 = vmatpush2.bf16.msra.mxu0 %v9232_v62 }
 0x128   :  { %v1094_v60 = vld [vmem:[#allocation2 + $0x1dc0] sm:$0xff]  ;;  %v9481_v0 = vcombine.high %v966_v56, %v970_v57  ;;  %6619 = vmatprep.subr.bf16.mxu1 %v9361_v55  ;;  %v9480_v9 = vcombine.low %v966_v56, %v970_v57 }
 0x129   :  { %v1098_v61 = vld [vmem:[#allocation2 + $0x1de0] sm:$0xff]  ;;  %6620 = vmatpush2.bf16.msra.mxu1 %v9360_v63 }
 0x12a   :  { %v9609_v1 = vcombine.high %v1094_v60, %v1098_v61  ;;  %v958_v2 = vld [vmem:[#allocation2 + $0x1980] sm:$0xff]  ;;  %6630 = vmatprep.subr.bf16.mxu0 %v9481_v0  ;;  %v9608_v38 = vcombine.low %v1094_v60, %v1098_v61  ;;  %6581 = vmatmul.mubr.bf16.vlgmr.msra.gmra.mxu0 %v10366_v4 }
 0x12b   :  { %v962_v3 = vld [vmem:[#allocation2 + $0x19a0] sm:$0xff]  ;;  %6631 = vmatpush1.bf16.msra.mxu0 %v9480_v9  ;;  %6662 = vmatprep.mubr.bf16.mxu0 %v10384_v15 }
 0x12c   :  { %v1086_v5 = vld [vmem:[#allocation2 + $0x1d80] sm:$0xff]  ;;  %v9473_v11 = vcombine.high %v958_v2, %v962_v3  ;;  %6671 = vmatprep.subr.bf16.mxu1 %v9609_v1  ;;  %6622 = vmatmul.mubr.bf16.vlgmr.msra.gmra.mxu1 %v10375_v8  ;;  %v9472_v21 = vcombine.low %v958_v2, %v962_v3 }
 0x12d   :  { %v1090_v6 = vld [vmem:[#allocation2 + $0x1da0] sm:$0xff]  ;;  %6672 = vmatpush1.bf16.msra.mxu1 %v9608_v38  ;;  %6703 = vmatprep.mubr.bf16.mxu1 %v10389_v18 }
 0x12e   :  { %v9601_v12 = vcombine.high %v1086_v5, %v1090_v6  ;;  %v950_v13 = vld [vmem:[#allocation2 + $0x1940] sm:$0xff]  ;;  %6632 = vmatprep.subr.bf16.mxu0 %v9473_v11  ;;  %v9600_v53 = vcombine.low %v1086_v5, %v1090_v6 }
 0x12f   :  { %v954_v14 = vld [vmem:[#allocation2 + $0x1960] sm:$0xff]  ;;  %6633 = vmatpush1.bf16.msra.mxu0 %v9472_v21 }
 0x130   :  { %v1078_v42 = vld [vmem:[#allocation2 + $0x1d40] sm:$0xff]  ;;  %v9465_v23 = vcombine.high %v950_v13, %v954_v14  ;;  %6673 = vmatprep.subr.bf16.mxu1 %v9601_v12  ;;  %v9464_v30 = vcombine.low %v950_v13, %v954_v14 }
 0x131   :  { %v1082_v17 = vld [vmem:[#allocation2 + $0x1d60] sm:$0xff]  ;;  %6674 = vmatpush1.bf16.msra.mxu1 %v9600_v53 }
 0x132   :  { %v9593_v24 = vcombine.high %v1078_v42, %v1082_v17  ;;  %v942_v25 = vld [vmem:[#allocation2 + $0x1900] sm:$0xff]  ;;  %6634 = vmatprep.subr.bf16.mxu0 %v9465_v23  ;;  %v9592_v31 = vcombine.low %v1078_v42, %v1082_v17 }
 0x133   :  { %v946_v26 = vld [vmem:[#allocation2 + $0x1920] sm:$0xff]  ;;  %6635 = vmatpush1.bf16.msra.mxu0 %v9464_v30 }
 0x134   :  { %v1070_v27 = vld [vmem:[#allocation2 + $0x1d00] sm:$0xff]  ;;  %v9457_v32 = vcombine.high %v942_v25, %v946_v26  ;;  %6675 = vmatprep.subr.bf16.mxu1 %v9593_v24  ;;  %v9456_v41 = vcombine.low %v942_v25, %v946_v26 }
 0x135   :  { %v1074_v54 = vld [vmem:[#allocation2 + $0x1d20] sm:$0xff]  ;;  %6676 = vmatpush1.bf16.msra.mxu1 %v9592_v31 }
 0x136   :  { %v9585_v33 = vcombine.high %v1070_v27, %v1074_v54  ;;  %v934_v34 = vld [vmem:[#allocation2 + $0x18c0] sm:$0xff]  ;;  %6636 = vmatprep.subr.bf16.mxu0 %v9457_v32  ;;  %v9584_v43 = vcombine.low %v1070_v27, %v1074_v54 }
 0x137   :  { %v938_v35 = vld [vmem:[#allocation2 + $0x18e0] sm:$0xff]  ;;  %6637 = vmatpush1.bf16.msra.mxu0 %v9456_v41 }
 0x138   :  { %v1062_v36 = vld [vmem:[#allocation2 + $0x1cc0] sm:$0xff]  ;;  %v9449_v44 = vcombine.high %v934_v34, %v938_v35  ;;  %6677 = vmatprep.subr.bf16.mxu1 %v9585_v33  ;;  %v9448_v50 = vcombine.low %v934_v34, %v938_v35 }
 0x139   :  { %v1066_v37 = vld [vmem:[#allocation2 + $0x1ce0] sm:$0xff]  ;;  %6678 = vmatpush1.bf16.msra.mxu1 %v9584_v43 }
 0x13a   :  { %v9577_v45 = vcombine.high %v1062_v36, %v1066_v37  ;;  %v926_v46 = vld [vmem:[#allocation2 + $0x1880] sm:$0xff]  ;;  %6638 = vmatprep.subr.bf16.mxu0 %v9449_v44  ;;  %v9576_v51 = vcombine.low %v1062_v36, %v1066_v37 }
 0x13b   :  { %v930_v19 = vld [vmem:[#allocation2 + $0x18a0] sm:$0xff]  ;;  %6639 = vmatpush1.bf16.msra.mxu0 %v9448_v50 }
 0x13c   :  { %v1054_v47 = vld [vmem:[#allocation2 + $0x1c80] sm:$0xff]  ;;  %v9441_v52 = vcombine.high %v926_v46, %v930_v19  ;;  %6679 = vmatprep.subr.bf16.mxu1 %v9577_v45  ;;  %v9440_v62 = vcombine.low %v926_v46, %v930_v19 }
 0x13d   :  { %v1058_v22 = vld [vmem:[#allocation2 + $0x1ca0] sm:$0xff]  ;;  %6680 = vmatpush1.bf16.msra.mxu1 %v9576_v51 }
 0x13e   :  { %v9569_v55 = vcombine.high %v1054_v47, %v1058_v22  ;;  %v918_v56 = vld [vmem:[#allocation2 + $0x1840] sm:$0xff]  ;;  %6640 = vmatprep.subr.bf16.mxu0 %v9441_v52  ;;  %v9568_v63 = vcombine.low %v1054_v47, %v1058_v22 }
 0x13f   :  { %v922_v57 = vld [vmem:[#allocation2 + $0x1860] sm:$0xff]  ;;  %6641 = vmatpush1.bf16.msra.mxu0 %v9440_v62 }
 0x140   :  { %v1046_v60 = vld [vmem:[#allocation2 + $0x1c40] sm:$0xff]  ;;  %v9433_v0 = vcombine.high %v918_v56, %v922_v57  ;;  %6681 = vmatprep.subr.bf16.mxu1 %v9569_v55  ;;  %v9432_v9 = vcombine.low %v918_v56, %v922_v57 }
 0x141   :  { %v1050_v61 = vld [vmem:[#allocation2 + $0x1c60] sm:$0xff]  ;;  %6682 = vmatpush1.bf16.msra.mxu1 %v9568_v63 }
 0x142   :  { %v9561_v1 = vcombine.high %v1046_v60, %v1050_v61  ;;  %v910_v2 = vld [vmem:[#allocation2 + $0x1800] sm:$0xff]  ;;  %6642 = vmatprep.subr.bf16.mxu0 %v9433_v0  ;;  %v9560_v38 = vcombine.low %v1046_v60, %v1050_v61 }
 0x143   :  { %v914_v3 = vld [vmem:[#allocation2 + $0x1820] sm:$0xff]  ;;  %6643 = vmatpush1.bf16.msra.mxu0 %v9432_v9 }
 0x144   :  { %v1038_v5 = vld [vmem:[#allocation2 + $0x1c00] sm:$0xff]  ;;  %v9425_v11 = vcombine.high %v910_v2, %v914_v3  ;;  %6683 = vmatprep.subr.bf16.mxu1 %v9561_v1  ;;  %v9424_v21 = vcombine.low %v910_v2, %v914_v3 }
 0x145   :  { %v1042_v6 = vld [vmem:[#allocation2 + $0x1c20] sm:$0xff]  ;;  %6684 = vmatpush1.bf16.msra.mxu1 %v9560_v38 }
 0x146   :  { %v9553_v12 = vcombine.high %v1038_v5, %v1042_v6  ;;  %v1030_v13 = vld [vmem:[#allocation2 + $0x1bc0] sm:$0xff]  ;;  %6644 = vmatprep.subr.bf16.mxu0 %v9425_v11  ;;  %v9552_v53 = vcombine.low %v1038_v5, %v1042_v6 }
 0x147   :  { %v1034_v14 = vld [vmem:[#allocation2 + $0x1be0] sm:$0xff]  ;;  %6645 = vmatpush1.bf16.msra.mxu0 %v9424_v21 }
 0x148   :  { %v1158_v42 = vld [vmem:[#allocation2 + $0x1fc0] sm:$0xff]  ;;  %v9545_v23 = vcombine.high %v1030_v13, %v1034_v14  ;;  %6685 = vmatprep.subr.bf16.mxu1 %v9553_v12  ;;  %v9544_v30 = vcombine.low %v1030_v13, %v1034_v14 }
 0x149   :  { %v1162_v17 = vld [vmem:[#allocation2 + $0x1fe0] sm:$0xff]  ;;  %6686 = vmatpush1.bf16.msra.mxu1 %v9552_v53  ;;  %v1168_v53 = vlaneseq }
 0x14a   :  { %v9673_v24 = vcombine.high %v1158_v42, %v1162_v17  ;;  %v1022_v25 = vld [vmem:[#allocation2 + $0x1b80] sm:$0xff]  ;;  %6646 = vmatprep.subr.bf16.mxu0 %v9545_v23  ;;  %v9672_v31 = vcombine.low %v1158_v42, %v1162_v17 }
 0x14b   :  { %v1026_v26 = vld [vmem:[#allocation2 + $0x1ba0] sm:$0xff]  ;;  %6647 = vmatpush2.bf16.msra.mxu0 %v9544_v30 }
 0x14c   :  { %v1150_v27 = vld [vmem:[#allocation2 + $0x1f80] sm:$0xff]  ;;  %v9537_v32 = vcombine.high %v1022_v25, %v1026_v26  ;;  %6687 = vmatprep.subr.bf16.mxu1 %v9673_v24  ;;  %v9536_v41 = vcombine.low %v1022_v25, %v1026_v26 }
 0x14d   :  { %v1154_v54 = vld [vmem:[#allocation2 + $0x1fa0] sm:$0xff]  ;;  %6688 = vmatpush2.bf16.msra.mxu1 %v9672_v31 }
 0x14e   :  { %v9665_v33 = vcombine.high %v1150_v27, %v1154_v54  ;;  %v1014_v34 = vld [vmem:[#allocation2 + $0x1b40] sm:$0xff]  ;;  %6648 = vmatprep.subr.bf16.mxu0 %v9537_v32  ;;  %v9664_v43 = vcombine.low %v1150_v27, %v1154_v54  ;;  %v10395_v32 = vshrl.u32 %v1168_v53, 7 }
 0x14f   :  { %v1018_v35 = vld [vmem:[#allocation2 + $0x1b60] sm:$0xff]  ;;  %6649 = vmatpush2.bf16.msra.mxu0 %v9536_v41  ;;  %v327_v41 = vld [vmem:[#allocation2 + $0x5c8] sm:$0xff] }
 0x150   :  { %v1142_v36 = vld [vmem:[#allocation2 + $0x1f40] sm:$0xff]  ;;  %v9529_v44 = vcombine.high %v1014_v34, %v1018_v35  ;;  %6689 = vmatprep.subr.bf16.mxu1 %v9665_v33  ;;  %v9528_v50 = vcombine.low %v1014_v34, %v1018_v35 }
 0x151   :  { %v1146_v37 = vld [vmem:[#allocation2 + $0x1f60] sm:$0xff]  ;;  %6690 = vmatpush2.bf16.msra.mxu1 %v9664_v43  ;;  %v331_v43 = vld [vmem:[#allocation2 + $0x5e8] sm:$0xff] }
 0x152   :  { %v9657_v45 = vcombine.high %v1142_v36, %v1146_v37  ;;  %v1006_v46 = vld [vmem:[#allocation2 + $0x1b00] sm:$0xff]  ;;  %6650 = vmatprep.subr.bf16.mxu0 %v9529_v44  ;;  %v9656_v51 = vcombine.low %v1142_v36, %v1146_v37  ;;  %v199_v36 = vld [vmem:[#allocation2 + $0x1c8] sm:$0xff] }
 0x153   :  { %v1010_v19 = vld [vmem:[#allocation2 + $0x1b20] sm:$0xff]  ;;  %6651 = vmatpush2.bf16.msra.mxu0 %v9528_v50  ;;  %v203_v37 = vld [vmem:[#allocation2 + $0x1e8] sm:$0xff]  ;;  %v1174_v50 = vsub.s32 1, %v10395_v32 }
 0x154   :  { %v1134_v47 = vld [vmem:[#allocation2 + $0x1f00] sm:$0xff]  ;;  %v9521_v52 = vcombine.high %v1006_v46, %v1010_v19  ;;  %6691 = vmatprep.subr.bf16.mxu1 %v9657_v45  ;;  %v9520_v62 = vcombine.low %v1006_v46, %v1010_v19  ;;  %v1170_v45 = vsub.s32 0, %v10395_v32 }
 0x155   :  { %v1138_v22 = vld [vmem:[#allocation2 + $0x1f20] sm:$0xff]  ;;  %6692 = vmatpush2.bf16.msra.mxu1 %v9656_v51  ;;  %v191_v51 = vld [vmem:[#allocation2 + $0x188] sm:$0xff] }
 0x156   :  { %v9649_v55 = vcombine.high %v1134_v47, %v1138_v22  ;;  %v998_v56 = vld [vmem:[#allocation2 + $0x1ac0] sm:$0xff]  ;;  %6652 = vmatprep.subr.bf16.mxu0 %v9521_v52  ;;  %v9648_v63 = vcombine.low %v1134_v47, %v1138_v22  ;;  %v8715_v47 = vcombine.high %v199_v36, %v203_v37  ;;  %v8843_v22 = vcombine.high %v327_v41, %v331_v43  ;;  %v195_v52 = vld [vmem:[#allocation2 + $0x1a8] sm:$0xff] }
 0x157   :  { %v1002_v57 = vld [vmem:[#allocation2 + $0x1ae0] sm:$0xff]  ;;  %6653 = vmatpush2.bf16.msra.mxu0 %v9520_v62  ;;  %v8714_v62 = vcombine.low %v199_v36, %v203_v37 }
 0x158   :  { %v1126_v60 = vld [vmem:[#allocation2 + $0x1ec0] sm:$0xff]  ;;  %v9513_v0 = vcombine.high %v998_v56, %v1002_v57  ;;  %6693 = vmatprep.subr.bf16.mxu1 %v9649_v55  ;;  %v9512_v9 = vcombine.low %v998_v56, %v1002_v57  ;;  %v10401_v55 = vcombine.low %v10371_v7, %v10371_v7  ;;  %v319_v56 = vld [vmem:[#allocation2 + $0x588] sm:$0xff] }
 0x159   :  { %v1130_v61 = vld [vmem:[#allocation2 + $0x1ee0] sm:$0xff]  ;;  %6694 = vmatpush2.bf16.msra.mxu1 %v9648_v63  ;;  %v323_v57 = vld [vmem:[#allocation2 + $0x5a8] sm:$0xff]  ;;  %v8842_v63 = vcombine.low %v327_v41, %v331_v43 }
 0x15a   :  { %v9641_v1 = vcombine.high %v1126_v60, %v1130_v61  ;;  %v990_v2 = vld [vmem:[#allocation2 + $0x1a80] sm:$0xff]  ;;  %6654 = vmatprep.subr.bf16.mxu0 %v9513_v0  ;;  %v9640_v38 = vcombine.low %v1126_v60, %v1130_v61  ;;  %v10405_v61 = vcombine.low %v10380_v10, %v10380_v10  ;;  %v8707_v0 = vcombine.high %v191_v51, %v195_v52  ;;  %v167_v43 = vld [vmem:[#allocation2 + $0xc8] sm:$0xff] }
 0x15b   :  { %v994_v3 = vld [vmem:[#allocation2 + $0x1aa0] sm:$0xff]  ;;  %6655 = vmatpush2.bf16.msra.mxu0 %v9512_v9  ;;  %v315_v9 = vld [vmem:[#allocation2 + $0x568] sm:$0xff]  ;;  %v8706_v10 = vcombine.low %v191_v51, %v195_v52 }
 0x15c   :  { %v1118_v5 = vld [vmem:[#allocation2 + $0x1e80] sm:$0xff]  ;;  %v9505_v11 = vcombine.high %v990_v2, %v994_v3  ;;  %6695 = vmatprep.subr.bf16.mxu1 %v9641_v1  ;;  %v9504_v21 = vcombine.low %v990_v2, %v994_v3  ;;  %v8835_v2 = vcombine.high %v319_v56, %v323_v57  ;;  %v183_v3 = vld [vmem:[#allocation2 + $0x148] sm:$0xff] }
 0x15d   :  { %v1122_v6 = vld [vmem:[#allocation2 + $0x1ea0] sm:$0xff]  ;;  %6696 = vmatpush2.bf16.msra.mxu1 %v9640_v38  ;;  %v159_v51 = vld [vmem:[#allocation2 + $0x88] sm:$0xff] }
 0x15e   :  { %v9633_v12 = vcombine.high %v1118_v5, %v1122_v6  ;;  %v982_v13 = vld [vmem:[#allocation2 + $0x1a40] sm:$0xff]  ;;  %6656 = vmatprep.subr.bf16.mxu0 %v9505_v11  ;;  %v9632_v23 = vcombine.low %v1118_v5, %v1122_v6  ;;  %v187_v5 = vld [vmem:[#allocation2 + $0x168] sm:$0xff] }
 0x15f   :  { %v986_v14 = vld [vmem:[#allocation2 + $0x1a60] sm:$0xff]  ;;  %6657 = vmatpush2.bf16.msra.mxu0 %v9504_v21  ;;  %v311_v6 = vld [vmem:[#allocation2 + $0x548] sm:$0xff] }
 0x160   :  { %v1110_v42 = vld [vmem:[#allocation2 + $0x1e40] sm:$0xff]  ;;  %v9497_v24 = vcombine.high %v982_v13, %v986_v14  ;;  %6697 = vmatprep.subr.bf16.mxu1 %v9633_v12  ;;  %v9496_v31 = vcombine.low %v982_v13, %v986_v14  ;;  %v8834_v13 = vcombine.low %v319_v56, %v323_v57  ;;  %v8699_v14 = vcombine.high %v183_v3, %v187_v5  ;;  %v163_v52 = vld [vmem:[#allocation2 + $0xa8] sm:$0xff] }
 0x161   :  { %v1114_v17 = vld [vmem:[#allocation2 + $0x1e60] sm:$0xff]  ;;  %6698 = vmatpush2.bf16.msra.mxu1 %v9632_v23  ;;  %v8827_v23 = vcombine.high %v311_v6, %v315_v9  ;;  %v287_v56 = vld [vmem:[#allocation2 + $0x488] sm:$0xff] }
 0x162   :  { %v9625_v25 = vcombine.high %v1110_v42, %v1114_v17  ;;  %v974_v26 = vld [vmem:[#allocation2 + $0x1a00] sm:$0xff]  ;;  %6658 = vmatprep.subr.bf16.mxu0 %v9497_v24  ;;  %v9624_v33 = vcombine.low %v1110_v42, %v1114_v17  ;;  %v175_v24 = vld [vmem:[#allocation2 + $0x108] sm:$0xff] }
 0x163   :  { %v978_v27 = vld [vmem:[#allocation2 + $0x1a20] sm:$0xff]  ;;  %6659 = vmatpush2.bf16.msra.mxu0 %v9496_v31  ;;  %v291_v57 = vld [vmem:[#allocation2 + $0x4a8] sm:$0xff] }
 0x164   :  { %v1102_v54 = vld [vmem:[#allocation2 + $0x1e00] sm:$0xff]  ;;  %v9489_v34 = vcombine.high %v974_v26, %v978_v27  ;;  %6699 = vmatprep.subr.bf16.mxu1 %v9625_v25  ;;  %v9488_v44 = vcombine.low %v974_v26, %v978_v27  ;;  %v179_v25 = vld [vmem:[#allocation2 + $0x128] sm:$0xff] }
 0x165   :  { %v1106_v30 = vld [vmem:[#allocation2 + $0x1e20] sm:$0xff]  ;;  %6700 = vmatpush2.bf16.msra.mxu1 %v9624_v33  ;;  %v303_v27 = vld [vmem:[#allocation2 + $0x508] sm:$0xff]  ;;  %v8698_v33 = vcombine.low %v183_v3, %v187_v5  ;;  %v8691_v36 = vcombine.high %v175_v24, %v179_v25 }
 0x166   :  { %v9617_v35 = vcombine.high %v1102_v54, %v1106_v30  ;;  %6660 = vmatprep.subr.bf16.mxu0 %v9489_v34  ;;  %v9616_v46 = vcombine.low %v1102_v54, %v1106_v30  ;;  %v1166_v19 = vld [vmem:[#allocation4] sm:$0xff]  ;;  %v307_v54 = vld [vmem:[#allocation2 + $0x528] sm:$0xff] }
 0x167   :  { %6661 = vmatpush2.bf16.msra.mxu0 %v9488_v44  ;;  %v1171_v60 = vrot.slane %v1166_v19, %v1170_v45  ;;  %v1175_v1 = vrot.slane %v1166_v19, %v1174_v50  ;;  %v8819_v41 = vcombine.high %v303_v27, %v307_v54  ;;  %v171_v44 = vld [vmem:[#allocation2 + $0xe8] sm:$0xff]  ;;  %v8690_v19 = vcombine.low %v175_v24, %v179_v25 }
 0x168   :  { %6701 = vmatprep.subr.bf16.mxu1 %v9617_v35  ;;  %6712 = vmatprep.subr.bf16.mxu0 %v8715_v47  ;;  %v8826_v35 = vcombine.low %v311_v6, %v315_v9  ;;  %v295_v45 = vld [vmem:[#allocation2 + $0x4c8] sm:$0xff]  ;;  %v8818_v47 = vcombine.low %v303_v27, %v307_v54  ;;  %v8802_v6 = vcombine.low %v287_v56, %v291_v57 }
 0x169   :  { %6702 = vmatpush2.bf16.msra.mxu1 %v9616_v46  ;;  %v6418_v7 = vpop.f32.mrf.mxu0  ;;  %v299_v46 = vld [vmem:[#allocation2 + $0x4e8] sm:$0xff] }
 0x16a   :  { %6753 = vmatprep.subr.bf16.mxu1 %v8843_v22  ;;  %6663 = vmatmul.mubr.bf16.vlgmr.msra.gmra.mxu0 %v10401_v55  ;;  %v6419_v38 = vadd.f32 %v6418_v7, %v1171_v60  ;;  %v8683_v22 = vcombine.high %v167_v43, %v171_v44  ;;  %v8811_v50 = vcombine.high %v295_v45, %v299_v46  ;;  %v279_v3 = vld [vmem:[#allocation2 + $0x448] sm:$0xff] }
 0x16b   :  { %v6459_v11 = vpop.f32.mrf.mxu1  ;;  %6713 = vmatpush1.bf16.msra.mxu0 %v8714_v62  ;;  %v6420_v12 = vpop.f32.mrf.mxu0  ;;  %6744 = vmatprep.mubr.bf16.mxu0 %v10296_v58  ;;  %v8682_v60 = vcombine.low %v167_v43, %v171_v44  ;;  %v8810_v62 = vcombine.low %v295_v45, %v299_v46  ;;  %v283_v5 = vld [vmem:[#allocation2 + $0x468] sm:$0xff]  ;;  %v8674_v7 = vcombine.low %v159_v51, %v163_v52 }
 0x16c   :  { %6704 = vmatmul.mubr.bf16.vlgmr.msra.gmra.mxu1 %v10405_v61  ;;  %6714 = vmatprep.subr.bf16.mxu0 %v8707_v0  ;;  %v10409_v42 = vadd.f32 %v6459_v11, %v6419_v38  ;;  %v6421_v17 = vadd.f32 %v6420_v12, %v1175_v1  ;;  %v8803_v0 = vcombine.high %v287_v56, %v291_v57  ;;  %v151_v1 = vld [vmem:[#allocation2 + $0x48] sm:$0xff] }
 0x16d   :  { %6754 = vmatpush1.bf16.msra.mxu1 %v8842_v63  ;;  %v6461_v21 = vpop.f32.mrf.mxu1  ;;  %v6422_v26 = vpop.f32.mrf.mxu0  ;;  %6785 = vmatprep.mubr.bf16.mxu1 %v10300_v59  ;;  %v8675_v63 = vcombine.high %v159_v51, %v163_v52  ;;  %v8795_v38 = vcombine.high %v279_v3, %v283_v5  ;;  %v143_v11 = vld [vmem:[#allocation2 + $0x8] sm:$0xff] }
 0x16e   :  { %6755 = vmatprep.subr.bf16.mxu1 %v8835_v2  ;;  %v10413_v30 = vadd.f32 %v6461_v21, %v6421_v17  ;;  %v155_v2 = vld [vmem:[#allocation2 + $0x68] sm:$0xff]  ;;  %v8794_v17 = vcombine.low %v279_v3, %v283_v5 }
 0x16f   :  { %v6463_v31 = vpop.f32.mrf.mxu1  ;;  %6715 = vmatpush1.bf16.msra.mxu0 %v8706_v10  ;;  %v6423_v34 = vpop.f32.mrf.mxu0  ;;  %v8667_v9 = vcombine.high %v151_v1, %v155_v2  ;;  %v147_v10 = vld [vmem:[#allocation2 + $0x28] sm:$0xff] }
 0x170   :  { %6716 = vmatprep.subr.bf16.mxu0 %v8699_v14  ;;  %v271_v12 = vld [vmem:[#allocation2 + $0x408] sm:$0xff]  ;;  %v8666_v14 = vcombine.low %v151_v1, %v155_v2  ;;  %v8659_v21 = vcombine.high %v143_v11, %v147_v10  ;;  %v8658_v54 = vcombine.low %v143_v11, %v147_v10 }
 0x171   :  { %6756 = vmatpush1.bf16.msra.mxu1 %v8834_v13  ;;  %v6464_v37 = vpop.f32.mrf.mxu1  ;;  %v275_v13 = vld [vmem:[#allocation2 + $0x428] sm:$0xff] }
 0x172   :  { %6757 = vmatprep.subr.bf16.mxu1 %v8827_v23  ;;  %v8787_v23 = vcombine.high %v271_v12, %v275_v13  ;;  %v263_v24 = vld [vmem:[#allocation2 + $0x3c8] sm:$0xff]  ;;  %v8786_v31 = vcombine.low %v271_v12, %v275_v13 }
 0x173   :  { %6717 = vmatpush1.bf16.msra.mxu0 %v8698_v33  ;;  %v267_v25 = vld [vmem:[#allocation2 + $0x3e8] sm:$0xff] }
 0x174   :  { %6718 = vmatprep.subr.bf16.mxu0 %v8691_v36  ;;  %v391_v26 = vld [vmem:[#allocation2 + $0x7c8] sm:$0xff]  ;;  %v8779_v33 = vcombine.high %v263_v24, %v267_v25  ;;  %v8778_v43 = vcombine.low %v263_v24, %v267_v25 }
 0x175   :  { %6758 = vmatpush1.bf16.msra.mxu1 %v8826_v35  ;;  %v395_v27 = vld [vmem:[#allocation2 + $0x7e8] sm:$0xff] }
 0x176   :  { %6759 = vmatprep.subr.bf16.mxu1 %v8819_v41  ;;  %v8907_v34 = vcombine.high %v391_v26, %v395_v27  ;;  %v255_v35 = vld [vmem:[#allocation2 + $0x388] sm:$0xff]  ;;  %v8906_v44 = vcombine.low %v391_v26, %v395_v27 }
 0x177   :  { %6719 = vmatpush1.bf16.msra.mxu0 %v8690_v19  ;;  %v259_v36 = vld [vmem:[#allocation2 + $0x3a8] sm:$0xff] }
 0x178   :  { %6720 = vmatprep.subr.bf16.mxu0 %v8683_v22  ;;  %v383_v37 = vld [vmem:[#allocation2 + $0x788] sm:$0xff]  ;;  %v8771_v45 = vcombine.high %v255_v35, %v259_v36  ;;  %v8770_v51 = vcombine.low %v255_v35, %v259_v36 }
 0x179   :  { %6760 = vmatpush1.bf16.msra.mxu1 %v8818_v47  ;;  %v387_v41 = vld [vmem:[#allocation2 + $0x7a8] sm:$0xff] }
 0x17a   :  { %6761 = vmatprep.subr.bf16.mxu1 %v8811_v50  ;;  %v8899_v46 = vcombine.high %v383_v37, %v387_v41  ;;  %v247_v19 = vld [vmem:[#allocation2 + $0x348] sm:$0xff]  ;;  %v8898_v52 = vcombine.low %v383_v37, %v387_v41 }
 0x17b   :  { %6721 = vmatpush1.bf16.msra.mxu0 %v8682_v60  ;;  %v251_v47 = vld [vmem:[#allocation2 + $0x368] sm:$0xff] }
 0x17c   :  { %6722 = vmatprep.subr.bf16.mxu0 %v8675_v63  ;;  %v375_v22 = vld [vmem:[#allocation2 + $0x748] sm:$0xff]  ;;  %v8763_v56 = vcombine.high %v247_v19, %v251_v47  ;;  %v8762_v1 = vcombine.low %v247_v19, %v251_v47 }
 0x17d   :  { %6762 = vmatpush1.bf16.msra.mxu1 %v8810_v62  ;;  %v379_v50 = vld [vmem:[#allocation2 + $0x768] sm:$0xff] }
 0x17e   :  { %6763 = vmatprep.subr.bf16.mxu1 %v8803_v0  ;;  %v8891_v57 = vcombine.high %v375_v22, %v379_v50  ;;  %v239_v60 = vld [vmem:[#allocation2 + $0x308] sm:$0xff]  ;;  %v8890_v2 = vcombine.low %v375_v22, %v379_v50 }
 0x17f   :  { %6723 = vmatpush1.bf16.msra.mxu0 %v8674_v7  ;;  %v243_v62 = vld [vmem:[#allocation2 + $0x328] sm:$0xff] }
 0x180   :  { %6724 = vmatprep.subr.bf16.mxu0 %v8667_v9  ;;  %v367_v63 = vld [vmem:[#allocation2 + $0x708] sm:$0xff]  ;;  %v8755_v3 = vcombine.high %v239_v60, %v243_v62  ;;  %v8754_v11 = vcombine.low %v239_v60, %v243_v62 }
 0x181   :  { %6764 = vmatpush1.bf16.msra.mxu1 %v8802_v6  ;;  %v371_v0 = vld [vmem:[#allocation2 + $0x728] sm:$0xff] }
 0x182   :  { %6765 = vmatprep.subr.bf16.mxu1 %v8795_v38  ;;  %v8883_v5 = vcombine.high %v367_v63, %v371_v0  ;;  %v231_v7 = vld [vmem:[#allocation2 + $0x2c8] sm:$0xff]  ;;  %v8882_v10 = vcombine.low %v367_v63, %v371_v0 }
 0x183   :  { %6725 = vmatpush1.bf16.msra.mxu0 %v8666_v14  ;;  %v235_v6 = vld [vmem:[#allocation2 + $0x2e8] sm:$0xff] }
 0x184   :  { %6726 = vmatprep.subr.bf16.mxu0 %v8659_v21  ;;  %v359_v9 = vld [vmem:[#allocation2 + $0x6c8] sm:$0xff]  ;;  %v8747_v12 = vcombine.high %v231_v7, %v235_v6  ;;  %v8746_v24 = vcombine.low %v231_v7, %v235_v6 }
 0x185   :  { %6766 = vmatpush1.bf16.msra.mxu1 %v8794_v17  ;;  %v363_v38 = vld [vmem:[#allocation2 + $0x6e8] sm:$0xff] }
 0x186   :  { %6767 = vmatprep.subr.bf16.mxu1 %v8787_v23  ;;  %v8875_v13 = vcombine.high %v359_v9, %v363_v38  ;;  %v223_v14 = vld [vmem:[#allocation2 + $0x288] sm:$0xff]  ;;  %v8874_v25 = vcombine.low %v359_v9, %v363_v38 }
 0x187   :  { %6727 = vmatpush1.bf16.msra.mxu0 %v8658_v54  ;;  %v227_v17 = vld [vmem:[#allocation2 + $0x2a8] sm:$0xff] }
 0x188   :  { %6728 = vmatprep.subr.bf16.mxu0 %v8779_v33  ;;  %v351_v21 = vld [vmem:[#allocation2 + $0x688] sm:$0xff]  ;;  %v8739_v26 = vcombine.high %v223_v14, %v227_v17  ;;  %v8738_v35 = vcombine.low %v223_v14, %v227_v17 }
 0x189   :  { %6768 = vmatpush1.bf16.msra.mxu1 %v8786_v31  ;;  %v355_v23 = vld [vmem:[#allocation2 + $0x6a8] sm:$0xff] }
 0x18a   :  { %6769 = vmatprep.subr.bf16.mxu1 %v8907_v34  ;;  %v8867_v27 = vcombine.high %v351_v21, %v355_v23  ;;  %v215_v54 = vld [vmem:[#allocation2 + $0x248] sm:$0xff]  ;;  %v8866_v36 = vcombine.low %v351_v21, %v355_v23 }
 0x18b   :  { %6729 = vmatpush2.bf16.msra.mxu0 %v8778_v43  ;;  %v219_v31 = vld [vmem:[#allocation2 + $0x268] sm:$0xff] }
 0x18c   :  { %6730 = vmatprep.subr.bf16.mxu0 %v8771_v45  ;;  %v343_v33 = vld [vmem:[#allocation2 + $0x648] sm:$0xff]  ;;  %v8731_v37 = vcombine.high %v215_v54, %v219_v31  ;;  %v8730_v19 = vcombine.low %v215_v54, %v219_v31 }
 0x18d   :  { %6770 = vmatpush2.bf16.msra.mxu1 %v8906_v44  ;;  %v347_v34 = vld [vmem:[#allocation2 + $0x668] sm:$0xff] }
 0x18e   :  { %6771 = vmatprep.subr.bf16.mxu1 %v8899_v46  ;;  %v8859_v41 = vcombine.high %v343_v33, %v347_v34  ;;  %v207_v43 = vld [vmem:[#allocation2 + $0x208] sm:$0xff]  ;;  %v8858_v47 = vcombine.low %v343_v33, %v347_v34 }
 0x18f   :  { %6731 = vmatpush2.bf16.msra.mxu0 %v8770_v51  ;;  %v211_v44 = vld [vmem:[#allocation2 + $0x228] sm:$0xff] }
 0x190   :  { %6732 = vmatprep.subr.bf16.mxu0 %v8763_v56  ;;  %v335_v45 = vld [vmem:[#allocation2 + $0x608] sm:$0xff]  ;;  %v8723_v22 = vcombine.high %v207_v43, %v211_v44  ;;  %v8722_v60 = vcombine.low %v207_v43, %v211_v44 }
 0x191   :  { %6772 = vmatpush2.bf16.msra.mxu1 %v8898_v52  ;;  %v339_v46 = vld [vmem:[#allocation2 + $0x628] sm:$0xff] }
 0x192   :  { %6773 = vmatprep.subr.bf16.mxu1 %v8891_v57  ;;  %v8851_v50 = vcombine.high %v335_v45, %v339_v46  ;;  %v455_v51 = vld [vmem:[#allocation2 + $0x9c8] sm:$0xff]  ;;  %v8850_v62 = vcombine.low %v335_v45, %v339_v46 }
 0x193   :  { %6733 = vmatpush2.bf16.msra.mxu0 %v8762_v1  ;;  %v459_v52 = vld [vmem:[#allocation2 + $0x9e8] sm:$0xff] }
 0x194   :  { %6734 = vmatprep.subr.bf16.mxu0 %v8755_v3  ;;  %v583_v56 = vld [vmem:[#allocation2 + $0xdc8] sm:$0xff]  ;;  %v8971_v63 = vcombine.high %v455_v51, %v459_v52  ;;  %v8970_v7 = vcombine.low %v455_v51, %v459_v52 }
 0x195   :  { %6774 = vmatpush2.bf16.msra.mxu1 %v8890_v2  ;;  %v587_v57 = vld [vmem:[#allocation2 + $0xde8] sm:$0xff] }
 0x196   :  { %6775 = vmatprep.subr.bf16.mxu1 %v8883_v5  ;;  %v9099_v0 = vcombine.high %v583_v56, %v587_v57  ;;  %v447_v1 = vld [vmem:[#allocation2 + $0x988] sm:$0xff]  ;;  %v9098_v6 = vcombine.low %v583_v56, %v587_v57 }
 0x197   :  { %6735 = vmatpush2.bf16.msra.mxu0 %v8754_v11  ;;  %v451_v2 = vld [vmem:[#allocation2 + $0x9a8] sm:$0xff] }
 0x198   :  { %6736 = vmatprep.subr.bf16.mxu0 %v8747_v12  ;;  %v575_v3 = vld [vmem:[#allocation2 + $0xd88] sm:$0xff]  ;;  %v8963_v9 = vcombine.high %v447_v1, %v451_v2  ;;  %v8962_v23 = vcombine.low %v447_v1, %v451_v2 }
 0x199   :  { %6776 = vmatpush2.bf16.msra.mxu1 %v8882_v10  ;;  %v579_v5 = vld [vmem:[#allocation2 + $0xda8] sm:$0xff] }
 0x19a   :  { %6777 = vmatprep.subr.bf16.mxu1 %v8875_v13  ;;  %v9091_v38 = vcombine.high %v575_v3, %v579_v5  ;;  %v439_v11 = vld [vmem:[#allocation2 + $0x948] sm:$0xff] }
 0x19b   :  { %6737 = vmatpush2.bf16.msra.mxu0 %v8746_v24  ;;  %v443_v10 = vld [vmem:[#allocation2 + $0x968] sm:$0xff] }
 0x19c   :  { %6738 = vmatprep.subr.bf16.mxu0 %v8739_v26  ;;  %v567_v13 = vld [vmem:[#allocation2 + $0xd48] sm:$0xff]  ;;  %v8955_v26 = vcombine.high %v439_v11, %v443_v10  ;;  %v8954_v44 = vcombine.low %v439_v11, %v443_v10 }
 0x19d   :  { %6778 = vmatpush2.bf16.msra.mxu1 %v8874_v25  ;;  %v571_v14 = vld [vmem:[#allocation2 + $0xd68] sm:$0xff]  ;;  %v9090_v25 = vcombine.low %v575_v3, %v579_v5 }
 0x19e   :  { %6779 = vmatprep.subr.bf16.mxu1 %v8867_v27  ;;  %v9083_v33 = vcombine.high %v567_v13, %v571_v14  ;;  %v431_v34 = vld [vmem:[#allocation2 + $0x908] sm:$0xff] }
 0x19f   :  { %6739 = vmatpush2.bf16.msra.mxu0 %v8738_v35  ;;  %v435_v35 = vld [vmem:[#allocation2 + $0x928] sm:$0xff] }
 0x1a0   :  { %6740 = vmatprep.subr.bf16.mxu0 %v8731_v37  ;;  %v563_v37 = vld [vmem:[#allocation2 + $0xd28] sm:$0xff]  ;;  %v8947_v46 = vcombine.high %v431_v34, %v435_v35  ;;  %v8946_v56 = vcombine.low %v431_v34, %v435_v35 }
 0x1a1   :  { %6780 = vmatpush2.bf16.msra.mxu1 %v8866_v36  ;;  %v559_v36 = vld [vmem:[#allocation2 + $0xd08] sm:$0xff] }
 0x1a2   :  { %6781 = vmatprep.subr.bf16.mxu1 %v8859_v41  ;;  %v551_v51 = vld [vmem:[#allocation2 + $0xcc8] sm:$0xff]  ;;  %v9074_v57 = vcombine.low %v559_v36, %v563_v37 }
 0x1a3   :  { %6741 = vmatpush2.bf16.msra.mxu0 %v8730_v19  ;;  %v555_v52 = vld [vmem:[#allocation2 + $0xce8] sm:$0xff] }
 0x1a4   :  { %6742 = vmatprep.subr.bf16.mxu0 %v8723_v22  ;;  %v423_v22 = vld [vmem:[#allocation2 + $0x8c8] sm:$0xff]  ;;  %v9066_v5 = vcombine.low %v551_v51, %v555_v52 }
 0x1a5   :  { %6782 = vmatpush2.bf16.msra.mxu1 %v8858_v47  ;;  %v9075_v47 = vcombine.high %v559_v36, %v563_v37  ;;  %v543_v1 = vld [vmem:[#allocation2 + $0xc88] sm:$0xff] }
 0x1a6   :  { %6783 = vmatprep.subr.bf16.mxu1 %v8851_v50  ;;  %v427_v50 = vld [vmem:[#allocation2 + $0x8e8] sm:$0xff] }
 0x1a7   :  { %6743 = vmatpush2.bf16.msra.mxu0 %v8722_v60  ;;  %v8939_v60 = vcombine.high %v423_v22, %v427_v50  ;;  %v547_v2 = vld [vmem:[#allocation2 + $0xca8] sm:$0xff]  ;;  %v8938_v3 = vcombine.low %v423_v22, %v427_v50 }
 0x1a8   :  { %6794 = vmatprep.subr.bf16.mxu0 %v8971_v63  ;;  %v415_v63 = vld [vmem:[#allocation2 + $0x888] sm:$0xff] }
 0x1a9   :  { %6784 = vmatpush2.bf16.msra.mxu1 %v8850_v62  ;;  %v6500_v12 = vpop.f32.mrf.mxu0  ;;  %v9067_v62 = vcombine.high %v551_v51, %v555_v52  ;;  %v535_v11 = vld [vmem:[#allocation2 + $0xc48] sm:$0xff] }
 0x1aa   :  { %6835 = vmatprep.subr.bf16.mxu1 %v9099_v0  ;;  %6745 = vmatmul.mubr.bf16.vlgmr.msra.gmra.mxu0 %v10306_v16  ;;  %v6501_v17 = vadd.f32 %v6500_v12, %v10409_v42  ;;  %v419_v0 = vld [vmem:[#allocation2 + $0x8a8] sm:$0xff] }
 0x1ab   :  { %v6541_v21 = vpop.f32.mrf.mxu1  ;;  %6795 = vmatpush1.bf16.msra.mxu0 %v8970_v7  ;;  %v6502_v24 = vpop.f32.mrf.mxu0  ;;  %6826 = vmatprep.mubr.bf16.mxu0 %v10324_v28  ;;  %v8931_v7 = vcombine.high %v415_v63, %v419_v0  ;;  %v539_v10 = vld [vmem:[#allocation2 + $0xc68] sm:$0xff]  ;;  %v8930_v12 = vcombine.low %v415_v63, %v419_v0 }
 0x1ac   :  { %6786 = vmatmul.mubr.bf16.vlgmr.msra.gmra.mxu1 %v10315_v20  ;;  %6796 = vmatprep.subr.bf16.mxu0 %v8963_v9  ;;  %v10418_v27 = vadd.f32 %v6541_v21, %v6501_v17  ;;  %v6503_v54 = vadd.f32 %v6502_v24, %v10413_v30  ;;  %v9082_v30 = vcombine.low %v567_v13, %v571_v14  ;;  %v407_v9 = vld [vmem:[#allocation2 + $0x848] sm:$0xff] }
 0x1ad   :  { %6836 = vmatpush1.bf16.msra.mxu1 %v9098_v6  ;;  %v6543_v31 = vpop.f32.mrf.mxu1  ;;  %v6504_v42 = vpop.f32.mrf.mxu0  ;;  %6867 = vmatprep.mubr.bf16.mxu1 %v10329_v29  ;;  %v9059_v6 = vcombine.high %v543_v1, %v547_v2  ;;  %v9058_v13 = vcombine.low %v543_v1, %v547_v2  ;;  %v9051_v17 = vcombine.high %v535_v11, %v539_v10  ;;  %v399_v21 = vld [vmem:[#allocation2 + $0x808] sm:$0xff] }
 0x1ae   :  { %6837 = vmatprep.subr.bf16.mxu1 %v9091_v38  ;;  %v10423_v41 = vadd.f32 %v6543_v31, %v6503_v54  ;;  %v411_v38 = vld [vmem:[#allocation2 + $0x868] sm:$0xff]  ;;  %v9050_v54 = vcombine.low %v535_v11, %v539_v10 }
 0x1af   :  { %v6545_v43 = vpop.f32.mrf.mxu1  ;;  %6797 = vmatpush1.bf16.msra.mxu0 %v8962_v23  ;;  %v6505_v45 = vpop.f32.mrf.mxu0  ;;  %v8923_v14 = vcombine.high %v407_v9, %v411_v38  ;;  %v403_v23 = vld [vmem:[#allocation2 + $0x828] sm:$0xff] }
 0x1b0   :  { %6798 = vmatprep.subr.bf16.mxu0 %v8955_v26  ;;  %v527_v24 = vld [vmem:[#allocation2 + $0xc08] sm:$0xff]  ;;  %v8922_v26 = vcombine.low %v407_v9, %v411_v38  ;;  %v8915_v31 = vcombine.high %v399_v21, %v403_v23  ;;  %v8914_v37 = vcombine.low %v399_v21, %v403_v23 }
 0x1b1   :  { %6838 = vmatpush1.bf16.msra.mxu1 %v9090_v25  ;;  %v6546_v19 = vpop.f32.mrf.mxu1  ;;  %v531_v25 = vld [vmem:[#allocation2 + $0xc28] sm:$0xff] }
 0x1b2   :  { %6839 = vmatprep.subr.bf16.mxu1 %v9083_v33  ;;  %v9043_v33 = vcombine.high %v527_v24, %v531_v25  ;;  %v519_v34 = vld [vmem:[#allocation2 + $0xbc8] sm:$0xff]  ;;  %v9042_v43 = vcombine.low %v527_v24, %v531_v25 }
 0x1b3   :  { %6799 = vmatpush1.bf16.msra.mxu0 %v8954_v44  ;;  %v523_v35 = vld [vmem:[#allocation2 + $0xbe8] sm:$0xff] }
 0x1b4   :  { %6800 = vmatprep.subr.bf16.mxu0 %v8947_v46  ;;  %v647_v42 = vld [vmem:[#allocation2 + $0xfc8] sm:$0xff]  ;;  %v9035_v44 = vcombine.high %v519_v34, %v523_v35  ;;  %v9034_v22 = vcombine.low %v519_v34, %v523_v35 }
 0x1b5   :  { %6840 = vmatpush1.bf16.msra.mxu1 %v9082_v30  ;;  %v651_v36 = vld [vmem:[#allocation2 + $0xfe8] sm:$0xff] }
 0x1b6   :  { %6841 = vmatprep.subr.bf16.mxu1 %v9075_v47  ;;  %v9163_v45 = vcombine.high %v647_v42, %v651_v36  ;;  %v511_v30 = vld [vmem:[#allocation2 + $0xb88] sm:$0xff]  ;;  %v9162_v50 = vcombine.low %v647_v42, %v651_v36 }
 0x1b7   :  { %6801 = vmatpush1.bf16.msra.mxu0 %v8946_v56  ;;  %v515_v46 = vld [vmem:[#allocation2 + $0xba8] sm:$0xff] }
 0x1b8   :  { %6802 = vmatprep.subr.bf16.mxu0 %v8939_v60  ;;  %v639_v19 = vld [vmem:[#allocation2 + $0xf88] sm:$0xff]  ;;  %v9027_v51 = vcombine.high %v511_v30, %v515_v46  ;;  %v9026_v63 = vcombine.low %v511_v30, %v515_v46 }
 0x1b9   :  { %6842 = vmatpush1.bf16.msra.mxu1 %v9074_v57  ;;  %v643_v47 = vld [vmem:[#allocation2 + $0xfa8] sm:$0xff] }
 0x1ba   :  { %6843 = vmatprep.subr.bf16.mxu1 %v9067_v62  ;;  %v9155_v52 = vcombine.high %v639_v19, %v643_v47  ;;  %v503_v56 = vld [vmem:[#allocation2 + $0xb48] sm:$0xff]  ;;  %v9154_v0 = vcombine.low %v639_v19, %v643_v47 }
 0x1bb   :  { %6803 = vmatpush1.bf16.msra.mxu0 %v8938_v3  ;;  %v507_v57 = vld [vmem:[#allocation2 + $0xb68] sm:$0xff] }
 0x1bc   :  { %6804 = vmatprep.subr.bf16.mxu0 %v8931_v7  ;;  %v631_v60 = vld [vmem:[#allocation2 + $0xf48] sm:$0xff]  ;;  %v9019_v1 = vcombine.high %v503_v56, %v507_v57  ;;  %v9018_v9 = vcombine.low %v503_v56, %v507_v57 }
 0x1bd   :  { %6844 = vmatpush1.bf16.msra.mxu1 %v9066_v5  ;;  %v635_v62 = vld [vmem:[#allocation2 + $0xf68] sm:$0xff] }
 0x1be   :  { %6845 = vmatprep.subr.bf16.mxu1 %v9059_v6  ;;  %v9147_v2 = vcombine.high %v631_v60, %v635_v62  ;;  %v495_v3 = vld [vmem:[#allocation2 + $0xb08] sm:$0xff]  ;;  %v9146_v38 = vcombine.low %v631_v60, %v635_v62 }
 0x1bf   :  { %6805 = vmatpush1.bf16.msra.mxu0 %v8930_v12  ;;  %v499_v5 = vld [vmem:[#allocation2 + $0xb28] sm:$0xff] }
 0x1c0   :  { %6806 = vmatprep.subr.bf16.mxu0 %v8923_v14  ;;  %v623_v7 = vld [vmem:[#allocation2 + $0xf08] sm:$0xff]  ;;  %v9011_v11 = vcombine.high %v495_v3, %v499_v5  ;;  %v9010_v21 = vcombine.low %v495_v3, %v499_v5 }
 0x1c1   :  { %6846 = vmatpush1.bf16.msra.mxu1 %v9058_v13  ;;  %v627_v6 = vld [vmem:[#allocation2 + $0xf28] sm:$0xff] }
 0x1c2   :  { %6847 = vmatprep.subr.bf16.mxu1 %v9051_v17  ;;  %v9139_v10 = vcombine.high %v623_v7, %v627_v6  ;;  %v487_v12 = vld [vmem:[#allocation2 + $0xac8] sm:$0xff]  ;;  %v9138_v23 = vcombine.low %v623_v7, %v627_v6 }
 0x1c3   :  { %6807 = vmatpush1.bf16.msra.mxu0 %v8922_v26  ;;  %v491_v13 = vld [vmem:[#allocation2 + $0xae8] sm:$0xff] }
 0x1c4   :  { %6808 = vmatprep.subr.bf16.mxu0 %v8915_v31  ;;  %v615_v14 = vld [vmem:[#allocation2 + $0xec8] sm:$0xff]  ;;  %v9003_v24 = vcombine.high %v487_v12, %v491_v13  ;;  %v9002_v34 = vcombine.low %v487_v12, %v491_v13 }
 0x1c5   :  { %6848 = vmatpush1.bf16.msra.mxu1 %v9050_v54  ;;  %v619_v17 = vld [vmem:[#allocation2 + $0xee8] sm:$0xff] }
 0x1c6   :  { %6849 = vmatprep.subr.bf16.mxu1 %v9043_v33  ;;  %v9131_v25 = vcombine.high %v615_v14, %v619_v17  ;;  %v479_v26 = vld [vmem:[#allocation2 + $0xa88] sm:$0xff]  ;;  %v9130_v35 = vcombine.low %v615_v14, %v619_v17 }
 0x1c7   :  { %6809 = vmatpush1.bf16.msra.mxu0 %v8914_v37  ;;  %v483_v54 = vld [vmem:[#allocation2 + $0xaa8] sm:$0xff] }
 0x1c8   :  { %6810 = vmatprep.subr.bf16.mxu0 %v9035_v44  ;;  %v607_v31 = vld [vmem:[#allocation2 + $0xe88] sm:$0xff]  ;;  %v8995_v42 = vcombine.high %v479_v26, %v483_v54  ;;  %v8994_v30 = vcombine.low %v479_v26, %v483_v54 }
 0x1c9   :  { %6850 = vmatpush1.bf16.msra.mxu1 %v9042_v43  ;;  %v611_v33 = vld [vmem:[#allocation2 + $0xea8] sm:$0xff] }
 0x1ca   :  { %6851 = vmatprep.subr.bf16.mxu1 %v9163_v45  ;;  %v9123_v36 = vcombine.high %v607_v31, %v611_v33  ;;  %v471_v37 = vld [vmem:[#allocation2 + $0xa48] sm:$0xff]  ;;  %v9122_v46 = vcombine.low %v607_v31, %v611_v33 }
 0x1cb   :  { %6811 = vmatpush2.bf16.msra.mxu0 %v9034_v22  ;;  %v475_v43 = vld [vmem:[#allocation2 + $0xa68] sm:$0xff] }
 0x1cc   :  { %6812 = vmatprep.subr.bf16.mxu0 %v9027_v51  ;;  %v599_v44 = vld [vmem:[#allocation2 + $0xe48] sm:$0xff]  ;;  %v8987_v19 = vcombine.high %v471_v37, %v475_v43  ;;  %v8986_v56 = vcombine.low %v471_v37, %v475_v43 }
 0x1cd   :  { %6852 = vmatpush2.bf16.msra.mxu1 %v9162_v50  ;;  %v603_v45 = vld [vmem:[#allocation2 + $0xe68] sm:$0xff] }
 0x1ce   :  { %6853 = vmatprep.subr.bf16.mxu1 %v9155_v52  ;;  %v9115_v47 = vcombine.high %v599_v44, %v603_v45  ;;  %v463_v22 = vld [vmem:[#allocation2 + $0xa08] sm:$0xff]  ;;  %v9114_v57 = vcombine.low %v599_v44, %v603_v45 }
 0x1cf   :  { %6813 = vmatpush2.bf16.msra.mxu0 %v9026_v63  ;;  %v467_v50 = vld [vmem:[#allocation2 + $0xa28] sm:$0xff] }
 0x1d0   :  { %6814 = vmatprep.subr.bf16.mxu0 %v9019_v1  ;;  %v591_v51 = vld [vmem:[#allocation2 + $0xe08] sm:$0xff]  ;;  %v8979_v60 = vcombine.high %v463_v22, %v467_v50  ;;  %v8978_v3 = vcombine.low %v463_v22, %v467_v50 }
 0x1d1   :  { %6854 = vmatpush2.bf16.msra.mxu1 %v9154_v0  ;;  %v595_v52 = vld [vmem:[#allocation2 + $0xe28] sm:$0xff] }
 0x1d2   :  { %6855 = vmatprep.subr.bf16.mxu1 %v9147_v2  ;;  %v9107_v62 = vcombine.high %v591_v51, %v595_v52  ;;  %v711_v63 = vld [vmem:[#allocation2 + $0x11c8] sm:$0xff]  ;;  %v9106_v5 = vcombine.low %v591_v51, %v595_v52 }
 0x1d3   :  { %6815 = vmatpush2.bf16.msra.mxu0 %v9018_v9  ;;  %v715_v0 = vld [vmem:[#allocation2 + $0x11e8] sm:$0xff] }
 0x1d4   :  { %6816 = vmatprep.subr.bf16.mxu0 %v9011_v11  ;;  %v839_v1 = vld [vmem:[#allocation2 + $0x15c8] sm:$0xff]  ;;  %v9227_v7 = vcombine.high %v711_v63, %v715_v0  ;;  %v9226_v12 = vcombine.low %v711_v63, %v715_v0 }
 0x1d5   :  { %6856 = vmatpush2.bf16.msra.mxu1 %v9146_v38  ;;  %v843_v2 = vld [vmem:[#allocation2 + $0x15e8] sm:$0xff] }
 0x1d6   :  { %6857 = vmatprep.subr.bf16.mxu1 %v9139_v10  ;;  %v9355_v6 = vcombine.high %v839_v1, %v843_v2  ;;  %v703_v9 = vld [vmem:[#allocation2 + $0x1188] sm:$0xff]  ;;  %v9354_v13 = vcombine.low %v839_v1, %v843_v2 }
 0x1d7   :  { %6817 = vmatpush2.bf16.msra.mxu0 %v9010_v21  ;;  %v707_v38 = vld [vmem:[#allocation2 + $0x11a8] sm:$0xff] }
 0x1d8   :  { %6818 = vmatprep.subr.bf16.mxu0 %v9003_v24  ;;  %v831_v11 = vld [vmem:[#allocation2 + $0x1588] sm:$0xff]  ;;  %v9219_v14 = vcombine.high %v703_v9, %v707_v38  ;;  %v9218_v33 = vcombine.low %v703_v9, %v707_v38 }
 0x1d9   :  { %6858 = vmatpush2.bf16.msra.mxu1 %v9138_v23  ;;  %v835_v10 = vld [vmem:[#allocation2 + $0x15a8] sm:$0xff] }
 0x1da   :  { %6859 = vmatprep.subr.bf16.mxu1 %v9131_v25  ;;  %v9347_v17 = vcombine.high %v831_v11, %v835_v10  ;;  %v695_v21 = vld [vmem:[#allocation2 + $0x1148] sm:$0xff] }
 0x1db   :  { %6819 = vmatpush2.bf16.msra.mxu0 %v9002_v34  ;;  %v699_v23 = vld [vmem:[#allocation2 + $0x1168] sm:$0xff] }
 0x1dc   :  { %6820 = vmatprep.subr.bf16.mxu0 %v8995_v42  ;;  %v823_v25 = vld [vmem:[#allocation2 + $0x1548] sm:$0xff]  ;;  %v9211_v42 = vcombine.high %v695_v21, %v699_v23  ;;  %v9210_v50 = vcombine.low %v695_v21, %v699_v23 }
 0x1dd   :  { %6860 = vmatpush2.bf16.msra.mxu1 %v9130_v35  ;;  %v827_v26 = vld [vmem:[#allocation2 + $0x1568] sm:$0xff]  ;;  %v9346_v35 = vcombine.low %v831_v11, %v835_v10 }
 0x1de   :  { %6861 = vmatprep.subr.bf16.mxu1 %v9123_v36  ;;  %v9339_v44 = vcombine.high %v823_v25, %v827_v26  ;;  %v687_v45 = vld [vmem:[#allocation2 + $0x1108] sm:$0xff] }
 0x1df   :  { %6821 = vmatpush2.bf16.msra.mxu0 %v8994_v30  ;;  %v691_v30 = vld [vmem:[#allocation2 + $0x1128] sm:$0xff] }
 0x1e0   :  { %6822 = vmatprep.subr.bf16.mxu0 %v8987_v19  ;;  %v819_v19 = vld [vmem:[#allocation2 + $0x1528] sm:$0xff]  ;;  %v9203_v52 = vcombine.high %v687_v45, %v691_v30  ;;  %v9202_v1 = vcombine.low %v687_v45, %v691_v30 }
 0x1e1   :  { %6862 = vmatpush2.bf16.msra.mxu1 %v9122_v46  ;;  %v815_v46 = vld [vmem:[#allocation2 + $0x1508] sm:$0xff] }
 0x1e2   :  { %6863 = vmatprep.subr.bf16.mxu1 %v9115_v47  ;;  %v807_v63 = vld [vmem:[#allocation2 + $0x14c8] sm:$0xff]  ;;  %v9330_v2 = vcombine.low %v815_v46, %v819_v19 }
 0x1e3   :  { %6823 = vmatpush2.bf16.msra.mxu0 %v8986_v56  ;;  %v811_v0 = vld [vmem:[#allocation2 + $0x14e8] sm:$0xff] }
 0x1e4   :  { %6824 = vmatprep.subr.bf16.mxu0 %v8979_v60  ;;  %v679_v60 = vld [vmem:[#allocation2 + $0x10c8] sm:$0xff]  ;;  %v9322_v10 = vcombine.low %v807_v63, %v811_v0 }
 0x1e5   :  { %6864 = vmatpush2.bf16.msra.mxu1 %v9114_v57  ;;  %v9331_v57 = vcombine.high %v815_v46, %v819_v19  ;;  %v799_v9 = vld [vmem:[#allocation2 + $0x1488] sm:$0xff] }
 0x1e6   :  { %6865 = vmatprep.subr.bf16.mxu1 %v9107_v62  ;;  %v683_v62 = vld [vmem:[#allocation2 + $0x10e8] sm:$0xff] }
 0x1e7   :  { %6825 = vmatpush2.bf16.msra.mxu0 %v8978_v3  ;;  %v9195_v3 = vcombine.high %v679_v60, %v683_v62  ;;  %v803_v38 = vld [vmem:[#allocation2 + $0x14a8] sm:$0xff]  ;;  %v9194_v11 = vcombine.low %v679_v60, %v683_v62 }
 0x1e8   :  { %6876 = vmatprep.subr.bf16.mxu0 %v9227_v7  ;;  %v671_v7 = vld [vmem:[#allocation2 + $0x1088] sm:$0xff] }
 0x1e9   :  { %6866 = vmatpush2.bf16.msra.mxu1 %v9106_v5  ;;  %v9323_v5 = vcombine.high %v807_v63, %v811_v0  ;;  %v791_v21 = vld [vmem:[#allocation2 + $0x1448] sm:$0xff] }
 0x1ea   :  { %6917 = vmatprep.subr.bf16.mxu1 %v9355_v6  ;;  %v6582_v24 = vpop.f32.mrf.mxu0  ;;  %6827 = vmatmul.mubr.bf16.vlgmr.msra.gmra.mxu0 %v10341_v39  ;;  %v675_v6 = vld [vmem:[#allocation2 + $0x10a8] sm:$0xff] }
 0x1eb   :  { %v6583_v54 = vadd.f32 %v6582_v24, %v10418_v27  ;;  %6877 = vmatpush1.bf16.msra.mxu0 %v9226_v12  ;;  %6908 = vmatprep.mubr.bf16.mxu0 %v10354_v48  ;;  %v9187_v12 = vcombine.high %v671_v7, %v675_v6  ;;  %v795_v23 = vld [vmem:[#allocation2 + $0x1468] sm:$0xff]  ;;  %v9186_v24 = vcombine.low %v671_v7, %v675_v6 }
 0x1ec   :  { %v6623_v31 = vpop.f32.mrf.mxu1  ;;  %6868 = vmatmul.mubr.bf16.vlgmr.msra.gmra.mxu1 %v10345_v40  ;;  %v6584_v34 = vpop.f32.mrf.mxu0  ;;  %6878 = vmatprep.subr.bf16.mxu0 %v9219_v14  ;;  %v663_v14 = vld [vmem:[#allocation2 + $0x1048] sm:$0xff] }
 0x1ed   :  { %6918 = vmatpush1.bf16.msra.mxu1 %v9354_v13  ;;  %v10428_v36 = vadd.f32 %v6623_v31, %v6583_v54  ;;  %v6585_v37 = vadd.f32 %v6584_v34, %v10423_v41  ;;  %6949 = vmatprep.mubr.bf16.mxu1 %v10359_v49  ;;  %v9338_v41 = vcombine.low %v823_v25, %v827_v26  ;;  %v655_v31 = vld [vmem:[#allocation2 + $0x1008] sm:$0xff] }
 0x1ee   :  { %v6625_v43 = vpop.f32.mrf.mxu1  ;;  %6919 = vmatprep.subr.bf16.mxu1 %v9347_v17  ;;  %v6586_v27 = vpop.f32.mrf.mxu0  ;;  %v9315_v13 = vcombine.high %v799_v9, %v803_v38  ;;  %v667_v17 = vld [vmem:[#allocation2 + $0x1068] sm:$0xff]  ;;  %v9314_v25 = vcombine.low %v799_v9, %v803_v38  ;;  %v9307_v54 = vcombine.high %v791_v21, %v795_v23 }
 0x1ef   :  { %v10433_v47 = vadd.f32 %v6625_v43, %v6585_v37  ;;  %6879 = vmatpush1.bf16.msra.mxu0 %v9218_v33  ;;  %v9179_v26 = vcombine.high %v663_v14, %v667_v17  ;;  %v659_v33 = vld [vmem:[#allocation2 + $0x1028] sm:$0xff]  ;;  %v9306_v37 = vcombine.low %v791_v21, %v795_v23 }
 0x1f0   :  { %v6627_v22 = vpop.f32.mrf.mxu1  ;;  %v6587_v51 = vpop.f32.mrf.mxu0  ;;  %6880 = vmatprep.subr.bf16.mxu0 %v9211_v42  ;;  %v783_v34 = vld [vmem:[#allocation2 + $0x1408] sm:$0xff]  ;;  %v9178_v42 = vcombine.low %v663_v14, %v667_v17  ;;  %v9171_v43 = vcombine.high %v655_v31, %v659_v33  ;;  %v9170_v19 = vcombine.low %v655_v31, %v659_v33 }
 0x1f1   :  { %6920 = vmatpush1.bf16.msra.mxu1 %v9346_v35  ;;  %v787_v35 = vld [vmem:[#allocation2 + $0x1428] sm:$0xff] }
 0x1f2   :  { %v6628_v56 = vpop.f32.mrf.mxu1  ;;  %6921 = vmatprep.subr.bf16.mxu1 %v9339_v44  ;;  %v9299_v44 = vcombine.high %v783_v34, %v787_v35  ;;  %v775_v45 = vld [vmem:[#allocation2 + $0x13c8] sm:$0xff]  ;;  %v9298_v22 = vcombine.low %v783_v34, %v787_v35 }
 0x1f3   :  { %6881 = vmatpush1.bf16.msra.mxu0 %v9210_v50  ;;  %v779_v30 = vld [vmem:[#allocation2 + $0x13e8] sm:$0xff] }
 0x1f4   :  { %6882 = vmatprep.subr.bf16.mxu0 %v9203_v52  ;;  %v903_v27 = vld [vmem:[#allocation2 + $0x17c8] sm:$0xff]  ;;  %v9291_v50 = vcombine.high %v775_v45, %v779_v30  ;;  %v9290_v60 = vcombine.low %v775_v45, %v779_v30 }
 0x1f5   :  { %6922 = vmatpush1.bf16.msra.mxu1 %v9338_v41  ;;  %v907_v46 = vld [vmem:[#allocation2 + $0x17e8] sm:$0xff] }
 0x1f6   :  { %6923 = vmatprep.subr.bf16.mxu1 %v9331_v57  ;;  %v9419_v51 = vcombine.high %v903_v27, %v907_v46  ;;  %v767_v41 = vld [vmem:[#allocation2 + $0x1388] sm:$0xff]  ;;  %v9418_v62 = vcombine.low %v903_v27, %v907_v46 }
 0x1f7   :  { %6883 = vmatpush1.bf16.msra.mxu0 %v9202_v1  ;;  %v771_v52 = vld [vmem:[#allocation2 + $0x13a8] sm:$0xff] }
 0x1f8   :  { %6884 = vmatprep.subr.bf16.mxu0 %v9195_v3  ;;  %v895_v56 = vld [vmem:[#allocation2 + $0x1788] sm:$0xff]  ;;  %v9283_v63 = vcombine.high %v767_v41, %v771_v52  ;;  %v9282_v7 = vcombine.low %v767_v41, %v771_v52 }
 0x1f9   :  { %6924 = vmatpush1.bf16.msra.mxu1 %v9330_v2  ;;  %v899_v57 = vld [vmem:[#allocation2 + $0x17a8] sm:$0xff] }
 0x1fa   :  { %6925 = vmatprep.subr.bf16.mxu1 %v9323_v5  ;;  %v9411_v0 = vcombine.high %v895_v56, %v899_v57  ;;  %v759_v1 = vld [vmem:[#allocation2 + $0x1348] sm:$0xff]  ;;  %v9410_v6 = vcombine.low %v895_v56, %v899_v57 }
 0x1fb   :  { %6885 = vmatpush1.bf16.msra.mxu0 %v9194_v11  ;;  %v763_v2 = vld [vmem:[#allocation2 + $0x1368] sm:$0xff] }
 0x1fc   :  { %6886 = vmatprep.subr.bf16.mxu0 %v9187_v12  ;;  %v887_v3 = vld [vmem:[#allocation2 + $0x1748] sm:$0xff]  ;;  %v9275_v9 = vcombine.high %v759_v1, %v763_v2  ;;  %v9274_v14 = vcombine.low %v759_v1, %v763_v2 }
 0x1fd   :  { %6926 = vmatpush1.bf16.msra.mxu1 %v9322_v10  ;;  %v891_v5 = vld [vmem:[#allocation2 + $0x1768] sm:$0xff] }
 0x1fe   :  { %6927 = vmatprep.subr.bf16.mxu1 %v9315_v13  ;;  %v9403_v38 = vcombine.high %v887_v3, %v891_v5  ;;  %v751_v11 = vld [vmem:[#allocation2 + $0x1308] sm:$0xff]  ;;  %v9402_v17 = vcombine.low %v887_v3, %v891_v5 }
 0x1ff   :  { %6887 = vmatpush1.bf16.msra.mxu0 %v9186_v24  ;;  %v755_v10 = vld [vmem:[#allocation2 + $0x1328] sm:$0xff] }
 0x200   :  { %6888 = vmatprep.subr.bf16.mxu0 %v9179_v26  ;;  %v879_v12 = vld [vmem:[#allocation2 + $0x1708] sm:$0xff]  ;;  %v9267_v21 = vcombine.high %v751_v11, %v755_v10  ;;  %v9266_v31 = vcombine.low %v751_v11, %v755_v10 }
 0x201   :  { %6928 = vmatpush1.bf16.msra.mxu1 %v9314_v25  ;;  %v883_v13 = vld [vmem:[#allocation2 + $0x1728] sm:$0xff] }
 0x202   :  { %6929 = vmatprep.subr.bf16.mxu1 %v9307_v54  ;;  %v9395_v23 = vcombine.high %v879_v12, %v883_v13  ;;  %v743_v24 = vld [vmem:[#allocation2 + $0x12c8] sm:$0xff]  ;;  %v9394_v33 = vcombine.low %v879_v12, %v883_v13 }
 0x203   :  { %6889 = vmatpush1.bf16.msra.mxu0 %v9178_v42  ;;  %v747_v25 = vld [vmem:[#allocation2 + $0x12e8] sm:$0xff] }
 0x204   :  { %6890 = vmatprep.subr.bf16.mxu0 %v9171_v43  ;;  %v871_v26 = vld [vmem:[#allocation2 + $0x16c8] sm:$0xff]  ;;  %v9259_v34 = vcombine.high %v743_v24, %v747_v25  ;;  %v9258_v45 = vcombine.low %v743_v24, %v747_v25 }
 0x205   :  { %6930 = vmatpush1.bf16.msra.mxu1 %v9306_v37  ;;  %v875_v54 = vld [vmem:[#allocation2 + $0x16e8] sm:$0xff] }
 0x206   :  { %6931 = vmatprep.subr.bf16.mxu1 %v9299_v44  ;;  %v9387_v35 = vcombine.high %v871_v26, %v875_v54  ;;  %v735_v42 = vld [vmem:[#allocation2 + $0x1288] sm:$0xff]  ;;  %v9386_v30 = vcombine.low %v871_v26, %v875_v54 }
 0x207   :  { %6891 = vmatpush1.bf16.msra.mxu0 %v9170_v19  ;;  %v739_v37 = vld [vmem:[#allocation2 + $0x12a8] sm:$0xff] }
 0x208   :  { %6892 = vmatprep.subr.bf16.mxu0 %v9291_v50  ;;  %v863_v43 = vld [vmem:[#allocation2 + $0x1688] sm:$0xff]  ;;  %v9251_v27 = vcombine.high %v735_v42, %v739_v37  ;;  %v9250_v41 = vcombine.low %v735_v42, %v739_v37 }
 0x209   :  { %6932 = vmatpush1.bf16.msra.mxu1 %v9298_v22  ;;  %v867_v44 = vld [vmem:[#allocation2 + $0x16a8] sm:$0xff] }
 0x20a   :  { %6933 = vmatprep.subr.bf16.mxu1 %v9419_v51  ;;  %v9379_v46 = vcombine.high %v863_v43, %v867_v44  ;;  %v727_v19 = vld [vmem:[#allocation2 + $0x1248] sm:$0xff]  ;;  %v9378_v52 = vcombine.low %v863_v43, %v867_v44 }
 0x20b   :  { %6893 = vmatpush2.bf16.msra.mxu0 %v9290_v60  ;;  %v731_v22 = vld [vmem:[#allocation2 + $0x1268] sm:$0xff] }
 0x20c   :  { %6894 = vmatprep.subr.bf16.mxu0 %v9283_v63  ;;  %v855_v50 = vld [vmem:[#allocation2 + $0x1648] sm:$0xff]  ;;  %v9243_v56 = vcombine.high %v727_v19, %v731_v22  ;;  %v9242_v1 = vcombine.low %v727_v19, %v731_v22 }
 0x20d   :  { %6934 = vmatpush2.bf16.msra.mxu1 %v9418_v62  ;;  %v859_v51 = vld [vmem:[#allocation2 + $0x1668] sm:$0xff] }
 0x20e   :  { %6935 = vmatprep.subr.bf16.mxu1 %v9411_v0  ;;  %v9371_v57 = vcombine.high %v855_v50, %v859_v51  ;;  %v719_v60 = vld [vmem:[#allocation2 + $0x1208] sm:$0xff]  ;;  %v9370_v2 = vcombine.low %v855_v50, %v859_v51 }
 0x20f   :  { %6895 = vmatpush2.bf16.msra.mxu0 %v9282_v7  ;;  %v723_v62 = vld [vmem:[#allocation2 + $0x1228] sm:$0xff] }
 0x210   :  { %6896 = vmatprep.subr.bf16.mxu0 %v9275_v9  ;;  %v847_v63 = vld [vmem:[#allocation2 + $0x1608] sm:$0xff]  ;;  %v9235_v3 = vcombine.high %v719_v60, %v723_v62  ;;  %v9234_v11 = vcombine.low %v719_v60, %v723_v62 }
 0x211   :  { %6936 = vmatpush2.bf16.msra.mxu1 %v9410_v6  ;;  %v851_v0 = vld [vmem:[#allocation2 + $0x1628] sm:$0xff] }
 0x212   :  { %6937 = vmatprep.subr.bf16.mxu1 %v9403_v38  ;;  %v9363_v5 = vcombine.high %v847_v63, %v851_v0  ;;  %v967_v7 = vld [vmem:[#allocation2 + $0x19c8] sm:$0xff]  ;;  %v9362_v10 = vcombine.low %v847_v63, %v851_v0 }
 0x213   :  { %6897 = vmatpush2.bf16.msra.mxu0 %v9274_v14  ;;  %v971_v6 = vld [vmem:[#allocation2 + $0x19e8] sm:$0xff] }
 0x214   :  { %6898 = vmatprep.subr.bf16.mxu0 %v9267_v21  ;;  %v1095_v9 = vld [vmem:[#allocation2 + $0x1dc8] sm:$0xff]  ;;  %v9483_v12 = vcombine.high %v967_v7, %v971_v6  ;;  %v9482_v24 = vcombine.low %v967_v7, %v971_v6 }
 0x215   :  { %6938 = vmatpush2.bf16.msra.mxu1 %v9402_v17  ;;  %v1099_v38 = vld [vmem:[#allocation2 + $0x1de8] sm:$0xff] }
 0x216   :  { %6939 = vmatprep.subr.bf16.mxu1 %v9395_v23  ;;  %v9611_v13 = vcombine.high %v1095_v9, %v1099_v38  ;;  %v959_v14 = vld [vmem:[#allocation2 + $0x1988] sm:$0xff]  ;;  %v9610_v25 = vcombine.low %v1095_v9, %v1099_v38 }
 0x217   :  { %6899 = vmatpush2.bf16.msra.mxu0 %v9266_v31  ;;  %v963_v17 = vld [vmem:[#allocation2 + $0x19a8] sm:$0xff] }
 0x218   :  { %6900 = vmatprep.subr.bf16.mxu0 %v9259_v34  ;;  %v1087_v21 = vld [vmem:[#allocation2 + $0x1d88] sm:$0xff]  ;;  %v9475_v26 = vcombine.high %v959_v14, %v963_v17  ;;  %v9474_v44 = vcombine.low %v959_v14, %v963_v17 }
 0x219   :  { %6940 = vmatpush2.bf16.msra.mxu1 %v9394_v33  ;;  %v1091_v23 = vld [vmem:[#allocation2 + $0x1da8] sm:$0xff] }
 0x21a   :  { %6941 = vmatprep.subr.bf16.mxu1 %v9387_v35  ;;  %v9603_v54 = vcombine.high %v1087_v21, %v1091_v23  ;;  %v951_v31 = vld [vmem:[#allocation2 + $0x1948] sm:$0xff] }
 0x21b   :  { %6901 = vmatpush2.bf16.msra.mxu0 %v9258_v45  ;;  %v955_v33 = vld [vmem:[#allocation2 + $0x1968] sm:$0xff] }
 0x21c   :  { %6902 = vmatprep.subr.bf16.mxu0 %v9251_v27  ;;  %v1079_v35 = vld [vmem:[#allocation2 + $0x1d48] sm:$0xff]  ;;  %v9467_v27 = vcombine.high %v951_v31, %v955_v33  ;;  %v9466_v62 = vcombine.low %v951_v31, %v955_v33 }
 0x21d   :  { %6942 = vmatpush2.bf16.msra.mxu1 %v9386_v30  ;;  %v1083_v42 = vld [vmem:[#allocation2 + $0x1d68] sm:$0xff]  ;;  %v9602_v30 = vcombine.low %v1087_v21, %v1091_v23 }
 0x21e   :  { %6943 = vmatprep.subr.bf16.mxu1 %v9379_v46  ;;  %v9595_v50 = vcombine.high %v1079_v35, %v1083_v42  ;;  %v943_v51 = vld [vmem:[#allocation2 + $0x1908] sm:$0xff] }
 0x21f   :  { %6903 = vmatpush2.bf16.msra.mxu0 %v9250_v41  ;;  %v947_v41 = vld [vmem:[#allocation2 + $0x1928] sm:$0xff] }
 0x220   :  { %6904 = vmatprep.subr.bf16.mxu0 %v9243_v56  ;;  %v1075_v56 = vld [vmem:[#allocation2 + $0x1d28] sm:$0xff]  ;;  %v9459_v0 = vcombine.high %v943_v51, %v947_v41  ;;  %v9458_v9 = vcombine.low %v943_v51, %v947_v41 }
 0x221   :  { %6944 = vmatpush2.bf16.msra.mxu1 %v9378_v52  ;;  %v1071_v52 = vld [vmem:[#allocation2 + $0x1d08] sm:$0xff] }
 0x222   :  { %6945 = vmatprep.subr.bf16.mxu1 %v9371_v57  ;;  %v1063_v7 = vld [vmem:[#allocation2 + $0x1cc8] sm:$0xff]  ;;  %v9586_v38 = vcombine.low %v1071_v52, %v1075_v56 }
 0x223   :  { %6905 = vmatpush2.bf16.msra.mxu0 %v9242_v1  ;;  %v1067_v6 = vld [vmem:[#allocation2 + $0x1ce8] sm:$0xff] }
 0x224   :  { %6906 = vmatprep.subr.bf16.mxu0 %v9235_v3  ;;  %v935_v3 = vld [vmem:[#allocation2 + $0x18c8] sm:$0xff]  ;;  %v9578_v23 = vcombine.low %v1063_v7, %v1067_v6 }
 0x225   :  { %6946 = vmatpush2.bf16.msra.mxu1 %v9370_v2  ;;  %v9587_v2 = vcombine.high %v1071_v52, %v1075_v56  ;;  %v1055_v14 = vld [vmem:[#allocation2 + $0x1c88] sm:$0xff] }
 0x226   :  { %6947 = vmatprep.subr.bf16.mxu1 %v9363_v5  ;;  %v939_v5 = vld [vmem:[#allocation2 + $0x18e8] sm:$0xff] }
 0x227   :  { %6907 = vmatpush2.bf16.msra.mxu0 %v9234_v11  ;;  %v9451_v11 = vcombine.high %v935_v3, %v939_v5  ;;  %v1059_v17 = vld [vmem:[#allocation2 + $0x1ca8] sm:$0xff]  ;;  %v9450_v21 = vcombine.low %v935_v3, %v939_v5 }
 0x228   :  { %6958 = vmatprep.subr.bf16.mxu0 %v9483_v12  ;;  %v927_v12 = vld [vmem:[#allocation2 + $0x1888] sm:$0xff] }
 0x229   :  { %6948 = vmatpush2.bf16.msra.mxu1 %v9362_v10  ;;  %v9579_v10 = vcombine.high %v1063_v7, %v1067_v6  ;;  %v1047_v31 = vld [vmem:[#allocation2 + $0x1c48] sm:$0xff] }
 0x22a   :  { %6999 = vmatprep.subr.bf16.mxu1 %v9611_v13  ;;  %v6664_v34 = vpop.f32.mrf.mxu0  ;;  %6909 = vmatmul.mubr.bf16.vlgmr.msra.gmra.mxu0 %v10366_v4  ;;  %v931_v13 = vld [vmem:[#allocation2 + $0x18a8] sm:$0xff] }
 0x22b   :  { %v6665_v37 = vadd.f32 %v6664_v34, %v10428_v36  ;;  %6959 = vmatpush1.bf16.msra.mxu0 %v9482_v24  ;;  %6990 = vmatprep.mubr.bf16.mxu0 %v10384_v15  ;;  %v9443_v24 = vcombine.high %v927_v12, %v931_v13  ;;  %v1051_v33 = vld [vmem:[#allocation2 + $0x1c68] sm:$0xff]  ;;  %v9442_v34 = vcombine.low %v927_v12, %v931_v13 }
 0x22c   :  { %v6705_v43 = vpop.f32.mrf.mxu1  ;;  %6950 = vmatmul.mubr.bf16.vlgmr.msra.gmra.mxu1 %v10375_v8  ;;  %v6666_v45 = vpop.f32.mrf.mxu0  ;;  %6960 = vmatprep.subr.bf16.mxu0 %v9475_v26  ;;  %v919_v26 = vld [vmem:[#allocation2 + $0x1848] sm:$0xff] }
 0x22d   :  { %7000 = vmatpush1.bf16.msra.mxu1 %v9610_v25  ;;  %v10438_v46 = vadd.f32 %v6705_v43, %v6665_v37  ;;  %v6667_v19 = vadd.f32 %v6666_v45, %v10433_v47  ;;  %7031 = vmatprep.mubr.bf16.mxu1 %v10389_v18  ;;  %v9594_v47 = vcombine.low %v1079_v35, %v1083_v42  ;;  %v911_v43 = vld [vmem:[#allocation2 + $0x1808] sm:$0xff] }
 0x22e   :  { %v6707_v22 = vpop.f32.mrf.mxu1  ;;  %7001 = vmatprep.subr.bf16.mxu1 %v9603_v54  ;;  %v6668_v36 = vpop.f32.mrf.mxu0  ;;  %v9571_v25 = vcombine.high %v1055_v14, %v1059_v17  ;;  %v923_v54 = vld [vmem:[#allocation2 + $0x1868] sm:$0xff]  ;;  %v9570_v35 = vcombine.low %v1055_v14, %v1059_v17  ;;  %v9563_v37 = vcombine.high %v1047_v31, %v1051_v33 }
 0x22f   :  { %v10443_v57 = vadd.f32 %v6707_v22, %v6667_v19  ;;  %6961 = vmatpush1.bf16.msra.mxu0 %v9474_v44  ;;  %v9435_v42 = vcombine.high %v919_v26, %v923_v54  ;;  %v915_v44 = vld [vmem:[#allocation2 + $0x1828] sm:$0xff]  ;;  %v9562_v19 = vcombine.low %v1047_v31, %v1051_v33 }
 0x230   :  { %v6709_v60 = vpop.f32.mrf.mxu1  ;;  %v6669_v63 = vpop.f32.mrf.mxu0  ;;  %6962 = vmatprep.subr.bf16.mxu0 %v9467_v27  ;;  %v1039_v45 = vld [vmem:[#allocation2 + $0x1c08] sm:$0xff]  ;;  %v9434_v27 = vcombine.low %v919_v26, %v923_v54  ;;  %v9427_v22 = vcombine.high %v911_v43, %v915_v44  ;;  %v9426_v56 = vcombine.low %v911_v43, %v915_v44 }
 0x231   :  { %7002 = vmatpush1.bf16.msra.mxu1 %v9602_v30  ;;  %v1043_v30 = vld [vmem:[#allocation2 + $0x1c28] sm:$0xff] }
 0x232   :  { %v6710_v1 = vpop.f32.mrf.mxu1  ;;  %7003 = vmatprep.subr.bf16.mxu1 %v9595_v50  ;;  %v9555_v50 = vcombine.high %v1039_v45, %v1043_v30  ;;  %v1031_v51 = vld [vmem:[#allocation2 + $0x1bc8] sm:$0xff]  ;;  %v9554_v60 = vcombine.low %v1039_v45, %v1043_v30 }
 0x233   :  { %6963 = vmatpush1.bf16.msra.mxu0 %v9466_v62  ;;  %v1035_v41 = vld [vmem:[#allocation2 + $0x1be8] sm:$0xff] }
 0x234   :  { %6964 = vmatprep.subr.bf16.mxu0 %v9459_v0  ;;  %v1159_v36 = vld [vmem:[#allocation2 + $0x1fc8] sm:$0xff]  ;;  %v9547_v62 = vcombine.high %v1031_v51, %v1035_v41  ;;  %v9546_v3 = vcombine.low %v1031_v51, %v1035_v41 }
 0x235   :  { %7004 = vmatpush1.bf16.msra.mxu1 %v9594_v47  ;;  %v1163_v52 = vld [vmem:[#allocation2 + $0x1fe8] sm:$0xff] }
 0x236   :  { %7005 = vmatprep.subr.bf16.mxu1 %v9587_v2  ;;  %v9675_v63 = vcombine.high %v1159_v36, %v1163_v52  ;;  %v1023_v47 = vld [vmem:[#allocation2 + $0x1b88] sm:$0xff]  ;;  %v9674_v5 = vcombine.low %v1159_v36, %v1163_v52 }
 0x237   :  { %6965 = vmatpush1.bf16.msra.mxu0 %v9458_v9  ;;  %v1027_v0 = vld [vmem:[#allocation2 + $0x1ba8] sm:$0xff] }
 0x238   :  { %6966 = vmatprep.subr.bf16.mxu0 %v9451_v11  ;;  %v1151_v1 = vld [vmem:[#allocation2 + $0x1f88] sm:$0xff]  ;;  %v9539_v7 = vcombine.high %v1023_v47, %v1027_v0  ;;  %v9538_v12 = vcombine.low %v1023_v47, %v1027_v0 }
 0x239   :  { %7006 = vmatpush1.bf16.msra.mxu1 %v9586_v38  ;;  %v1155_v2 = vld [vmem:[#allocation2 + $0x1fa8] sm:$0xff] }
 0x23a   :  { %7007 = vmatprep.subr.bf16.mxu1 %v9579_v10  ;;  %v9667_v6 = vcombine.high %v1151_v1, %v1155_v2  ;;  %v1015_v9 = vld [vmem:[#allocation2 + $0x1b48] sm:$0xff]  ;;  %v9666_v13 = vcombine.low %v1151_v1, %v1155_v2 }
 0x23b   :  { %6967 = vmatpush1.bf16.msra.mxu0 %v9450_v21  ;;  %v1019_v38 = vld [vmem:[#allocation2 + $0x1b68] sm:$0xff] }
 0x23c   :  { %6968 = vmatprep.subr.bf16.mxu0 %v9443_v24  ;;  %v1143_v11 = vld [vmem:[#allocation2 + $0x1f48] sm:$0xff]  ;;  %v9531_v14 = vcombine.high %v1015_v9, %v1019_v38  ;;  %v9530_v26 = vcombine.low %v1015_v9, %v1019_v38 }
 0x23d   :  { %7008 = vmatpush1.bf16.msra.mxu1 %v9578_v23  ;;  %v1147_v10 = vld [vmem:[#allocation2 + $0x1f68] sm:$0xff] }
 0x23e   :  { %7009 = vmatprep.subr.bf16.mxu1 %v9571_v25  ;;  %v9659_v17 = vcombine.high %v1143_v11, %v1147_v10  ;;  %v1007_v21 = vld [vmem:[#allocation2 + $0x1b08] sm:$0xff]  ;;  %v9658_v54 = vcombine.low %v1143_v11, %v1147_v10 }
 0x23f   :  { %6969 = vmatpush1.bf16.msra.mxu0 %v9442_v34  ;;  %v1011_v23 = vld [vmem:[#allocation2 + $0x1b28] sm:$0xff] }
 0x240   :  { %6970 = vmatprep.subr.bf16.mxu0 %v9435_v42  ;;  %v1135_v24 = vld [vmem:[#allocation2 + $0x1f08] sm:$0xff]  ;;  %v9523_v31 = vcombine.high %v1007_v21, %v1011_v23  ;;  %v9522_v43 = vcombine.low %v1007_v21, %v1011_v23  ;;  %v1178_v23 = vsub.s32 2, %v10395_v32 }
 0x241   :  { %7010 = vmatpush1.bf16.msra.mxu1 %v9570_v35  ;;  %v1139_v25 = vld [vmem:[#allocation2 + $0x1f28] sm:$0xff] }
 0x242   :  { %7011 = vmatprep.subr.bf16.mxu1 %v9563_v37  ;;  %v9651_v33 = vcombine.high %v1135_v24, %v1139_v25  ;;  %v999_v34 = vld [vmem:[#allocation2 + $0x1ac8] sm:$0xff]  ;;  %v9650_v44 = vcombine.low %v1135_v24, %v1139_v25 }
 0x243   :  { %6971 = vmatpush1.bf16.msra.mxu0 %v9434_v27  ;;  %v1003_v35 = vld [vmem:[#allocation2 + $0x1ae8] sm:$0xff] }
 0x244   :  { %6972 = vmatprep.subr.bf16.mxu0 %v9427_v22  ;;  %v1127_v42 = vld [vmem:[#allocation2 + $0x1ec8] sm:$0xff]  ;;  %v9515_v45 = vcombine.high %v999_v34, %v1003_v35  ;;  %v9514_v51 = vcombine.low %v999_v34, %v1003_v35  ;;  %v320_v34 = vld [vmem:[#allocation2 + $0x590] sm:$0xff] }
 0x245   :  { %7012 = vmatpush1.bf16.msra.mxu1 %v9562_v19  ;;  %v1131_v37 = vld [vmem:[#allocation2 + $0x1ee8] sm:$0xff]  ;;  %v324_v35 = vld [vmem:[#allocation2 + $0x5b0] sm:$0xff] }
 0x246   :  { %7013 = vmatprep.subr.bf16.mxu1 %v9555_v50  ;;  %v9643_v30 = vcombine.high %v1127_v42, %v1131_v37  ;;  %v991_v27 = vld [vmem:[#allocation2 + $0x1a88] sm:$0xff]  ;;  %v9642_v41 = vcombine.low %v1127_v42, %v1131_v37  ;;  %v10023_v42 = vld [vmem:[#allocation4] sm:$0xff] }
 0x247   :  { %6973 = vmatpush1.bf16.msra.mxu0 %v9426_v56  ;;  %v995_v19 = vld [vmem:[#allocation2 + $0x1aa8] sm:$0xff]  ;;  %v1179_v37 = vrot.slane %v10023_v42, %v1178_v23  ;;  %v168_v23 = vld [vmem:[#allocation2 + $0xd0] sm:$0xff] }
 0x248   :  { %6974 = vmatprep.subr.bf16.mxu0 %v9547_v62  ;;  %v1119_v22 = vld [vmem:[#allocation2 + $0x1e88] sm:$0xff]  ;;  %v9507_v36 = vcombine.high %v991_v27, %v995_v19  ;;  %v9506_v47 = vcombine.low %v991_v27, %v995_v19  ;;  %v8837_v27 = vcombine.high %v320_v34, %v324_v35  ;;  %v184_v19 = vld [vmem:[#allocation2 + $0x150] sm:$0xff] }
 0x249   :  { %7014 = vmatpush1.bf16.msra.mxu1 %v9554_v60  ;;  %v1123_v50 = vld [vmem:[#allocation2 + $0x1ea8] sm:$0xff] }
 0x24a   :  { %7015 = vmatprep.subr.bf16.mxu1 %v9675_v63  ;;  %v9635_v52 = vcombine.high %v1119_v22, %v1123_v50  ;;  %v983_v56 = vld [vmem:[#allocation2 + $0x1a48] sm:$0xff]  ;;  %v9634_v0 = vcombine.low %v1119_v22, %v1123_v50  ;;  %v188_v22 = vld [vmem:[#allocation2 + $0x170] sm:$0xff] }
 0x24b   :  { %6975 = vmatpush2.bf16.msra.mxu0 %v9546_v3  ;;  %v987_v60 = vld [vmem:[#allocation2 + $0x1a68] sm:$0xff] }
 0x24c   :  { %6976 = vmatprep.subr.bf16.mxu0 %v9539_v7  ;;  %v1111_v62 = vld [vmem:[#allocation2 + $0x1e48] sm:$0xff]  ;;  %v9499_v1 = vcombine.high %v983_v56, %v987_v60  ;;  %v9498_v9 = vcombine.low %v983_v56, %v987_v60 }
 0x24d   :  { %7016 = vmatpush2.bf16.msra.mxu1 %v9674_v5  ;;  %v1115_v63 = vld [vmem:[#allocation2 + $0x1e68] sm:$0xff] }
 0x24e   :  { %7017 = vmatprep.subr.bf16.mxu1 %v9667_v6  ;;  %v9627_v2 = vcombine.high %v1111_v62, %v1115_v63  ;;  %v975_v3 = vld [vmem:[#allocation2 + $0x1a08] sm:$0xff]  ;;  %v9626_v38 = vcombine.low %v1111_v62, %v1115_v63  ;;  %v8836_v62 = vcombine.low %v320_v34, %v324_v35  ;;  %v8701_v63 = vcombine.high %v184_v19, %v188_v22  ;;  %v160_v35 = vld [vmem:[#allocation2 + $0x90] sm:$0xff] }
 0x24f   :  { %6977 = vmatpush2.bf16.msra.mxu0 %v9538_v12  ;;  %v979_v5 = vld [vmem:[#allocation2 + $0x1a28] sm:$0xff]  ;;  %v200_v12 = vld [vmem:[#allocation2 + $0x1d0] sm:$0xff] }
 0x250   :  { %6978 = vmatprep.subr.bf16.mxu0 %v9531_v14  ;;  %v1103_v7 = vld [vmem:[#allocation2 + $0x1e08] sm:$0xff]  ;;  %v9491_v11 = vcombine.high %v975_v3, %v979_v5  ;;  %v328_v14 = vld [vmem:[#allocation2 + $0x5d0] sm:$0xff]  ;;  %v9490_v21 = vcombine.low %v975_v3, %v979_v5 }
 0x251   :  { %7018 = vmatpush2.bf16.msra.mxu1 %v9666_v13  ;;  %v1107_v6 = vld [vmem:[#allocation2 + $0x1e28] sm:$0xff]  ;;  %v204_v13 = vld [vmem:[#allocation2 + $0x1f0] sm:$0xff] }
 0x252   :  { %7019 = vmatprep.subr.bf16.mxu1 %v9659_v17  ;;  %v9619_v10 = vcombine.high %v1103_v7, %v1107_v6  ;;  %v332_v17 = vld [vmem:[#allocation2 + $0x5f0] sm:$0xff]  ;;  %v9618_v24 = vcombine.low %v1103_v7, %v1107_v6  ;;  %v8717_v25 = vcombine.high %v200_v12, %v204_v13 }
 0x253   :  { %6979 = vmatpush2.bf16.msra.mxu0 %v9530_v26  ;;  %v8845_v26 = vcombine.high %v328_v14, %v332_v17  ;;  %v176_v3 = vld [vmem:[#allocation2 + $0x110] sm:$0xff] }
 0x254   :  { %6980 = vmatprep.subr.bf16.mxu0 %v9523_v31  ;;  %v192_v31 = vld [vmem:[#allocation2 + $0x190] sm:$0xff] }
 0x255   :  { %7020 = vmatpush2.bf16.msra.mxu1 %v9658_v54  ;;  %v1182_v54 = vsub.s32 3, %v10395_v32  ;;  %v180_v5 = vld [vmem:[#allocation2 + $0x130] sm:$0xff] }
 0x256   :  { %7021 = vmatprep.subr.bf16.mxu1 %v9651_v33  ;;  %v196_v33 = vld [vmem:[#allocation2 + $0x1b0] sm:$0xff] }
 0x257   :  { %6981 = vmatpush2.bf16.msra.mxu0 %v9522_v43  ;;  %v8716_v43 = vcombine.low %v200_v12, %v204_v13  ;;  %v8708_v56 = vcombine.low %v192_v31, %v196_v33  ;;  %v304_v6 = vld [vmem:[#allocation2 + $0x510] sm:$0xff] }
 0x258   :  { %6982 = vmatprep.subr.bf16.mxu0 %v9515_v45  ;;  %v8709_v45 = vcombine.high %v192_v31, %v196_v33 }
 0x259   :  { %7022 = vmatpush2.bf16.msra.mxu1 %v9650_v44  ;;  %v8844_v44 = vcombine.low %v328_v14, %v332_v17  ;;  %v8693_v14 = vcombine.high %v176_v3, %v180_v5 }
 0x25a   :  { %7023 = vmatprep.subr.bf16.mxu1 %v9643_v30  ;;  %v1183_v30 = vrot.slane %v10023_v42, %v1182_v54  ;;  %v8692_v54 = vcombine.low %v176_v3, %v180_v5  ;;  %v164_v42 = vld [vmem:[#allocation2 + $0xb0] sm:$0xff] }
 0x25b   :  { %6983 = vmatpush2.bf16.msra.mxu0 %v9514_v51  ;;  %v312_v51 = vld [vmem:[#allocation2 + $0x550] sm:$0xff] }
 0x25c   :  { %6984 = vmatprep.subr.bf16.mxu0 %v9507_v36 }
 0x25d   :  { %7024 = vmatpush2.bf16.msra.mxu1 %v9642_v41  ;;  %v316_v41 = vld [vmem:[#allocation2 + $0x570] sm:$0xff] }
 0x25e   :  { %7025 = vmatprep.subr.bf16.mxu1 %v9635_v52  ;;  %v8828_v13 = vcombine.low %v312_v51, %v316_v41 }
 0x25f   :  { %6985 = vmatpush2.bf16.msra.mxu0 %v9506_v47 }
 0x260   :  { %6986 = vmatprep.subr.bf16.mxu0 %v9499_v1 }
 0x261   :  { %7026 = vmatpush2.bf16.msra.mxu1 %v9634_v0 }
 0x262   :  { %7027 = vmatprep.subr.bf16.mxu1 %v9627_v2  ;;  %v8829_v2 = vcombine.high %v312_v51, %v316_v41  ;;  %v284_v51 = vld [vmem:[#allocation2 + $0x470] sm:$0xff]  ;;  %v8676_v41 = vcombine.low %v160_v35, %v164_v42 }
 0x263   :  { %6987 = vmatpush2.bf16.msra.mxu0 %v9498_v9  ;;  %v308_v9 = vld [vmem:[#allocation2 + $0x530] sm:$0xff] }
 0x264   :  { %6988 = vmatprep.subr.bf16.mxu0 %v9491_v11  ;;  %v8820_v31 = vcombine.low %v304_v6, %v308_v9 }
 0x265   :  { %7028 = vmatpush2.bf16.msra.mxu1 %v9626_v38 }
 0x266   :  { %7029 = vmatprep.subr.bf16.mxu1 %v9619_v10  ;;  %v8700_v10 = vcombine.low %v184_v19, %v188_v22  ;;  %v152_v19 = vld [vmem:[#allocation2 + $0x50] sm:$0xff] }
 0x267   :  { %6989 = vmatpush2.bf16.msra.mxu0 %v9490_v21  ;;  %v8821_v21 = vcombine.high %v304_v6, %v308_v9  ;;  %v156_v22 = vld [vmem:[#allocation2 + $0x70] sm:$0xff] }
 0x268   :  { %7040 = vmatprep.subr.bf16.mxu0 %v8717_v25  ;;  %v296_v25 = vld [vmem:[#allocation2 + $0x4d0] sm:$0xff] }
 0x269   :  { %7030 = vmatpush2.bf16.msra.mxu1 %v9618_v24  ;;  %v172_v24 = vld [vmem:[#allocation2 + $0xf0] sm:$0xff] }
 0x26a   :  { %7081 = vmatprep.subr.bf16.mxu1 %v8845_v26  ;;  %v6746_v50 = vpop.f32.mrf.mxu0  ;;  %6991 = vmatmul.mubr.bf16.vlgmr.msra.gmra.mxu0 %v10401_v55  ;;  %v300_v26 = vld [vmem:[#allocation2 + $0x4f0] sm:$0xff]  ;;  %v8685_v33 = vcombine.high %v168_v23, %v172_v24 }
 0x26b   :  { %v6747_v36 = vadd.f32 %v6746_v50, %v1179_v37  ;;  %7041 = vmatpush1.bf16.msra.mxu0 %v8716_v43  ;;  %7072 = vmatprep.mubr.bf16.mxu0 %v10296_v58  ;;  %v8813_v34 = vcombine.high %v296_v25, %v300_v26  ;;  %v288_v37 = vld [vmem:[#allocation2 + $0x490] sm:$0xff] }
 0x26c   :  { %v6787_v52 = vpop.f32.mrf.mxu1  ;;  %7032 = vmatmul.mubr.bf16.vlgmr.msra.gmra.mxu1 %v10405_v61  ;;  %v6748_v60 = vpop.f32.mrf.mxu0  ;;  %7042 = vmatprep.subr.bf16.mxu0 %v8709_v45  ;;  %v292_v43 = vld [vmem:[#allocation2 + $0x4b0] sm:$0xff]  ;;  %v8812_v45 = vcombine.low %v296_v25, %v300_v26 }
 0x26d   :  { %7082 = vmatpush1.bf16.msra.mxu1 %v8844_v44  ;;  %v10449_v47 = vadd.f32 %v6787_v52, %v6747_v36  ;;  %v6749_v0 = vadd.f32 %v6748_v60, %v1183_v30  ;;  %7113 = vmatprep.mubr.bf16.mxu1 %v10300_v59  ;;  %v8684_v44 = vcombine.low %v168_v23, %v172_v24  ;;  %v280_v50 = vld [vmem:[#allocation2 + $0x450] sm:$0xff] }
 0x26e   :  { %v6789_v1 = vpop.f32.mrf.mxu1  ;;  %7083 = vmatprep.subr.bf16.mxu1 %v8837_v27  ;;  %v6750_v7 = vpop.f32.mrf.mxu0  ;;  %v8677_v30 = vcombine.high %v160_v35, %v164_v42  ;;  %v8805_v27 = vcombine.high %v288_v37, %v292_v43  ;;  %v8804_v36 = vcombine.low %v288_v37, %v292_v43  ;;  %v8669_v52 = vcombine.high %v152_v19, %v156_v22  ;;  %v144_v60 = vld [vmem:[#allocation2 + $0x10] sm:$0xff] }
 0x26f   :  { %v10453_v38 = vadd.f32 %v6789_v1, %v6749_v0  ;;  %7043 = vmatpush1.bf16.msra.mxu0 %v8708_v56  ;;  %v8797_v56 = vcombine.high %v280_v50, %v284_v51  ;;  %v276_v0 = vld [vmem:[#allocation2 + $0x430] sm:$0xff]  ;;  %v8668_v1 = vcombine.low %v152_v19, %v156_v22 }
 0x270   :  { %v6791_v11 = vpop.f32.mrf.mxu1  ;;  %v6751_v12 = vpop.f32.mrf.mxu0  ;;  %7044 = vmatprep.subr.bf16.mxu0 %v8701_v63  ;;  %v272_v63 = vld [vmem:[#allocation2 + $0x410] sm:$0xff] }
 0x271   :  { %7084 = vmatpush1.bf16.msra.mxu1 %v8836_v62  ;;  %v148_v62 = vld [vmem:[#allocation2 + $0x30] sm:$0xff]  ;;  %v8789_v5 = vcombine.high %v272_v63, %v276_v0  ;;  %v8788_v12 = vcombine.low %v272_v63, %v276_v0 }
 0x272   :  { %v6792_v17 = vpop.f32.mrf.mxu1  ;;  %7085 = vmatprep.subr.bf16.mxu1 %v8829_v2  ;;  %v8796_v2 = vcombine.low %v280_v50, %v284_v51  ;;  %v8661_v3 = vcombine.high %v144_v60, %v148_v62  ;;  %v264_v7 = vld [vmem:[#allocation2 + $0x3d0] sm:$0xff] }
 0x273   :  { %7045 = vmatpush1.bf16.msra.mxu0 %v8700_v10  ;;  %v268_v6 = vld [vmem:[#allocation2 + $0x3f0] sm:$0xff]  ;;  %v8660_v10 = vcombine.low %v144_v60, %v148_v62 }
 0x274   :  { %7046 = vmatprep.subr.bf16.mxu0 %v8693_v14  ;;  %v392_v9 = vld [vmem:[#allocation2 + $0x7d0] sm:$0xff]  ;;  %v8780_v25 = vcombine.low %v264_v7, %v268_v6 }
 0x275   :  { %7086 = vmatpush1.bf16.msra.mxu1 %v8828_v13  ;;  %v396_v11 = vld [vmem:[#allocation2 + $0x7f0] sm:$0xff]  ;;  %v8781_v13 = vcombine.high %v264_v7, %v268_v6 }
 0x276   :  { %7087 = vmatprep.subr.bf16.mxu1 %v8821_v21  ;;  %v8909_v14 = vcombine.high %v392_v9, %v396_v11  ;;  %v256_v17 = vld [vmem:[#allocation2 + $0x390] sm:$0xff]  ;;  %v8908_v26 = vcombine.low %v392_v9, %v396_v11 }
 0x277   :  { %7047 = vmatpush1.bf16.msra.mxu0 %v8692_v54  ;;  %v260_v21 = vld [vmem:[#allocation2 + $0x3b0] sm:$0xff] }
 0x278   :  { %7048 = vmatprep.subr.bf16.mxu0 %v8685_v33  ;;  %v384_v23 = vld [vmem:[#allocation2 + $0x790] sm:$0xff]  ;;  %v8773_v54 = vcombine.high %v256_v17, %v260_v21  ;;  %v8772_v37 = vcombine.low %v256_v17, %v260_v21 }
 0x279   :  { %7088 = vmatpush1.bf16.msra.mxu1 %v8820_v31  ;;  %v388_v24 = vld [vmem:[#allocation2 + $0x7b0] sm:$0xff] }
 0x27a   :  { %7089 = vmatprep.subr.bf16.mxu1 %v8813_v34  ;;  %v8901_v31 = vcombine.high %v384_v23, %v388_v24  ;;  %v248_v33 = vld [vmem:[#allocation2 + $0x350] sm:$0xff]  ;;  %v8900_v43 = vcombine.low %v384_v23, %v388_v24 }
 0x27b   :  { %7049 = vmatpush1.bf16.msra.mxu0 %v8684_v44  ;;  %v252_v34 = vld [vmem:[#allocation2 + $0x370] sm:$0xff] }
 0x27c   :  { %7050 = vmatprep.subr.bf16.mxu0 %v8677_v30  ;;  %v376_v35 = vld [vmem:[#allocation2 + $0x750] sm:$0xff]  ;;  %v8765_v44 = vcombine.high %v248_v33, %v252_v34  ;;  %v8764_v50 = vcombine.low %v248_v33, %v252_v34 }
 0x27d   :  { %7090 = vmatpush1.bf16.msra.mxu1 %v8812_v45  ;;  %v380_v42 = vld [vmem:[#allocation2 + $0x770] sm:$0xff] }
 0x27e   :  { %7091 = vmatprep.subr.bf16.mxu1 %v8805_v27  ;;  %v8893_v45 = vcombine.high %v376_v35, %v380_v42  ;;  %v240_v30 = vld [vmem:[#allocation2 + $0x310] sm:$0xff]  ;;  %v8892_v51 = vcombine.low %v376_v35, %v380_v42 }
 0x27f   :  { %7051 = vmatpush1.bf16.msra.mxu0 %v8676_v41  ;;  %v244_v27 = vld [vmem:[#allocation2 + $0x330] sm:$0xff] }
 0x280   :  { %7052 = vmatprep.subr.bf16.mxu0 %v8669_v52  ;;  %v368_v19 = vld [vmem:[#allocation2 + $0x710] sm:$0xff]  ;;  %v8757_v41 = vcombine.high %v240_v30, %v244_v27  ;;  %v8756_v63 = vcombine.low %v240_v30, %v244_v27 }
 0x281   :  { %7092 = vmatpush1.bf16.msra.mxu1 %v8804_v36  ;;  %v372_v22 = vld [vmem:[#allocation2 + $0x730] sm:$0xff] }
 0x282   :  { %7093 = vmatprep.subr.bf16.mxu1 %v8797_v56  ;;  %v8885_v36 = vcombine.high %v368_v19, %v372_v22  ;;  %v232_v52 = vld [vmem:[#allocation2 + $0x2d0] sm:$0xff]  ;;  %v8884_v0 = vcombine.low %v368_v19, %v372_v22 }
 0x283   :  { %7053 = vmatpush1.bf16.msra.mxu0 %v8668_v1  ;;  %v236_v56 = vld [vmem:[#allocation2 + $0x2f0] sm:$0xff] }
 0x284   :  { %7054 = vmatprep.subr.bf16.mxu0 %v8661_v3  ;;  %v360_v60 = vld [vmem:[#allocation2 + $0x6d0] sm:$0xff]  ;;  %v8749_v1 = vcombine.high %v232_v52, %v236_v56  ;;  %v8748_v9 = vcombine.low %v232_v52, %v236_v56 }
 0x285   :  { %7094 = vmatpush1.bf16.msra.mxu1 %v8796_v2  ;;  %v364_v62 = vld [vmem:[#allocation2 + $0x6f0] sm:$0xff] }
 0x286   :  { %7095 = vmatprep.subr.bf16.mxu1 %v8789_v5  ;;  %v8877_v2 = vcombine.high %v360_v60, %v364_v62  ;;  %v224_v3 = vld [vmem:[#allocation2 + $0x290] sm:$0xff]  ;;  %v8876_v11 = vcombine.low %v360_v60, %v364_v62 }
 0x287   :  { %7055 = vmatpush1.bf16.msra.mxu0 %v8660_v10  ;;  %v228_v5 = vld [vmem:[#allocation2 + $0x2b0] sm:$0xff] }
 0x288   :  { %7056 = vmatprep.subr.bf16.mxu0 %v8781_v13  ;;  %v352_v7 = vld [vmem:[#allocation2 + $0x690] sm:$0xff]  ;;  %v8741_v10 = vcombine.high %v224_v3, %v228_v5  ;;  %v8740_v23 = vcombine.low %v224_v3, %v228_v5 }
 0x289   :  { %7096 = vmatpush1.bf16.msra.mxu1 %v8788_v12  ;;  %v356_v6 = vld [vmem:[#allocation2 + $0x6b0] sm:$0xff] }
 0x28a   :  { %7097 = vmatprep.subr.bf16.mxu1 %v8909_v14  ;;  %v8869_v12 = vcombine.high %v352_v7, %v356_v6  ;;  %v216_v13 = vld [vmem:[#allocation2 + $0x250] sm:$0xff]  ;;  %v8868_v24 = vcombine.low %v352_v7, %v356_v6 }
 0x28b   :  { %7057 = vmatpush2.bf16.msra.mxu0 %v8780_v25  ;;  %v220_v14 = vld [vmem:[#allocation2 + $0x270] sm:$0xff] }
 0x28c   :  { %7058 = vmatprep.subr.bf16.mxu0 %v8773_v54  ;;  %v344_v17 = vld [vmem:[#allocation2 + $0x650] sm:$0xff]  ;;  %v8733_v25 = vcombine.high %v216_v13, %v220_v14  ;;  %v8732_v35 = vcombine.low %v216_v13, %v220_v14 }
 0x28d   :  { %7098 = vmatpush2.bf16.msra.mxu1 %v8908_v26  ;;  %v348_v21 = vld [vmem:[#allocation2 + $0x670] sm:$0xff] }
 0x28e   :  { %7099 = vmatprep.subr.bf16.mxu1 %v8901_v31  ;;  %v8861_v26 = vcombine.high %v344_v17, %v348_v21  ;;  %v208_v54 = vld [vmem:[#allocation2 + $0x210] sm:$0xff]  ;;  %v8860_v42 = vcombine.low %v344_v17, %v348_v21 }
 0x28f   :  { %7059 = vmatpush2.bf16.msra.mxu0 %v8772_v37  ;;  %v212_v31 = vld [vmem:[#allocation2 + $0x230] sm:$0xff] }
 0x290   :  { %7060 = vmatprep.subr.bf16.mxu0 %v8765_v44  ;;  %v336_v33 = vld [vmem:[#allocation2 + $0x610] sm:$0xff]  ;;  %v8725_v37 = vcombine.high %v208_v54, %v212_v31  ;;  %v8724_v19 = vcombine.low %v208_v54, %v212_v31 }
 0x291   :  { %7100 = vmatpush2.bf16.msra.mxu1 %v8900_v43  ;;  %v340_v34 = vld [vmem:[#allocation2 + $0x630] sm:$0xff] }
 0x292   :  { %7101 = vmatprep.subr.bf16.mxu1 %v8893_v45  ;;  %v8853_v43 = vcombine.high %v336_v33, %v340_v34  ;;  %v456_v44 = vld [vmem:[#allocation2 + $0x9d0] sm:$0xff]  ;;  %v8852_v22 = vcombine.low %v336_v33, %v340_v34 }
 0x293   :  { %7061 = vmatpush2.bf16.msra.mxu0 %v8764_v50  ;;  %v460_v45 = vld [vmem:[#allocation2 + $0x9f0] sm:$0xff] }
 0x294   :  { %7062 = vmatprep.subr.bf16.mxu0 %v8757_v41  ;;  %v584_v30 = vld [vmem:[#allocation2 + $0xdd0] sm:$0xff]  ;;  %v8973_v50 = vcombine.high %v456_v44, %v460_v45  ;;  %v8972_v60 = vcombine.low %v456_v44, %v460_v45 }
 0x295   :  { %7102 = vmatpush2.bf16.msra.mxu1 %v8892_v51  ;;  %v588_v27 = vld [vmem:[#allocation2 + $0xdf0] sm:$0xff] }
 0x296   :  { %7103 = vmatprep.subr.bf16.mxu1 %v8885_v36  ;;  %v9101_v51 = vcombine.high %v584_v30, %v588_v27  ;;  %v448_v41 = vld [vmem:[#allocation2 + $0x990] sm:$0xff]  ;;  %v9100_v62 = vcombine.low %v584_v30, %v588_v27 }
 0x297   :  { %7063 = vmatpush2.bf16.msra.mxu0 %v8756_v63  ;;  %v452_v36 = vld [vmem:[#allocation2 + $0x9b0] sm:$0xff] }
 0x298   :  { %7064 = vmatprep.subr.bf16.mxu0 %v8749_v1  ;;  %v576_v52 = vld [vmem:[#allocation2 + $0xd90] sm:$0xff]  ;;  %v8965_v63 = vcombine.high %v448_v41, %v452_v36 }
 0x299   :  { %7104 = vmatpush2.bf16.msra.mxu1 %v8884_v0  ;;  %v580_v56 = vld [vmem:[#allocation2 + $0xdb0] sm:$0xff] }
 0x29a   :  { %7105 = vmatprep.subr.bf16.mxu1 %v8877_v2  ;;  %v9093_v0 = vcombine.high %v576_v52, %v580_v56  ;;  %v440_v1 = vld [vmem:[#allocation2 + $0x950] sm:$0xff] }
 0x29b   :  { %7065 = vmatpush2.bf16.msra.mxu0 %v8748_v9  ;;  %v444_v2 = vld [vmem:[#allocation2 + $0x970] sm:$0xff] }
 0x29c   :  { %7066 = vmatprep.subr.bf16.mxu0 %v8741_v10  ;;  %v568_v5 = vld [vmem:[#allocation2 + $0xd50] sm:$0xff]  ;;  %v8957_v13 = vcombine.high %v440_v1, %v444_v2  ;;  %v8956_v34 = vcombine.low %v440_v1, %v444_v2 }
 0x29d   :  { %7106 = vmatpush2.bf16.msra.mxu1 %v8876_v11  ;;  %v572_v7 = vld [vmem:[#allocation2 + $0xd70] sm:$0xff]  ;;  %v8964_v11 = vcombine.low %v448_v41, %v452_v36 }
 0x29e   :  { %7107 = vmatprep.subr.bf16.mxu1 %v8869_v12  ;;  %v9092_v12 = vcombine.low %v576_v52, %v580_v56  ;;  %v564_v54 = vld [vmem:[#allocation2 + $0xd30] sm:$0xff] }
 0x29f   :  { %7067 = vmatpush2.bf16.msra.mxu0 %v8740_v23  ;;  %v9085_v23 = vcombine.high %v568_v5, %v572_v7  ;;  %v424_v44 = vld [vmem:[#allocation2 + $0x8d0] sm:$0xff] }
 0x2a0   :  { %7068 = vmatprep.subr.bf16.mxu0 %v8733_v25  ;;  %v436_v25 = vld [vmem:[#allocation2 + $0x930] sm:$0xff] }
 0x2a1   :  { %7108 = vmatpush2.bf16.msra.mxu1 %v8868_v24  ;;  %v432_v24 = vld [vmem:[#allocation2 + $0x910] sm:$0xff] }
 0x2a2   :  { %7109 = vmatprep.subr.bf16.mxu1 %v8861_v26  ;;  %v560_v26 = vld [vmem:[#allocation2 + $0xd10] sm:$0xff] }
 0x2a3   :  { %7069 = vmatpush2.bf16.msra.mxu0 %v8732_v35  ;;  %v428_v45 = vld [vmem:[#allocation2 + $0x8f0] sm:$0xff] }
 0x2a4   :  { %7070 = vmatprep.subr.bf16.mxu0 %v8725_v37  ;;  %v552_v30 = vld [vmem:[#allocation2 + $0xcd0] sm:$0xff] }
 0x2a5   :  { %7110 = vmatpush2.bf16.msra.mxu1 %v8860_v42  ;;  %v8949_v42 = vcombine.high %v432_v24, %v436_v25  ;;  %v556_v27 = vld [vmem:[#allocation2 + $0xcf0] sm:$0xff] }
 0x2a6   :  { %7111 = vmatprep.subr.bf16.mxu1 %v8853_v43  ;;  %v9077_v43 = vcombine.high %v560_v26, %v564_v54  ;;  %v416_v41 = vld [vmem:[#allocation2 + $0x890] sm:$0xff] }
 0x2a7   :  { %7071 = vmatpush2.bf16.msra.mxu0 %v8724_v19  ;;  %v8948_v19 = vcombine.low %v432_v24, %v436_v25  ;;  %v420_v36 = vld [vmem:[#allocation2 + $0x8b0] sm:$0xff] }
 0x2a8   :  { %7122 = vmatprep.subr.bf16.mxu0 %v8973_v50  ;;  %v8941_v50 = vcombine.high %v424_v44, %v428_v45  ;;  %v544_v52 = vld [vmem:[#allocation2 + $0xc90] sm:$0xff] }
 0x2a9   :  { %7112 = vmatpush2.bf16.msra.mxu1 %v8852_v22  ;;  %v9076_v22 = vcombine.low %v560_v26, %v564_v54  ;;  %v548_v56 = vld [vmem:[#allocation2 + $0xcb0] sm:$0xff] }
 0x2aa   :  { %7163 = vmatprep.subr.bf16.mxu1 %v9101_v51  ;;  %v6828_v3 = vpop.f32.mrf.mxu0  ;;  %7073 = vmatmul.mubr.bf16.vlgmr.msra.gmra.mxu0 %v10306_v16  ;;  %v9069_v51 = vcombine.high %v552_v30, %v556_v27  ;;  %v408_v1 = vld [vmem:[#allocation2 + $0x850] sm:$0xff] }
 0x2ab   :  { %v6829_v6 = vadd.f32 %v6828_v3, %v10449_v47  ;;  %7123 = vmatpush1.bf16.msra.mxu0 %v8972_v60  ;;  %7154 = vmatprep.mubr.bf16.mxu0 %v10324_v28  ;;  %v8940_v60 = vcombine.low %v424_v44, %v428_v45  ;;  %v412_v2 = vld [vmem:[#allocation2 + $0x870] sm:$0xff] }
 0x2ac   :  { %v6869_v9 = vpop.f32.mrf.mxu1  ;;  %7114 = vmatmul.mubr.bf16.vlgmr.msra.gmra.mxu1 %v10315_v20  ;;  %v6830_v10 = vpop.f32.mrf.mxu0  ;;  %7124 = vmatprep.subr.bf16.mxu0 %v8965_v63  ;;  %v8933_v63 = vcombine.high %v416_v41, %v420_v36  ;;  %v536_v3 = vld [vmem:[#allocation2 + $0xc50] sm:$0xff] }
 0x2ad   :  { %7164 = vmatpush1.bf16.msra.mxu1 %v9100_v62  ;;  %v10458_v14 = vadd.f32 %v6869_v9, %v6829_v6  ;;  %v6831_v17 = vadd.f32 %v6830_v10, %v10453_v38  ;;  %7195 = vmatprep.mubr.bf16.mxu1 %v10329_v29  ;;  %v9084_v38 = vcombine.low %v568_v5, %v572_v7  ;;  %v540_v5 = vld [vmem:[#allocation2 + $0xc70] sm:$0xff] }
 0x2ae   :  { %v6871_v21 = vpop.f32.mrf.mxu1  ;;  %7165 = vmatprep.subr.bf16.mxu1 %v9093_v0  ;;  %v6832_v47 = vpop.f32.mrf.mxu0  ;;  %v9068_v62 = vcombine.low %v552_v30, %v556_v27  ;;  %v9061_v0 = vcombine.high %v544_v52, %v548_v56  ;;  %v8932_v7 = vcombine.low %v416_v41, %v420_v36  ;;  %v9060_v6 = vcombine.low %v544_v52, %v548_v56  ;;  %v400_v10 = vld [vmem:[#allocation2 + $0x810] sm:$0xff] }
 0x2af   :  { %v10463_v31 = vadd.f32 %v6871_v21, %v6831_v17  ;;  %7125 = vmatpush1.bf16.msra.mxu0 %v8964_v11  ;;  %v8925_v9 = vcombine.high %v408_v1, %v412_v2  ;;  %v9053_v11 = vcombine.high %v536_v3, %v540_v5  ;;  %v532_v17 = vld [vmem:[#allocation2 + $0xc30] sm:$0xff]  ;;  %v8924_v21 = vcombine.low %v408_v1, %v412_v2 }
 0x2b0   :  { %v6873_v33 = vpop.f32.mrf.mxu1  ;;  %v6833_v35 = vpop.f32.mrf.mxu0  ;;  %7126 = vmatprep.subr.bf16.mxu0 %v8957_v13  ;;  %v528_v13 = vld [vmem:[#allocation2 + $0xc10] sm:$0xff] }
 0x2b1   :  { %7166 = vmatpush1.bf16.msra.mxu1 %v9092_v12  ;;  %v404_v12 = vld [vmem:[#allocation2 + $0x830] sm:$0xff]  ;;  %v9045_v25 = vcombine.high %v528_v13, %v532_v17  ;;  %v9044_v35 = vcombine.low %v528_v13, %v532_v17 }
 0x2b2   :  { %v6874_v37 = vpop.f32.mrf.mxu1  ;;  %7167 = vmatprep.subr.bf16.mxu1 %v9085_v23  ;;  %v9052_v23 = vcombine.low %v536_v3, %v540_v5  ;;  %v8917_v24 = vcombine.high %v400_v10, %v404_v12  ;;  %v520_v47 = vld [vmem:[#allocation2 + $0xbd0] sm:$0xff] }
 0x2b3   :  { %7127 = vmatpush1.bf16.msra.mxu0 %v8956_v34  ;;  %v524_v26 = vld [vmem:[#allocation2 + $0xbf0] sm:$0xff]  ;;  %v8916_v34 = vcombine.low %v400_v10, %v404_v12 }
 0x2b4   :  { %7128 = vmatprep.subr.bf16.mxu0 %v8949_v42  ;;  %v648_v54 = vld [vmem:[#allocation2 + $0xfd0] sm:$0xff]  ;;  %v9036_v30 = vcombine.low %v520_v47, %v524_v26 }
 0x2b5   :  { %7168 = vmatpush1.bf16.msra.mxu1 %v9084_v38  ;;  %v652_v33 = vld [vmem:[#allocation2 + $0xff0] sm:$0xff]  ;;  %v9037_v38 = vcombine.high %v520_v47, %v524_v26 }
 0x2b6   :  { %7169 = vmatprep.subr.bf16.mxu1 %v9077_v43  ;;  %v9165_v42 = vcombine.high %v648_v54, %v652_v33  ;;  %v512_v37 = vld [vmem:[#allocation2 + $0xb90] sm:$0xff]  ;;  %v9164_v27 = vcombine.low %v648_v54, %v652_v33 }
 0x2b7   :  { %7129 = vmatpush1.bf16.msra.mxu0 %v8948_v19  ;;  %v516_v43 = vld [vmem:[#allocation2 + $0xbb0] sm:$0xff] }
 0x2b8   :  { %7130 = vmatprep.subr.bf16.mxu0 %v8941_v50  ;;  %v640_v44 = vld [vmem:[#allocation2 + $0xf90] sm:$0xff]  ;;  %v9029_v19 = vcombine.high %v512_v37, %v516_v43  ;;  %v9028_v52 = vcombine.low %v512_v37, %v516_v43 }
 0x2b9   :  { %7170 = vmatpush1.bf16.msra.mxu1 %v9076_v22  ;;  %v644_v45 = vld [vmem:[#allocation2 + $0xfb0] sm:$0xff] }
 0x2ba   :  { %7171 = vmatprep.subr.bf16.mxu1 %v9069_v51  ;;  %v9157_v22 = vcombine.high %v640_v44, %v644_v45  ;;  %v504_v50 = vld [vmem:[#allocation2 + $0xb50] sm:$0xff]  ;;  %v9156_v56 = vcombine.low %v640_v44, %v644_v45 }
 0x2bb   :  { %7131 = vmatpush1.bf16.msra.mxu0 %v8940_v60  ;;  %v508_v51 = vld [vmem:[#allocation2 + $0xb70] sm:$0xff] }
 0x2bc   :  { %7132 = vmatprep.subr.bf16.mxu0 %v8933_v63  ;;  %v632_v41 = vld [vmem:[#allocation2 + $0xf50] sm:$0xff]  ;;  %v9021_v60 = vcombine.high %v504_v50, %v508_v51  ;;  %v9020_v3 = vcombine.low %v504_v50, %v508_v51 }
 0x2bd   :  { %7172 = vmatpush1.bf16.msra.mxu1 %v9068_v62  ;;  %v636_v36 = vld [vmem:[#allocation2 + $0xf70] sm:$0xff] }
 0x2be   :  { %7173 = vmatprep.subr.bf16.mxu1 %v9061_v0  ;;  %v9149_v62 = vcombine.high %v632_v41, %v636_v36  ;;  %v496_v63 = vld [vmem:[#allocation2 + $0xb10] sm:$0xff]  ;;  %v9148_v5 = vcombine.low %v632_v41, %v636_v36 }
 0x2bf   :  { %7133 = vmatpush1.bf16.msra.mxu0 %v8932_v7  ;;  %v500_v0 = vld [vmem:[#allocation2 + $0xb30] sm:$0xff] }
 0x2c0   :  { %7134 = vmatprep.subr.bf16.mxu0 %v8925_v9  ;;  %v624_v1 = vld [vmem:[#allocation2 + $0xf10] sm:$0xff]  ;;  %v9013_v7 = vcombine.high %v496_v63, %v500_v0  ;;  %v9012_v13 = vcombine.low %v496_v63, %v500_v0 }
 0x2c1   :  { %7174 = vmatpush1.bf16.msra.mxu1 %v9060_v6  ;;  %v628_v2 = vld [vmem:[#allocation2 + $0xf30] sm:$0xff] }
 0x2c2   :  { %7175 = vmatprep.subr.bf16.mxu1 %v9053_v11  ;;  %v9141_v6 = vcombine.high %v624_v1, %v628_v2  ;;  %v488_v9 = vld [vmem:[#allocation2 + $0xad0] sm:$0xff]  ;;  %v9140_v17 = vcombine.low %v624_v1, %v628_v2 }
 0x2c3   :  { %7135 = vmatpush1.bf16.msra.mxu0 %v8924_v21  ;;  %v492_v11 = vld [vmem:[#allocation2 + $0xaf0] sm:$0xff] }
 0x2c4   :  { %7136 = vmatprep.subr.bf16.mxu0 %v8917_v24  ;;  %v616_v10 = vld [vmem:[#allocation2 + $0xed0] sm:$0xff]  ;;  %v9005_v21 = vcombine.high %v488_v9, %v492_v11  ;;  %v9004_v54 = vcombine.low %v488_v9, %v492_v11 }
 0x2c5   :  { %7176 = vmatpush1.bf16.msra.mxu1 %v9052_v23  ;;  %v620_v12 = vld [vmem:[#allocation2 + $0xef0] sm:$0xff] }
 0x2c6   :  { %7177 = vmatprep.subr.bf16.mxu1 %v9045_v25  ;;  %v9133_v23 = vcombine.high %v616_v10, %v620_v12  ;;  %v480_v24 = vld [vmem:[#allocation2 + $0xa90] sm:$0xff]  ;;  %v9132_v33 = vcombine.low %v616_v10, %v620_v12 }
 0x2c7   :  { %7137 = vmatpush1.bf16.msra.mxu0 %v8916_v34  ;;  %v484_v25 = vld [vmem:[#allocation2 + $0xab0] sm:$0xff] }
 0x2c8   :  { %7138 = vmatprep.subr.bf16.mxu0 %v9037_v38  ;;  %v608_v47 = vld [vmem:[#allocation2 + $0xe90] sm:$0xff]  ;;  %v8997_v34 = vcombine.high %v480_v24, %v484_v25  ;;  %v8996_v44 = vcombine.low %v480_v24, %v484_v25 }
 0x2c9   :  { %7178 = vmatpush1.bf16.msra.mxu1 %v9044_v35  ;;  %v612_v26 = vld [vmem:[#allocation2 + $0xeb0] sm:$0xff] }
 0x2ca   :  { %7179 = vmatprep.subr.bf16.mxu1 %v9165_v42  ;;  %v9125_v35 = vcombine.high %v608_v47, %v612_v26  ;;  %v472_v38 = vld [vmem:[#allocation2 + $0xa50] sm:$0xff]  ;;  %v9124_v45 = vcombine.low %v608_v47, %v612_v26 }
 0x2cb   :  { %7139 = vmatpush2.bf16.msra.mxu0 %v9036_v30  ;;  %v476_v42 = vld [vmem:[#allocation2 + $0xa70] sm:$0xff] }
 0x2cc   :  { %7140 = vmatprep.subr.bf16.mxu0 %v9029_v19  ;;  %v600_v37 = vld [vmem:[#allocation2 + $0xe50] sm:$0xff]  ;;  %v8989_v30 = vcombine.high %v472_v38, %v476_v42  ;;  %v8988_v41 = vcombine.low %v472_v38, %v476_v42 }
 0x2cd   :  { %7180 = vmatpush2.bf16.msra.mxu1 %v9164_v27  ;;  %v604_v43 = vld [vmem:[#allocation2 + $0xe70] sm:$0xff] }
 0x2ce   :  { %7181 = vmatprep.subr.bf16.mxu1 %v9157_v22  ;;  %v9117_v27 = vcombine.high %v600_v37, %v604_v43  ;;  %v464_v19 = vld [vmem:[#allocation2 + $0xa10] sm:$0xff]  ;;  %v9116_v36 = vcombine.low %v600_v37, %v604_v43 }
 0x2cf   :  { %7141 = vmatpush2.bf16.msra.mxu0 %v9028_v52  ;;  %v468_v22 = vld [vmem:[#allocation2 + $0xa30] sm:$0xff] }
 0x2d0   :  { %7142 = vmatprep.subr.bf16.mxu0 %v9021_v60  ;;  %v592_v50 = vld [vmem:[#allocation2 + $0xe10] sm:$0xff]  ;;  %v8981_v52 = vcombine.high %v464_v19, %v468_v22  ;;  %v8980_v1 = vcombine.low %v464_v19, %v468_v22 }
 0x2d1   :  { %7182 = vmatpush2.bf16.msra.mxu1 %v9156_v56  ;;  %v596_v51 = vld [vmem:[#allocation2 + $0xe30] sm:$0xff] }
 0x2d2   :  { %7183 = vmatprep.subr.bf16.mxu1 %v9149_v62  ;;  %v9109_v56 = vcombine.high %v592_v50, %v596_v51  ;;  %v712_v60 = vld [vmem:[#allocation2 + $0x11d0] sm:$0xff]  ;;  %v9108_v2 = vcombine.low %v592_v50, %v596_v51 }
 0x2d3   :  { %7143 = vmatpush2.bf16.msra.mxu0 %v9020_v3  ;;  %v716_v62 = vld [vmem:[#allocation2 + $0x11f0] sm:$0xff] }
 0x2d4   :  { %7144 = vmatprep.subr.bf16.mxu0 %v9013_v7  ;;  %v840_v63 = vld [vmem:[#allocation2 + $0x15d0] sm:$0xff]  ;;  %v9229_v3 = vcombine.high %v712_v60, %v716_v62  ;;  %v9228_v10 = vcombine.low %v712_v60, %v716_v62 }
 0x2d5   :  { %7184 = vmatpush2.bf16.msra.mxu1 %v9148_v5  ;;  %v844_v0 = vld [vmem:[#allocation2 + $0x15f0] sm:$0xff] }
 0x2d6   :  { %7185 = vmatprep.subr.bf16.mxu1 %v9141_v6  ;;  %v9357_v5 = vcombine.high %v840_v63, %v844_v0  ;;  %v704_v7 = vld [vmem:[#allocation2 + $0x1190] sm:$0xff]  ;;  %v9356_v12 = vcombine.low %v840_v63, %v844_v0 }
 0x2d7   :  { %7145 = vmatpush2.bf16.msra.mxu0 %v9012_v13  ;;  %v708_v6 = vld [vmem:[#allocation2 + $0x11b0] sm:$0xff] }
 0x2d8   :  { %7146 = vmatprep.subr.bf16.mxu0 %v9005_v21  ;;  %v832_v9 = vld [vmem:[#allocation2 + $0x1590] sm:$0xff]  ;;  %v9221_v13 = vcombine.high %v704_v7, %v708_v6 }
 0x2d9   :  { %7186 = vmatpush2.bf16.msra.mxu1 %v9140_v17  ;;  %v836_v11 = vld [vmem:[#allocation2 + $0x15b0] sm:$0xff] }
 0x2da   :  { %7187 = vmatprep.subr.bf16.mxu1 %v9133_v23  ;;  %v9349_v17 = vcombine.high %v832_v9, %v836_v11  ;;  %v696_v21 = vld [vmem:[#allocation2 + $0x1150] sm:$0xff] }
 0x2db   :  { %7147 = vmatpush2.bf16.msra.mxu0 %v9004_v54  ;;  %v700_v23 = vld [vmem:[#allocation2 + $0x1170] sm:$0xff] }
 0x2dc   :  { %7148 = vmatprep.subr.bf16.mxu0 %v8997_v34  ;;  %v824_v25 = vld [vmem:[#allocation2 + $0x1550] sm:$0xff]  ;;  %v9213_v38 = vcombine.high %v696_v21, %v700_v23  ;;  %v9212_v51 = vcombine.low %v696_v21, %v700_v23 }
 0x2dd   :  { %7188 = vmatpush2.bf16.msra.mxu1 %v9132_v33  ;;  %v828_v47 = vld [vmem:[#allocation2 + $0x1570] sm:$0xff]  ;;  %v9220_v33 = vcombine.low %v704_v7, %v708_v6 }
 0x2de   :  { %7189 = vmatprep.subr.bf16.mxu1 %v9125_v35  ;;  %v9348_v35 = vcombine.low %v832_v9, %v836_v11  ;;  %v820_v19 = vld [vmem:[#allocation2 + $0x1530] sm:$0xff] }
 0x2df   :  { %7149 = vmatpush2.bf16.msra.mxu0 %v8996_v44  ;;  %v9341_v44 = vcombine.high %v824_v25, %v828_v47  ;;  %v680_v60 = vld [vmem:[#allocation2 + $0x10d0] sm:$0xff] }
 0x2e0   :  { %7150 = vmatprep.subr.bf16.mxu0 %v8989_v30  ;;  %v692_v30 = vld [vmem:[#allocation2 + $0x1130] sm:$0xff] }
 0x2e1   :  { %7190 = vmatpush2.bf16.msra.mxu1 %v9124_v45  ;;  %v688_v45 = vld [vmem:[#allocation2 + $0x1110] sm:$0xff] }
 0x2e2   :  { %7191 = vmatprep.subr.bf16.mxu1 %v9117_v27  ;;  %v816_v27 = vld [vmem:[#allocation2 + $0x1510] sm:$0xff] }
 0x2e3   :  { %7151 = vmatpush2.bf16.msra.mxu0 %v8988_v41  ;;  %v684_v62 = vld [vmem:[#allocation2 + $0x10f0] sm:$0xff] }
 0x2e4   :  { %7152 = vmatprep.subr.bf16.mxu0 %v8981_v52  ;;  %v808_v63 = vld [vmem:[#allocation2 + $0x14d0] sm:$0xff] }
 0x2e5   :  { %7192 = vmatpush2.bf16.msra.mxu1 %v9116_v36  ;;  %v9205_v36 = vcombine.high %v688_v45, %v692_v30  ;;  %v812_v0 = vld [vmem:[#allocation2 + $0x14f0] sm:$0xff] }
 0x2e6   :  { %7193 = vmatprep.subr.bf16.mxu1 %v9109_v56  ;;  %v9333_v56 = vcombine.high %v816_v27, %v820_v19  ;;  %v672_v7 = vld [vmem:[#allocation2 + $0x1090] sm:$0xff] }
 0x2e7   :  { %7153 = vmatpush2.bf16.msra.mxu0 %v8980_v1  ;;  %v9204_v1 = vcombine.low %v688_v45, %v692_v30  ;;  %v676_v6 = vld [vmem:[#allocation2 + $0x10b0] sm:$0xff] }
 0x2e8   :  { %7204 = vmatprep.subr.bf16.mxu0 %v9229_v3  ;;  %v9197_v3 = vcombine.high %v680_v60, %v684_v62  ;;  %v800_v9 = vld [vmem:[#allocation2 + $0x1490] sm:$0xff] }
 0x2e9   :  { %7194 = vmatpush2.bf16.msra.mxu1 %v9108_v2  ;;  %v9332_v2 = vcombine.low %v816_v27, %v820_v19  ;;  %v804_v11 = vld [vmem:[#allocation2 + $0x14b0] sm:$0xff] }
 0x2ea   :  { %7245 = vmatprep.subr.bf16.mxu1 %v9357_v5  ;;  %v6910_v24 = vpop.f32.mrf.mxu0  ;;  %7155 = vmatmul.mubr.bf16.vlgmr.msra.gmra.mxu0 %v10341_v39  ;;  %v9325_v5 = vcombine.high %v808_v63, %v812_v0  ;;  %v664_v21 = vld [vmem:[#allocation2 + $0x1050] sm:$0xff] }
 0x2eb   :  { %v6911_v26 = vadd.f32 %v6910_v24, %v10458_v14  ;;  %7205 = vmatpush1.bf16.msra.mxu0 %v9228_v10  ;;  %7236 = vmatprep.mubr.bf16.mxu0 %v10354_v48  ;;  %v9196_v10 = vcombine.low %v680_v60, %v684_v62  ;;  %v668_v23 = vld [vmem:[#allocation2 + $0x1070] sm:$0xff] }
 0x2ec   :  { %v6951_v54 = vpop.f32.mrf.mxu1  ;;  %7196 = vmatmul.mubr.bf16.vlgmr.msra.gmra.mxu1 %v10345_v40  ;;  %v6912_v34 = vpop.f32.mrf.mxu0  ;;  %7206 = vmatprep.subr.bf16.mxu0 %v9221_v13  ;;  %v9189_v13 = vcombine.high %v672_v7, %v676_v6  ;;  %v792_v24 = vld [vmem:[#allocation2 + $0x1450] sm:$0xff] }
 0x2ed   :  { %7246 = vmatpush1.bf16.msra.mxu1 %v9356_v12  ;;  %v10468_v42 = vadd.f32 %v6951_v54, %v6911_v26  ;;  %v6913_v37 = vadd.f32 %v6912_v34, %v10463_v31  ;;  %7277 = vmatprep.mubr.bf16.mxu1 %v10359_v49  ;;  %v9340_v31 = vcombine.low %v824_v25, %v828_v47  ;;  %v796_v25 = vld [vmem:[#allocation2 + $0x1470] sm:$0xff] }
 0x2ee   :  { %v6953_v43 = vpop.f32.mrf.mxu1  ;;  %7247 = vmatprep.subr.bf16.mxu1 %v9349_v17  ;;  %v6914_v14 = vpop.f32.mrf.mxu0  ;;  %v9324_v12 = vcombine.low %v808_v63, %v812_v0  ;;  %v9317_v17 = vcombine.high %v800_v9, %v804_v11  ;;  %v9188_v47 = vcombine.low %v672_v7, %v676_v6  ;;  %v9316_v26 = vcombine.low %v800_v9, %v804_v11  ;;  %v656_v34 = vld [vmem:[#allocation2 + $0x1010] sm:$0xff] }
 0x2ef   :  { %v10473_v22 = vadd.f32 %v6953_v43, %v6913_v37  ;;  %7207 = vmatpush1.bf16.msra.mxu0 %v9220_v33  ;;  %v9181_v54 = vcombine.high %v664_v21, %v668_v23  ;;  %v9309_v33 = vcombine.high %v792_v24, %v796_v25  ;;  %v788_v37 = vld [vmem:[#allocation2 + $0x1430] sm:$0xff]  ;;  %v9180_v43 = vcombine.low %v664_v21, %v668_v23 }
 0x2f0   :  { %v6955_v50 = vpop.f32.mrf.mxu1  ;;  %v6915_v41 = vpop.f32.mrf.mxu0  ;;  %7208 = vmatprep.subr.bf16.mxu0 %v9213_v38  ;;  %v784_v38 = vld [vmem:[#allocation2 + $0x1410] sm:$0xff] }
 0x2f1   :  { %7248 = vmatpush1.bf16.msra.mxu1 %v9348_v35  ;;  %v660_v35 = vld [vmem:[#allocation2 + $0x1030] sm:$0xff]  ;;  %v9301_v30 = vcombine.high %v784_v38, %v788_v37  ;;  %v9300_v41 = vcombine.low %v784_v38, %v788_v37 }
 0x2f2   :  { %v6956_v52 = vpop.f32.mrf.mxu1  ;;  %7249 = vmatprep.subr.bf16.mxu1 %v9341_v44  ;;  %v9308_v44 = vcombine.low %v792_v24, %v796_v25  ;;  %v9173_v45 = vcombine.high %v656_v34, %v660_v35  ;;  %v776_v14 = vld [vmem:[#allocation2 + $0x13d0] sm:$0xff] }
 0x2f3   :  { %7209 = vmatpush1.bf16.msra.mxu0 %v9212_v51  ;;  %v780_v27 = vld [vmem:[#allocation2 + $0x13f0] sm:$0xff]  ;;  %v9172_v51 = vcombine.low %v656_v34, %v660_v35 }
 0x2f4   :  { %7210 = vmatprep.subr.bf16.mxu0 %v9205_v36  ;;  %v904_v19 = vld [vmem:[#allocation2 + $0x17d0] sm:$0xff]  ;;  %v9292_v63 = vcombine.low %v776_v14, %v780_v27 }
 0x2f5   :  { %7250 = vmatpush1.bf16.msra.mxu1 %v9340_v31  ;;  %v908_v50 = vld [vmem:[#allocation2 + $0x17f0] sm:$0xff]  ;;  %v9293_v31 = vcombine.high %v776_v14, %v780_v27 }
 0x2f6   :  { %7251 = vmatprep.subr.bf16.mxu1 %v9333_v56  ;;  %v9421_v36 = vcombine.high %v904_v19, %v908_v50  ;;  %v768_v52 = vld [vmem:[#allocation2 + $0x1390] sm:$0xff]  ;;  %v9420_v0 = vcombine.low %v904_v19, %v908_v50 }
 0x2f7   :  { %7211 = vmatpush1.bf16.msra.mxu0 %v9204_v1  ;;  %v772_v56 = vld [vmem:[#allocation2 + $0x13b0] sm:$0xff] }
 0x2f8   :  { %7212 = vmatprep.subr.bf16.mxu0 %v9197_v3  ;;  %v896_v60 = vld [vmem:[#allocation2 + $0x1790] sm:$0xff]  ;;  %v9285_v1 = vcombine.high %v768_v52, %v772_v56  ;;  %v9284_v9 = vcombine.low %v768_v52, %v772_v56 }
 0x2f9   :  { %7252 = vmatpush1.bf16.msra.mxu1 %v9332_v2  ;;  %v900_v62 = vld [vmem:[#allocation2 + $0x17b0] sm:$0xff] }
 0x2fa   :  { %7253 = vmatprep.subr.bf16.mxu1 %v9325_v5  ;;  %v9413_v2 = vcombine.high %v896_v60, %v900_v62  ;;  %v760_v3 = vld [vmem:[#allocation2 + $0x1350] sm:$0xff]  ;;  %v9412_v11 = vcombine.low %v896_v60, %v900_v62 }
 0x2fb   :  { %7213 = vmatpush1.bf16.msra.mxu0 %v9196_v10  ;;  %v764_v5 = vld [vmem:[#allocation2 + $0x1370] sm:$0xff] }
 0x2fc   :  { %7214 = vmatprep.subr.bf16.mxu0 %v9189_v13  ;;  %v888_v7 = vld [vmem:[#allocation2 + $0x1750] sm:$0xff]  ;;  %v9277_v10 = vcombine.high %v760_v3, %v764_v5  ;;  %v9276_v24 = vcombine.low %v760_v3, %v764_v5 }
 0x2fd   :  { %7254 = vmatpush1.bf16.msra.mxu1 %v9324_v12  ;;  %v892_v6 = vld [vmem:[#allocation2 + $0x1770] sm:$0xff] }
 0x2fe   :  { %7255 = vmatprep.subr.bf16.mxu1 %v9317_v17  ;;  %v9405_v12 = vcombine.high %v888_v7, %v892_v6  ;;  %v752_v13 = vld [vmem:[#allocation2 + $0x1310] sm:$0xff]  ;;  %v9404_v25 = vcombine.low %v888_v7, %v892_v6 }
 0x2ff   :  { %7215 = vmatpush1.bf16.msra.mxu0 %v9188_v47  ;;  %v756_v17 = vld [vmem:[#allocation2 + $0x1330] sm:$0xff] }
 0x300   :  { %7216 = vmatprep.subr.bf16.mxu0 %v9181_v54  ;;  %v880_v21 = vld [vmem:[#allocation2 + $0x1710] sm:$0xff]  ;;  %v9269_v47 = vcombine.high %v752_v13, %v756_v17  ;;  %v9268_v38 = vcombine.low %v752_v13, %v756_v17 }
 0x301   :  { %7256 = vmatpush1.bf16.msra.mxu1 %v9316_v26  ;;  %v884_v23 = vld [vmem:[#allocation2 + $0x1730] sm:$0xff] }
 0x302   :  { %7257 = vmatprep.subr.bf16.mxu1 %v9309_v33  ;;  %v9397_v26 = vcombine.high %v880_v21, %v884_v23  ;;  %v744_v54 = vld [vmem:[#allocation2 + $0x12d0] sm:$0xff]  ;;  %v9396_v37 = vcombine.low %v880_v21, %v884_v23 }
 0x303   :  { %7217 = vmatpush1.bf16.msra.mxu0 %v9180_v43  ;;  %v748_v33 = vld [vmem:[#allocation2 + $0x12f0] sm:$0xff] }
 0x304   :  { %7218 = vmatprep.subr.bf16.mxu0 %v9173_v45  ;;  %v872_v34 = vld [vmem:[#allocation2 + $0x16d0] sm:$0xff]  ;;  %v9261_v43 = vcombine.high %v744_v54, %v748_v33  ;;  %v9260_v19 = vcombine.low %v744_v54, %v748_v33 }
 0x305   :  { %7258 = vmatpush1.bf16.msra.mxu1 %v9308_v44  ;;  %v876_v35 = vld [vmem:[#allocation2 + $0x16f0] sm:$0xff] }
 0x306   :  { %7259 = vmatprep.subr.bf16.mxu1 %v9301_v30  ;;  %v9389_v44 = vcombine.high %v872_v34, %v876_v35  ;;  %v736_v45 = vld [vmem:[#allocation2 + $0x1290] sm:$0xff]  ;;  %v9388_v50 = vcombine.low %v872_v34, %v876_v35 }
 0x307   :  { %7219 = vmatpush1.bf16.msra.mxu0 %v9172_v51  ;;  %v740_v30 = vld [vmem:[#allocation2 + $0x12b0] sm:$0xff] }
 0x308   :  { %7220 = vmatprep.subr.bf16.mxu0 %v9293_v31  ;;  %v864_v14 = vld [vmem:[#allocation2 + $0x1690] sm:$0xff]  ;;  %v9253_v51 = vcombine.high %v736_v45, %v740_v30  ;;  %v9252_v60 = vcombine.low %v736_v45, %v740_v30 }
 0x309   :  { %7260 = vmatpush1.bf16.msra.mxu1 %v9300_v41  ;;  %v868_v27 = vld [vmem:[#allocation2 + $0x16b0] sm:$0xff] }
 0x30a   :  { %7261 = vmatprep.subr.bf16.mxu1 %v9421_v36  ;;  %v9381_v41 = vcombine.high %v864_v14, %v868_v27  ;;  %v728_v31 = vld [vmem:[#allocation2 + $0x1250] sm:$0xff]  ;;  %v9380_v62 = vcombine.low %v864_v14, %v868_v27 }
 0x30b   :  { %7221 = vmatpush2.bf16.msra.mxu0 %v9292_v63  ;;  %v732_v36 = vld [vmem:[#allocation2 + $0x1270] sm:$0xff] }
 0x30c   :  { %7222 = vmatprep.subr.bf16.mxu0 %v9285_v1  ;;  %v856_v52 = vld [vmem:[#allocation2 + $0x1650] sm:$0xff]  ;;  %v9245_v63 = vcombine.high %v728_v31, %v732_v36  ;;  %v9244_v7 = vcombine.low %v728_v31, %v732_v36 }
 0x30d   :  { %7262 = vmatpush2.bf16.msra.mxu1 %v9420_v0  ;;  %v860_v56 = vld [vmem:[#allocation2 + $0x1670] sm:$0xff] }
 0x30e   :  { %7263 = vmatprep.subr.bf16.mxu1 %v9413_v2  ;;  %v9373_v0 = vcombine.high %v856_v52, %v860_v56  ;;  %v720_v1 = vld [vmem:[#allocation2 + $0x1210] sm:$0xff]  ;;  %v9372_v6 = vcombine.low %v856_v52, %v860_v56 }
 0x30f   :  { %7223 = vmatpush2.bf16.msra.mxu0 %v9284_v9  ;;  %v724_v2 = vld [vmem:[#allocation2 + $0x1230] sm:$0xff] }
 0x310   :  { %7224 = vmatprep.subr.bf16.mxu0 %v9277_v10  ;;  %v848_v3 = vld [vmem:[#allocation2 + $0x1610] sm:$0xff]  ;;  %v9237_v9 = vcombine.high %v720_v1, %v724_v2  ;;  %v9236_v21 = vcombine.low %v720_v1, %v724_v2 }
 0x311   :  { %7264 = vmatpush2.bf16.msra.mxu1 %v9412_v11  ;;  %v852_v5 = vld [vmem:[#allocation2 + $0x1630] sm:$0xff] }
 0x312   :  { %7265 = vmatprep.subr.bf16.mxu1 %v9405_v12  ;;  %v9365_v11 = vcombine.high %v848_v3, %v852_v5  ;;  %v968_v10 = vld [vmem:[#allocation2 + $0x19d0] sm:$0xff]  ;;  %v9364_v23 = vcombine.low %v848_v3, %v852_v5 }
 0x313   :  { %7225 = vmatpush2.bf16.msra.mxu0 %v9276_v24  ;;  %v972_v12 = vld [vmem:[#allocation2 + $0x19f0] sm:$0xff] }
 0x314   :  { %7226 = vmatprep.subr.bf16.mxu0 %v9269_v47  ;;  %v1096_v13 = vld [vmem:[#allocation2 + $0x1dd0] sm:$0xff]  ;;  %v9485_v24 = vcombine.high %v968_v10, %v972_v12  ;;  %v9484_v34 = vcombine.low %v968_v10, %v972_v12 }
 0x315   :  { %7266 = vmatpush2.bf16.msra.mxu1 %v9404_v25  ;;  %v1100_v17 = vld [vmem:[#allocation2 + $0x1df0] sm:$0xff] }
 0x316   :  { %7267 = vmatprep.subr.bf16.mxu1 %v9397_v26  ;;  %v9613_v25 = vcombine.high %v1096_v13, %v1100_v17  ;;  %v960_v47 = vld [vmem:[#allocation2 + $0x1990] sm:$0xff]  ;;  %v9612_v35 = vcombine.low %v1096_v13, %v1100_v17 }
 0x317   :  { %7227 = vmatpush2.bf16.msra.mxu0 %v9268_v38  ;;  %v964_v26 = vld [vmem:[#allocation2 + $0x19b0] sm:$0xff] }
 0x318   :  { %7228 = vmatprep.subr.bf16.mxu0 %v9261_v43  ;;  %v1088_v54 = vld [vmem:[#allocation2 + $0x1d90] sm:$0xff]  ;;  %v9477_v38 = vcombine.high %v960_v47, %v964_v26 }
 0x319   :  { %7268 = vmatpush2.bf16.msra.mxu1 %v9396_v37  ;;  %v1092_v33 = vld [vmem:[#allocation2 + $0x1db0] sm:$0xff] }
 0x31a   :  { %7269 = vmatprep.subr.bf16.mxu1 %v9389_v44  ;;  %v9605_v37 = vcombine.high %v1088_v54, %v1092_v33  ;;  %v952_v43 = vld [vmem:[#allocation2 + $0x1950] sm:$0xff] }
 0x31b   :  { %7229 = vmatpush2.bf16.msra.mxu0 %v9260_v19  ;;  %v956_v44 = vld [vmem:[#allocation2 + $0x1970] sm:$0xff] }
 0x31c   :  { %7230 = vmatprep.subr.bf16.mxu0 %v9253_v51  ;;  %v1080_v30 = vld [vmem:[#allocation2 + $0x1d50] sm:$0xff]  ;;  %v9469_v31 = vcombine.high %v952_v43, %v956_v44  ;;  %v9468_v5 = vcombine.low %v952_v43, %v956_v44 }
 0x31d   :  { %7270 = vmatpush2.bf16.msra.mxu1 %v9388_v50  ;;  %v1084_v14 = vld [vmem:[#allocation2 + $0x1d70] sm:$0xff]  ;;  %v9476_v50 = vcombine.low %v960_v47, %v964_v26 }
 0x31e   :  { %7271 = vmatprep.subr.bf16.mxu1 %v9381_v41  ;;  %v9604_v41 = vcombine.low %v1088_v54, %v1092_v33  ;;  %v1076_v1 = vld [vmem:[#allocation2 + $0x1d30] sm:$0xff] }
 0x31f   :  { %7231 = vmatpush2.bf16.msra.mxu0 %v9252_v60  ;;  %v9597_v60 = vcombine.high %v1080_v30, %v1084_v14  ;;  %v936_v10 = vld [vmem:[#allocation2 + $0x18d0] sm:$0xff] }
 0x320   :  { %7232 = vmatprep.subr.bf16.mxu0 %v9245_v63  ;;  %v948_v63 = vld [vmem:[#allocation2 + $0x1930] sm:$0xff] }
 0x321   :  { %7272 = vmatpush2.bf16.msra.mxu1 %v9380_v62  ;;  %v944_v62 = vld [vmem:[#allocation2 + $0x1910] sm:$0xff] }
 0x322   :  { %7273 = vmatprep.subr.bf16.mxu1 %v9373_v0  ;;  %v1072_v0 = vld [vmem:[#allocation2 + $0x1d10] sm:$0xff] }
 0x323   :  { %7233 = vmatpush2.bf16.msra.mxu0 %v9244_v7  ;;  %v940_v12 = vld [vmem:[#allocation2 + $0x18f0] sm:$0xff] }
 0x324   :  { %7234 = vmatprep.subr.bf16.mxu0 %v9237_v9  ;;  %v1064_v13 = vld [vmem:[#allocation2 + $0x1cd0] sm:$0xff] }
 0x325   :  { %7274 = vmatpush2.bf16.msra.mxu1 %v9372_v6  ;;  %v9461_v6 = vcombine.high %v944_v62, %v948_v63  ;;  %v1068_v17 = vld [vmem:[#allocation2 + $0x1cf0] sm:$0xff] }
 0x326   :  { %7275 = vmatprep.subr.bf16.mxu1 %v9365_v11  ;;  %v9589_v11 = vcombine.high %v1072_v0, %v1076_v1  ;;  %v928_v47 = vld [vmem:[#allocation2 + $0x1890] sm:$0xff] }
 0x327   :  { %7235 = vmatpush2.bf16.msra.mxu0 %v9236_v21  ;;  %v9460_v21 = vcombine.low %v944_v62, %v948_v63  ;;  %v932_v26 = vld [vmem:[#allocation2 + $0x18b0] sm:$0xff] }
 0x328   :  { %7286 = vmatprep.subr.bf16.mxu0 %v9485_v24  ;;  %v9453_v24 = vcombine.high %v936_v10, %v940_v12  ;;  %v1056_v54 = vld [vmem:[#allocation2 + $0x1c90] sm:$0xff] }
 0x329   :  { %7276 = vmatpush2.bf16.msra.mxu1 %v9364_v23  ;;  %v9588_v23 = vcombine.low %v1072_v0, %v1076_v1  ;;  %v1060_v33 = vld [vmem:[#allocation2 + $0x1cb0] sm:$0xff] }
 0x32a   :  { %7327 = vmatprep.subr.bf16.mxu1 %v9613_v25  ;;  %v6992_v45 = vpop.f32.mrf.mxu0  ;;  %7237 = vmatmul.mubr.bf16.vlgmr.msra.gmra.mxu0 %v10366_v4  ;;  %v9581_v25 = vcombine.high %v1064_v13, %v1068_v17  ;;  %v920_v43 = vld [vmem:[#allocation2 + $0x1850] sm:$0xff] }
 0x32b   :  { %v6993_v27 = vadd.f32 %v6992_v45, %v10468_v42  ;;  %7287 = vmatpush1.bf16.msra.mxu0 %v9484_v34  ;;  %7318 = vmatprep.mubr.bf16.mxu0 %v10384_v15  ;;  %v9452_v34 = vcombine.low %v936_v10, %v940_v12  ;;  %v924_v44 = vld [vmem:[#allocation2 + $0x1870] sm:$0xff] }
 0x32c   :  { %v7033_v19 = vpop.f32.mrf.mxu1  ;;  %7278 = vmatmul.mubr.bf16.vlgmr.msra.gmra.mxu1 %v10375_v8  ;;  %v6994_v51 = vpop.f32.mrf.mxu0  ;;  %7288 = vmatprep.subr.bf16.mxu0 %v9477_v38  ;;  %v9445_v38 = vcombine.high %v928_v47, %v932_v26  ;;  %v1048_v45 = vld [vmem:[#allocation2 + $0x1c50] sm:$0xff] }
 0x32d   :  { %7328 = vmatpush1.bf16.msra.mxu1 %v9612_v35  ;;  %v10478_v36 = vadd.f32 %v7033_v19, %v6993_v27  ;;  %v6995_v52 = vadd.f32 %v6994_v51, %v10473_v22  ;;  %7359 = vmatprep.mubr.bf16.mxu1 %v10389_v18  ;;  %v9596_v22 = vcombine.low %v1080_v30, %v1084_v14  ;;  %v1052_v30 = vld [vmem:[#allocation2 + $0x1c70] sm:$0xff] }
 0x32e   :  { %v7035_v56 = vpop.f32.mrf.mxu1  ;;  %7329 = vmatprep.subr.bf16.mxu1 %v9605_v37  ;;  %v6996_v42 = vpop.f32.mrf.mxu0  ;;  %v9580_v35 = vcombine.low %v1064_v13, %v1068_v17  ;;  %v9573_v37 = vcombine.high %v1056_v54, %v1060_v33  ;;  %v9444_v14 = vcombine.low %v928_v47, %v932_v26  ;;  %v9572_v27 = vcombine.low %v1056_v54, %v1060_v33  ;;  %v912_v51 = vld [vmem:[#allocation2 + $0x1810] sm:$0xff] }
 0x32f   :  { %v10483_v2 = vadd.f32 %v7035_v56, %v6995_v52  ;;  %7289 = vmatpush1.bf16.msra.mxu0 %v9476_v50  ;;  %v9437_v19 = vcombine.high %v920_v43, %v924_v44  ;;  %v9565_v50 = vcombine.high %v1048_v45, %v1052_v30  ;;  %v1044_v52 = vld [vmem:[#allocation2 + $0x1c30] sm:$0xff]  ;;  %v9436_v56 = vcombine.low %v920_v43, %v924_v44 }
 0x330   :  { %v7037_v3 = vpop.f32.mrf.mxu1  ;;  %v6997_v7 = vpop.f32.mrf.mxu0  ;;  %7290 = vmatprep.subr.bf16.mxu0 %v9469_v31  ;;  %v1040_v31 = vld [vmem:[#allocation2 + $0x1c10] sm:$0xff] }
 0x331   :  { %7330 = vmatpush1.bf16.msra.mxu1 %v9604_v41  ;;  %v916_v41 = vld [vmem:[#allocation2 + $0x1830] sm:$0xff]  ;;  %v9557_v63 = vcombine.high %v1040_v31, %v1044_v52  ;;  %v9556_v7 = vcombine.low %v1040_v31, %v1044_v52 }
 0x332   :  { %v7038_v9 = vpop.f32.mrf.mxu1  ;;  %7331 = vmatprep.subr.bf16.mxu1 %v9597_v60  ;;  %v9564_v60 = vcombine.low %v1048_v45, %v1052_v30  ;;  %v9429_v62 = vcombine.high %v912_v51, %v916_v41  ;;  %v1032_v42 = vld [vmem:[#allocation2 + $0x1bd0] sm:$0xff] }
 0x333   :  { %7291 = vmatpush1.bf16.msra.mxu0 %v9468_v5  ;;  %v1036_v0 = vld [vmem:[#allocation2 + $0x1bf0] sm:$0xff]  ;;  %v9428_v5 = vcombine.low %v912_v51, %v916_v41 }
 0x334   :  { %7292 = vmatprep.subr.bf16.mxu0 %v9461_v6  ;;  %v1160_v1 = vld [vmem:[#allocation2 + $0x1fd0] sm:$0xff]  ;;  %v9548_v13 = vcombine.low %v1032_v42, %v1036_v0 }
 0x335   :  { %7332 = vmatpush1.bf16.msra.mxu1 %v9596_v22  ;;  %v1164_v3 = vld [vmem:[#allocation2 + $0x1ff0] sm:$0xff]  ;;  %v9549_v22 = vcombine.high %v1032_v42, %v1036_v0 }
 0x336   :  { %7333 = vmatprep.subr.bf16.mxu1 %v9589_v11  ;;  %v9677_v6 = vcombine.high %v1160_v1, %v1164_v3  ;;  %v1024_v9 = vld [vmem:[#allocation2 + $0x1b90] sm:$0xff]  ;;  %v9676_v17 = vcombine.low %v1160_v1, %v1164_v3 }
 0x337   :  { %7293 = vmatpush1.bf16.msra.mxu0 %v9460_v21  ;;  %v1028_v11 = vld [vmem:[#allocation2 + $0x1bb0] sm:$0xff] }
 0x338   :  { %7294 = vmatprep.subr.bf16.mxu0 %v9453_v24  ;;  %v1152_v10 = vld [vmem:[#allocation2 + $0x1f90] sm:$0xff]  ;;  %v9541_v21 = vcombine.high %v1024_v9, %v1028_v11  ;;  %v9540_v54 = vcombine.low %v1024_v9, %v1028_v11 }
 0x339   :  { %7334 = vmatpush1.bf16.msra.mxu1 %v9588_v23  ;;  %v1156_v12 = vld [vmem:[#allocation2 + $0x1fb0] sm:$0xff] }
 0x33a   :  { %7335 = vmatprep.subr.bf16.mxu1 %v9581_v25  ;;  %v9669_v23 = vcombine.high %v1152_v10, %v1156_v12  ;;  %v1016_v24 = vld [vmem:[#allocation2 + $0x1b50] sm:$0xff]  ;;  %v9668_v33 = vcombine.low %v1152_v10, %v1156_v12 }
 0x33b   :  { %7295 = vmatpush1.bf16.msra.mxu0 %v9452_v34  ;;  %v1020_v25 = vld [vmem:[#allocation2 + $0x1b70] sm:$0xff] }
 0x33c   :  { %7296 = vmatprep.subr.bf16.mxu0 %v9445_v38  ;;  %v1144_v47 = vld [vmem:[#allocation2 + $0x1f50] sm:$0xff]  ;;  %v9533_v34 = vcombine.high %v1016_v24, %v1020_v25  ;;  %v9532_v45 = vcombine.low %v1016_v24, %v1020_v25 }
 0x33d   :  { %7336 = vmatpush1.bf16.msra.mxu1 %v9580_v35  ;;  %v1148_v26 = vld [vmem:[#allocation2 + $0x1f70] sm:$0xff] }
 0x33e   :  { %7337 = vmatprep.subr.bf16.mxu1 %v9573_v37  ;;  %v9661_v35 = vcombine.high %v1144_v47, %v1148_v26  ;;  %v1008_v38 = vld [vmem:[#allocation2 + $0x1b10] sm:$0xff]  ;;  %v9660_v30 = vcombine.low %v1144_v47, %v1148_v26 }
 0x33f   :  { %7297 = vmatpush1.bf16.msra.mxu0 %v9444_v14  ;;  %v1012_v37 = vld [vmem:[#allocation2 + $0x1b30] sm:$0xff] }
 0x340   :  { %7298 = vmatprep.subr.bf16.mxu0 %v9437_v19  ;;  %v1136_v43 = vld [vmem:[#allocation2 + $0x1f10] sm:$0xff]  ;;  %v9525_v14 = vcombine.high %v1008_v38, %v1012_v37  ;;  %v9524_v31 = vcombine.low %v1008_v38, %v1012_v37  ;;  %v329_v38 = vld [vmem:[#allocation2 + $0x5d8] sm:$0xff] }
 0x341   :  { %7338 = vmatpush1.bf16.msra.mxu1 %v9572_v27  ;;  %v1140_v44 = vld [vmem:[#allocation2 + $0x1f30] sm:$0xff]  ;;  %v333_v37 = vld [vmem:[#allocation2 + $0x5f8] sm:$0xff] }
 0x342   :  { %7339 = vmatprep.subr.bf16.mxu1 %v9565_v50  ;;  %v9653_v27 = vcombine.high %v1136_v43, %v1140_v44  ;;  %v1000_v19 = vld [vmem:[#allocation2 + $0x1ad0] sm:$0xff]  ;;  %v9652_v52 = vcombine.low %v1136_v43, %v1140_v44  ;;  %v1186_v44 = vsub.s32 4, %v10395_v32 }
 0x343   :  { %7299 = vmatpush1.bf16.msra.mxu0 %v9436_v56  ;;  %v1004_v50 = vld [vmem:[#allocation2 + $0x1af0] sm:$0xff] }
 0x344   :  { %7300 = vmatprep.subr.bf16.mxu0 %v9429_v62  ;;  %v1128_v51 = vld [vmem:[#allocation2 + $0x1ed0] sm:$0xff]  ;;  %v9517_v56 = vcombine.high %v1000_v19, %v1004_v50  ;;  %v9516_v1 = vcombine.low %v1000_v19, %v1004_v50  ;;  %v193_v19 = vld [vmem:[#allocation2 + $0x198] sm:$0xff] }
 0x345   :  { %7340 = vmatpush1.bf16.msra.mxu1 %v9564_v60  ;;  %v1132_v41 = vld [vmem:[#allocation2 + $0x1ef0] sm:$0xff]  ;;  %v197_v50 = vld [vmem:[#allocation2 + $0x1b8] sm:$0xff] }
 0x346   :  { %7341 = vmatprep.subr.bf16.mxu1 %v9557_v63  ;;  %v9645_v60 = vcombine.high %v1128_v51, %v1132_v41  ;;  %v992_v62 = vld [vmem:[#allocation2 + $0x1a90] sm:$0xff]  ;;  %v9644_v3 = vcombine.low %v1128_v51, %v1132_v41  ;;  %v321_v51 = vld [vmem:[#allocation2 + $0x598] sm:$0xff] }
 0x347   :  { %7301 = vmatpush1.bf16.msra.mxu0 %v9428_v5  ;;  %v996_v63 = vld [vmem:[#allocation2 + $0x1ab0] sm:$0xff]  ;;  %v325_v41 = vld [vmem:[#allocation2 + $0x5b8] sm:$0xff] }
 0x348   :  { %7302 = vmatprep.subr.bf16.mxu0 %v9549_v22  ;;  %v1120_v42 = vld [vmem:[#allocation2 + $0x1e90] sm:$0xff]  ;;  %v9509_v5 = vcombine.high %v992_v62, %v996_v63  ;;  %v9508_v10 = vcombine.low %v992_v62, %v996_v63  ;;  %v8711_v62 = vcombine.high %v193_v19, %v197_v50 }
 0x349   :  { %7342 = vmatpush1.bf16.msra.mxu1 %v9556_v7  ;;  %v1124_v0 = vld [vmem:[#allocation2 + $0x1eb0] sm:$0xff] }
 0x34a   :  { %7343 = vmatprep.subr.bf16.mxu1 %v9677_v6  ;;  %v9637_v7 = vcombine.high %v1120_v42, %v1124_v0  ;;  %v984_v22 = vld [vmem:[#allocation2 + $0x1a50] sm:$0xff]  ;;  %v9636_v12 = vcombine.low %v1120_v42, %v1124_v0  ;;  %v8839_v42 = vcombine.high %v321_v51, %v325_v41  ;;  %v185_v0 = vld [vmem:[#allocation2 + $0x158] sm:$0xff] }
 0x34b   :  { %7303 = vmatpush2.bf16.msra.mxu0 %v9548_v13  ;;  %v988_v6 = vld [vmem:[#allocation2 + $0x1a70] sm:$0xff] }
 0x34c   :  { %7304 = vmatprep.subr.bf16.mxu0 %v9541_v21  ;;  %v1112_v9 = vld [vmem:[#allocation2 + $0x1e50] sm:$0xff]  ;;  %v9501_v13 = vcombine.high %v984_v22, %v988_v6  ;;  %v9500_v47 = vcombine.low %v984_v22, %v988_v6 }
 0x34d   :  { %7344 = vmatpush2.bf16.msra.mxu1 %v9676_v17  ;;  %v1116_v11 = vld [vmem:[#allocation2 + $0x1e70] sm:$0xff] }
 0x34e   :  { %7345 = vmatprep.subr.bf16.mxu1 %v9669_v23  ;;  %v9629_v17 = vcombine.high %v1112_v9, %v1116_v11  ;;  %v976_v21 = vld [vmem:[#allocation2 + $0x1a10] sm:$0xff]  ;;  %v9628_v26 = vcombine.low %v1112_v9, %v1116_v11  ;;  %v8710_v9 = vcombine.low %v193_v19, %v197_v50 }
 0x34f   :  { %7305 = vmatpush2.bf16.msra.mxu0 %v9540_v54  ;;  %v980_v23 = vld [vmem:[#allocation2 + $0x1a30] sm:$0xff] }
 0x350   :  { %7306 = vmatprep.subr.bf16.mxu0 %v9533_v34  ;;  %v1104_v24 = vld [vmem:[#allocation2 + $0x1e10] sm:$0xff]  ;;  %v9493_v54 = vcombine.high %v976_v21, %v980_v23  ;;  %v201_v34 = vld [vmem:[#allocation2 + $0x1d8] sm:$0xff]  ;;  %v9492_v43 = vcombine.low %v976_v21, %v980_v23 }
 0x351   :  { %7346 = vmatpush2.bf16.msra.mxu1 %v9668_v33  ;;  %v1108_v25 = vld [vmem:[#allocation2 + $0x1e30] sm:$0xff] }
 0x352   :  { %7347 = vmatprep.subr.bf16.mxu1 %v9661_v35  ;;  %v9621_v33 = vcombine.high %v1104_v24, %v1108_v25  ;;  %v205_v35 = vld [vmem:[#allocation2 + $0x1f8] sm:$0xff] }
 0x353   :  { %7307 = vmatpush2.bf16.msra.mxu0 %v9532_v45  ;;  %v9620_v45 = vcombine.low %v1104_v24, %v1108_v25  ;;  %v177_v24 = vld [vmem:[#allocation2 + $0x118] sm:$0xff] }
 0x354   :  { %7308 = vmatprep.subr.bf16.mxu0 %v9525_v14  ;;  %v8847_v14 = vcombine.high %v329_v38, %v333_v37  ;;  %v181_v25 = vld [vmem:[#allocation2 + $0x138] sm:$0xff] }
 0x355   :  { %7348 = vmatpush2.bf16.msra.mxu1 %v9660_v30  ;;  %v8719_v30 = vcombine.high %v201_v34, %v205_v35  ;;  %v8694_v19 = vcombine.low %v177_v24, %v181_v25 }
 0x356   :  { %7349 = vmatprep.subr.bf16.mxu1 %v9653_v27  ;;  %v1190_v27 = vsub.s32 5, %v10395_v32 }
 0x357   :  { %7309 = vmatpush2.bf16.msra.mxu0 %v9524_v31  ;;  %v10024_v31 = vld [vmem:[#allocation4] sm:$0xff] }
 0x358   :  { %7310 = vmatprep.subr.bf16.mxu0 %v9517_v56  ;;  %v8718_v56 = vcombine.low %v201_v34, %v205_v35  ;;  %v1191_v63 = vrot.slane %v10024_v31, %v1190_v27  ;;  %v301_v27 = vld [vmem:[#allocation2 + $0x4f8] sm:$0xff] }
 0x359   :  { %7350 = vmatpush2.bf16.msra.mxu1 %v9652_v52  ;;  %v1187_v52 = vrot.slane %v10024_v31, %v1186_v44  ;;  %v165_v31 = vld [vmem:[#allocation2 + $0xb8] sm:$0xff] }
 0x35a   :  { %7351 = vmatprep.subr.bf16.mxu1 %v9645_v60  ;;  %v8846_v60 = vcombine.low %v329_v38, %v333_v37 }
 0x35b   :  { %7311 = vmatpush2.bf16.msra.mxu0 %v9516_v1  ;;  %v189_v1 = vld [vmem:[#allocation2 + $0x178] sm:$0xff] }
 0x35c   :  { %7312 = vmatprep.subr.bf16.mxu0 %v9509_v5  ;;  %v313_v5 = vld [vmem:[#allocation2 + $0x558] sm:$0xff]  ;;  %v8702_v35 = vcombine.low %v185_v0, %v189_v1 }
 0x35d   :  { %7352 = vmatpush2.bf16.msra.mxu1 %v9644_v3 }
 0x35e   :  { %7353 = vmatprep.subr.bf16.mxu1 %v9637_v7  ;;  %v317_v7 = vld [vmem:[#allocation2 + $0x578] sm:$0xff] }
 0x35f   :  { %7313 = vmatpush2.bf16.msra.mxu0 %v9508_v10  ;;  %v8838_v10 = vcombine.low %v321_v51, %v325_v41  ;;  %v8831_v23 = vcombine.high %v313_v5, %v317_v7  ;;  %v8830_v37 = vcombine.low %v313_v5, %v317_v7  ;;  %v161_v41 = vld [vmem:[#allocation2 + $0x98] sm:$0xff] }
 0x360   :  { %7314 = vmatprep.subr.bf16.mxu0 %v9501_v13  ;;  %v285_v5 = vld [vmem:[#allocation2 + $0x478] sm:$0xff]  ;;  %v8678_v7 = vcombine.low %v161_v41, %v165_v31 }
 0x361   :  { %7354 = vmatpush2.bf16.msra.mxu1 %v9636_v12  ;;  %v8703_v12 = vcombine.high %v185_v0, %v189_v1  ;;  %v153_v0 = vld [vmem:[#allocation2 + $0x58] sm:$0xff] }
 0x362   :  { %7355 = vmatprep.subr.bf16.mxu1 %v9629_v17  ;;  %v157_v1 = vld [vmem:[#allocation2 + $0x78] sm:$0xff] }
 0x363   :  { %7315 = vmatpush2.bf16.msra.mxu0 %v9500_v47 }
 0x364   :  { %7316 = vmatprep.subr.bf16.mxu0 %v9493_v54  ;;  %v309_v54 = vld [vmem:[#allocation2 + $0x538] sm:$0xff] }
 0x365   :  { %7356 = vmatpush2.bf16.msra.mxu1 %v9628_v26  ;;  %v305_v26 = vld [vmem:[#allocation2 + $0x518] sm:$0xff] }
 0x366   :  { %7357 = vmatprep.subr.bf16.mxu1 %v9621_v33 }
 0x367   :  { %7317 = vmatpush2.bf16.msra.mxu0 %v9492_v43  ;;  %v8695_v43 = vcombine.high %v177_v24, %v181_v25 }
 0x368   :  { %7368 = vmatprep.subr.bf16.mxu0 %v8719_v30  ;;  %v169_v30 = vld [vmem:[#allocation2 + $0xd8] sm:$0xff] }
 0x369   :  { %7358 = vmatpush2.bf16.msra.mxu1 %v9620_v45  ;;  %v8823_v45 = vcombine.high %v305_v26, %v309_v54 }
 0x36a   :  { %7409 = vmatprep.subr.bf16.mxu1 %v8847_v14  ;;  %v7074_v3 = vpop.f32.mrf.mxu0  ;;  %7319 = vmatmul.mubr.bf16.vlgmr.msra.gmra.mxu0 %v10401_v55  ;;  %v297_v14 = vld [vmem:[#allocation2 + $0x4d8] sm:$0xff] }
 0x36b   :  { %v7075_v22 = vadd.f32 %v7074_v3, %v1187_v52  ;;  %7369 = vmatpush1.bf16.msra.mxu0 %v8718_v56  ;;  %7400 = vmatprep.mubr.bf16.mxu0 %v10296_v58  ;;  %v173_v58 = vld [vmem:[#allocation2 + $0xf8] sm:$0xff]  ;;  %v8815_v51 = vcombine.high %v297_v14, %v301_v27 }
 0x36c   :  { %v7115_v6 = vpop.f32.mrf.mxu1  ;;  %7360 = vmatmul.mubr.bf16.vlgmr.msra.gmra.mxu1 %v10405_v61  ;;  %v7076_v11 = vpop.f32.mrf.mxu0  ;;  %7370 = vmatprep.subr.bf16.mxu0 %v8711_v62  ;;  %v8687_v50 = vcombine.high %v169_v30, %v173_v58  ;;  %v289_v52 = vld [vmem:[#allocation2 + $0x498] sm:$0xff]  ;;  %v8814_v62 = vcombine.low %v297_v14, %v301_v27 }
 0x36d   :  { %7410 = vmatpush1.bf16.msra.mxu1 %v8846_v60  ;;  %v10489_v13 = vadd.f32 %v7115_v6, %v7075_v22  ;;  %v7077_v17 = vadd.f32 %v7076_v11, %v1191_v63  ;;  %7441 = vmatprep.mubr.bf16.mxu1 %v10300_v59  ;;  %v8822_v59 = vcombine.low %v305_v26, %v309_v54  ;;  %v293_v56 = vld [vmem:[#allocation2 + $0x4b8] sm:$0xff] }
 0x36e   :  { %v7117_v21 = vpop.f32.mrf.mxu1  ;;  %7411 = vmatprep.subr.bf16.mxu1 %v8839_v42  ;;  %v7078_v47 = vpop.f32.mrf.mxu0  ;;  %v8686_v60 = vcombine.low %v169_v30, %v173_v58  ;;  %v8679_v63 = vcombine.high %v161_v41, %v165_v31  ;;  %v8807_v42 = vcombine.high %v289_v52, %v293_v56  ;;  %v281_v3 = vld [vmem:[#allocation2 + $0x458] sm:$0xff]  ;;  %v8806_v22 = vcombine.low %v289_v52, %v293_v56 }
 0x36f   :  { %v10493_v33 = vadd.f32 %v7117_v21, %v7077_v17  ;;  %7371 = vmatpush1.bf16.msra.mxu0 %v8710_v9  ;;  %v8671_v6 = vcombine.high %v153_v0, %v157_v1  ;;  %v8799_v9 = vcombine.high %v281_v3, %v285_v5  ;;  %v145_v11 = vld [vmem:[#allocation2 + $0x18] sm:$0xff]  ;;  %v8670_v21 = vcombine.low %v153_v0, %v157_v1 }
 0x370   :  { %v7119_v34 = vpop.f32.mrf.mxu1  ;;  %v7079_v38 = vpop.f32.mrf.mxu0  ;;  %7372 = vmatprep.subr.bf16.mxu0 %v8703_v12  ;;  %v273_v12 = vld [vmem:[#allocation2 + $0x418] sm:$0xff] }
 0x371   :  { %7412 = vmatpush1.bf16.msra.mxu1 %v8838_v10  ;;  %v149_v10 = vld [vmem:[#allocation2 + $0x38] sm:$0xff] }
 0x372   :  { %v7120_v44 = vpop.f32.mrf.mxu1  ;;  %7413 = vmatprep.subr.bf16.mxu1 %v8831_v23  ;;  %v277_v17 = vld [vmem:[#allocation2 + $0x438] sm:$0xff]  ;;  %v8798_v23 = vcombine.low %v281_v3, %v285_v5  ;;  %v8663_v24 = vcombine.high %v145_v11, %v149_v10 }
 0x373   :  { %7373 = vmatpush1.bf16.msra.mxu0 %v8702_v35  ;;  %v8791_v25 = vcombine.high %v273_v12, %v277_v17  ;;  %v265_v47 = vld [vmem:[#allocation2 + $0x3d8] sm:$0xff]  ;;  %v8662_v35 = vcombine.low %v145_v11, %v149_v10  ;;  %v8790_v38 = vcombine.low %v273_v12, %v277_v17 }
 0x374   :  { %7374 = vmatprep.subr.bf16.mxu0 %v8695_v43  ;;  %v269_v26 = vld [vmem:[#allocation2 + $0x3f8] sm:$0xff] }
 0x375   :  { %7414 = vmatpush1.bf16.msra.mxu1 %v8830_v37  ;;  %v393_v54 = vld [vmem:[#allocation2 + $0x7d8] sm:$0xff]  ;;  %v8783_v37 = vcombine.high %v265_v47, %v269_v26  ;;  %v8782_v14 = vcombine.low %v265_v47, %v269_v26 }
 0x376   :  { %7415 = vmatprep.subr.bf16.mxu1 %v8823_v45  ;;  %v397_v34 = vld [vmem:[#allocation2 + $0x7f8] sm:$0xff] }
 0x377   :  { %7375 = vmatpush1.bf16.msra.mxu0 %v8694_v19  ;;  %v8911_v43 = vcombine.high %v393_v54, %v397_v34  ;;  %v257_v44 = vld [vmem:[#allocation2 + $0x398] sm:$0xff]  ;;  %v8910_v27 = vcombine.low %v393_v54, %v397_v34 }
 0x378   :  { %7376 = vmatprep.subr.bf16.mxu0 %v8687_v50  ;;  %v261_v45 = vld [vmem:[#allocation2 + $0x3b8] sm:$0xff] }
 0x379   :  { %7416 = vmatpush1.bf16.msra.mxu1 %v8822_v59  ;;  %v385_v30 = vld [vmem:[#allocation2 + $0x798] sm:$0xff]  ;;  %v8775_v19 = vcombine.high %v257_v44, %v261_v45  ;;  %v8774_v52 = vcombine.low %v257_v44, %v261_v45 }
 0x37a   :  { %7417 = vmatprep.subr.bf16.mxu1 %v8815_v51  ;;  %v389_v58 = vld [vmem:[#allocation2 + $0x7b8] sm:$0xff] }
 0x37b   :  { %7377 = vmatpush1.bf16.msra.mxu0 %v8686_v60  ;;  %v8903_v59 = vcombine.high %v385_v30, %v389_v58  ;;  %v249_v50 = vld [vmem:[#allocation2 + $0x358] sm:$0xff]  ;;  %v8902_v56 = vcombine.low %v385_v30, %v389_v58 }
 0x37c   :  { %7378 = vmatprep.subr.bf16.mxu0 %v8679_v63  ;;  %v253_v51 = vld [vmem:[#allocation2 + $0x378] sm:$0xff] }
 0x37d   :  { %7418 = vmatpush1.bf16.msra.mxu1 %v8814_v62  ;;  %v377_v41 = vld [vmem:[#allocation2 + $0x758] sm:$0xff]  ;;  %v8767_v60 = vcombine.high %v249_v50, %v253_v51  ;;  %v8766_v3 = vcombine.low %v249_v50, %v253_v51 }
 0x37e   :  { %7419 = vmatprep.subr.bf16.mxu1 %v8807_v42  ;;  %v381_v31 = vld [vmem:[#allocation2 + $0x778] sm:$0xff] }
 0x37f   :  { %7379 = vmatpush1.bf16.msra.mxu0 %v8678_v7  ;;  %v8895_v62 = vcombine.high %v377_v41, %v381_v31  ;;  %v241_v63 = vld [vmem:[#allocation2 + $0x318] sm:$0xff]  ;;  %v8894_v5 = vcombine.low %v377_v41, %v381_v31 }
 0x380   :  { %7380 = vmatprep.subr.bf16.mxu0 %v8671_v6  ;;  %v245_v42 = vld [vmem:[#allocation2 + $0x338] sm:$0xff] }
 0x381   :  { %7420 = vmatpush1.bf16.msra.mxu1 %v8806_v22  ;;  %v369_v0 = vld [vmem:[#allocation2 + $0x718] sm:$0xff]  ;;  %v8759_v7 = vcombine.high %v241_v63, %v245_v42  ;;  %v8758_v12 = vcombine.low %v241_v63, %v245_v42 }
 0x382   :  { %7421 = vmatprep.subr.bf16.mxu1 %v8799_v9  ;;  %v373_v1 = vld [vmem:[#allocation2 + $0x738] sm:$0xff] }
 0x383   :  { %7381 = vmatpush1.bf16.msra.mxu0 %v8670_v21  ;;  %v8887_v22 = vcombine.high %v369_v0, %v373_v1  ;;  %v233_v6 = vld [vmem:[#allocation2 + $0x2d8] sm:$0xff]  ;;  %v8886_v17 = vcombine.low %v369_v0, %v373_v1 }
 0x384   :  { %7382 = vmatprep.subr.bf16.mxu0 %v8663_v24  ;;  %v237_v9 = vld [vmem:[#allocation2 + $0x2f8] sm:$0xff] }
 0x385   :  { %7422 = vmatpush1.bf16.msra.mxu1 %v8798_v23  ;;  %v361_v11 = vld [vmem:[#allocation2 + $0x6d8] sm:$0xff]  ;;  %v8751_v21 = vcombine.high %v233_v6, %v237_v9  ;;  %v8750_v54 = vcombine.low %v233_v6, %v237_v9 }
 0x386   :  { %7423 = vmatprep.subr.bf16.mxu1 %v8791_v25  ;;  %v365_v10 = vld [vmem:[#allocation2 + $0x6f8] sm:$0xff] }
 0x387   :  { %7383 = vmatpush1.bf16.msra.mxu0 %v8662_v35  ;;  %v8879_v23 = vcombine.high %v361_v11, %v365_v10  ;;  %v225_v24 = vld [vmem:[#allocation2 + $0x298] sm:$0xff]  ;;  %v8878_v34 = vcombine.low %v361_v11, %v365_v10 }
 0x388   :  { %7384 = vmatprep.subr.bf16.mxu0 %v8783_v37  ;;  %v229_v25 = vld [vmem:[#allocation2 + $0x2b8] sm:$0xff] }
 0x389   :  { %7424 = vmatpush1.bf16.msra.mxu1 %v8790_v38  ;;  %v353_v47 = vld [vmem:[#allocation2 + $0x698] sm:$0xff]  ;;  %v8743_v35 = vcombine.high %v225_v24, %v229_v25  ;;  %v8742_v30 = vcombine.low %v225_v24, %v229_v25 }
 0x38a   :  { %7425 = vmatprep.subr.bf16.mxu1 %v8911_v43  ;;  %v357_v26 = vld [vmem:[#allocation2 + $0x6b8] sm:$0xff] }
 0x38b   :  { %7385 = vmatpush2.bf16.msra.mxu0 %v8782_v14  ;;  %v8871_v38 = vcombine.high %v353_v47, %v357_v26  ;;  %v217_v37 = vld [vmem:[#allocation2 + $0x258] sm:$0xff]  ;;  %v8870_v58 = vcombine.low %v353_v47, %v357_v26 }
 0x38c   :  { %7386 = vmatprep.subr.bf16.mxu0 %v8775_v19  ;;  %v221_v43 = vld [vmem:[#allocation2 + $0x278] sm:$0xff] }
 0x38d   :  { %7426 = vmatpush2.bf16.msra.mxu1 %v8910_v27  ;;  %v345_v44 = vld [vmem:[#allocation2 + $0x658] sm:$0xff]  ;;  %v8735_v14 = vcombine.high %v217_v37, %v221_v43  ;;  %v8734_v41 = vcombine.low %v217_v37, %v221_v43 }
 0x38e   :  { %7427 = vmatprep.subr.bf16.mxu1 %v8903_v59  ;;  %v349_v45 = vld [vmem:[#allocation2 + $0x678] sm:$0xff] }
 0x38f   :  { %7387 = vmatpush2.bf16.msra.mxu0 %v8774_v52  ;;  %v8863_v27 = vcombine.high %v345_v44, %v349_v45  ;;  %v209_v19 = vld [vmem:[#allocation2 + $0x218] sm:$0xff]  ;;  %v8862_v31 = vcombine.low %v345_v44, %v349_v45 }
 0x390   :  { %7388 = vmatprep.subr.bf16.mxu0 %v8767_v60  ;;  %v213_v59 = vld [vmem:[#allocation2 + $0x238] sm:$0xff] }
 0x391   :  { %7428 = vmatpush2.bf16.msra.mxu1 %v8902_v56  ;;  %v337_v50 = vld [vmem:[#allocation2 + $0x618] sm:$0xff]  ;;  %v8727_v52 = vcombine.high %v209_v19, %v213_v59  ;;  %v8726_v0 = vcombine.low %v209_v19, %v213_v59 }
 0x392   :  { %7429 = vmatprep.subr.bf16.mxu1 %v8895_v62  ;;  %v341_v51 = vld [vmem:[#allocation2 + $0x638] sm:$0xff] }
 0x393   :  { %7389 = vmatpush2.bf16.msra.mxu0 %v8766_v3  ;;  %v8855_v56 = vcombine.high %v337_v50, %v341_v51  ;;  %v457_v60 = vld [vmem:[#allocation2 + $0x9d8] sm:$0xff]  ;;  %v8854_v1 = vcombine.low %v337_v50, %v341_v51 }
 0x394   :  { %7390 = vmatprep.subr.bf16.mxu0 %v8759_v7  ;;  %v461_v62 = vld [vmem:[#allocation2 + $0x9f8] sm:$0xff] }
 0x395   :  { %7430 = vmatpush2.bf16.msra.mxu1 %v8894_v5  ;;  %v585_v63 = vld [vmem:[#allocation2 + $0xdd8] sm:$0xff]  ;;  %v8975_v3 = vcombine.high %v457_v60, %v461_v62  ;;  %v8974_v11 = vcombine.low %v457_v60, %v461_v62 }
 0x396   :  { %7431 = vmatprep.subr.bf16.mxu1 %v8887_v22  ;;  %v589_v42 = vld [vmem:[#allocation2 + $0xdf8] sm:$0xff] }
 0x397   :  { %7391 = vmatpush2.bf16.msra.mxu0 %v8758_v12  ;;  %v9103_v5 = vcombine.high %v585_v63, %v589_v42  ;;  %v449_v7 = vld [vmem:[#allocation2 + $0x998] sm:$0xff]  ;;  %v9102_v10 = vcombine.low %v585_v63, %v589_v42 }
 0x398   :  { %7392 = vmatprep.subr.bf16.mxu0 %v8751_v21  ;;  %v453_v22 = vld [vmem:[#allocation2 + $0x9b8] sm:$0xff] }
 0x399   :  { %7432 = vmatpush2.bf16.msra.mxu1 %v8886_v17  ;;  %v577_v6 = vld [vmem:[#allocation2 + $0xd98] sm:$0xff]  ;;  %v8967_v12 = vcombine.high %v449_v7, %v453_v22 }
 0x39a   :  { %7433 = vmatprep.subr.bf16.mxu1 %v8879_v23  ;;  %v581_v9 = vld [vmem:[#allocation2 + $0xdb8] sm:$0xff] }
 0x39b   :  { %7393 = vmatpush2.bf16.msra.mxu0 %v8750_v54  ;;  %v9095_v17 = vcombine.high %v577_v6, %v581_v9  ;;  %v441_v21 = vld [vmem:[#allocation2 + $0x958] sm:$0xff] }
 0x39c   :  { %7394 = vmatprep.subr.bf16.mxu0 %v8743_v35  ;;  %v445_v23 = vld [vmem:[#allocation2 + $0x978] sm:$0xff] }
 0x39d   :  { %7434 = vmatpush2.bf16.msra.mxu1 %v8878_v34  ;;  %v569_v25 = vld [vmem:[#allocation2 + $0xd58] sm:$0xff]  ;;  %v8966_v34 = vcombine.low %v449_v7, %v453_v22  ;;  %v8959_v37 = vcombine.high %v441_v21, %v445_v23  ;;  %v8958_v59 = vcombine.low %v441_v21, %v445_v23 }
 0x39e   :  { %7435 = vmatprep.subr.bf16.mxu1 %v8871_v38  ;;  %v573_v47 = vld [vmem:[#allocation2 + $0xd78] sm:$0xff]  ;;  %v9094_v38 = vcombine.low %v577_v6, %v581_v9 }
 0x39f   :  { %7395 = vmatpush2.bf16.msra.mxu0 %v8742_v30  ;;  %v433_v30 = vld [vmem:[#allocation2 + $0x918] sm:$0xff] }
 0x3a0   :  { %7396 = vmatprep.subr.bf16.mxu0 %v8735_v14  ;;  %v565_v14 = vld [vmem:[#allocation2 + $0xd38] sm:$0xff] }
 0x3a1   :  { %7436 = vmatpush2.bf16.msra.mxu1 %v8870_v58  ;;  %v437_v58 = vld [vmem:[#allocation2 + $0x938] sm:$0xff] }
 0x3a2   :  { %7437 = vmatprep.subr.bf16.mxu1 %v8863_v27  ;;  %v8951_v51 = vcombine.high %v433_v30, %v437_v58  ;;  %v557_v60 = vld [vmem:[#allocation2 + $0xcf8] sm:$0xff]  ;;  %v8950_v62 = vcombine.low %v433_v30, %v437_v58 }
 0x3a3   :  { %7397 = vmatpush2.bf16.msra.mxu0 %v8734_v41  ;;  %v649_v30 = vld [vmem:[#allocation2 + $0xfd8] sm:$0xff] }
 0x3a4   :  { %7398 = vmatprep.subr.bf16.mxu0 %v8727_v52  ;;  %v425_v52 = vld [vmem:[#allocation2 + $0x8d8] sm:$0xff] }
 0x3a5   :  { %7438 = vmatpush2.bf16.msra.mxu1 %v8862_v31  ;;  %v653_v58 = vld [vmem:[#allocation2 + $0xff8] sm:$0xff] }
 0x3a6   :  { %7439 = vmatprep.subr.bf16.mxu1 %v8855_v56  ;;  %v553_v56 = vld [vmem:[#allocation2 + $0xcd8] sm:$0xff] }
 0x3a7   :  { %7399 = vmatpush2.bf16.msra.mxu0 %v8726_v0  ;;  %v9071_v42 = vcombine.high %v553_v56, %v557_v60  ;;  %v417_v0 = vld [vmem:[#allocation2 + $0x898] sm:$0xff]  ;;  %v9070_v22 = vcombine.low %v553_v56, %v557_v60 }
 0x3a8   :  { %7450 = vmatprep.subr.bf16.mxu0 %v8975_v3  ;;  %v545_v3 = vld [vmem:[#allocation2 + $0xc98] sm:$0xff] }
 0x3a9   :  { %7440 = vmatpush2.bf16.msra.mxu1 %v8854_v1  ;;  %v421_v1 = vld [vmem:[#allocation2 + $0x8b8] sm:$0xff] }
 0x3aa   :  { %7491 = vmatprep.subr.bf16.mxu1 %v9103_v5  ;;  %v7156_v24 = vpop.f32.mrf.mxu0  ;;  %7401 = vmatmul.mubr.bf16.vlgmr.msra.gmra.mxu0 %v10306_v16  ;;  %v9087_v16 = vcombine.high %v569_v25, %v573_v47  ;;  %v549_v5 = vld [vmem:[#allocation2 + $0xcb8] sm:$0xff]  ;;  %v8935_v6 = vcombine.high %v417_v0, %v421_v1  ;;  %v8934_v21 = vcombine.low %v417_v0, %v421_v1 }
 0x3ab   :  { %v7157_v26 = vadd.f32 %v7156_v24, %v10489_v13  ;;  %7451 = vmatpush1.bf16.msra.mxu0 %v8974_v11  ;;  %7482 = vmatprep.mubr.bf16.mxu0 %v10324_v28  ;;  %v429_v28 = vld [vmem:[#allocation2 + $0x8f8] sm:$0xff]  ;;  %v9063_v9 = vcombine.high %v545_v3, %v549_v5  ;;  %v9062_v23 = vcombine.low %v545_v3, %v549_v5 }
 0x3ac   :  { %v7197_v54 = vpop.f32.mrf.mxu1  ;;  %7442 = vmatmul.mubr.bf16.vlgmr.msra.gmra.mxu1 %v10315_v20  ;;  %v7158_v35 = vpop.f32.mrf.mxu0  ;;  %7452 = vmatprep.subr.bf16.mxu0 %v8967_v12  ;;  %v561_v20 = vld [vmem:[#allocation2 + $0xd18] sm:$0xff]  ;;  %v8943_v63 = vcombine.high %v425_v52, %v429_v28  ;;  %v8942_v7 = vcombine.low %v425_v52, %v429_v28 }
 0x3ad   :  { %7492 = vmatpush1.bf16.msra.mxu1 %v9102_v10  ;;  %v10498_v43 = vadd.f32 %v7197_v54, %v7157_v26  ;;  %v7159_v44 = vadd.f32 %v7158_v35, %v10493_v33  ;;  %7523 = vmatprep.mubr.bf16.mxu1 %v10329_v29  ;;  %v9086_v33 = vcombine.low %v569_v25, %v573_v47  ;;  %v409_v11 = vld [vmem:[#allocation2 + $0x858] sm:$0xff] }
 0x3ae   :  { %v7199_v45 = vpop.f32.mrf.mxu1  ;;  %7493 = vmatprep.subr.bf16.mxu1 %v9095_v17  ;;  %v7160_v13 = vpop.f32.mrf.mxu0  ;;  %v9079_v31 = vcombine.high %v561_v20, %v565_v14  ;;  %v9078_v29 = vcombine.low %v561_v20, %v565_v14  ;;  %v413_v10 = vld [vmem:[#allocation2 + $0x878] sm:$0xff] }
 0x3af   :  { %v10503_v27 = vadd.f32 %v7199_v45, %v7159_v44  ;;  %7453 = vmatpush1.bf16.msra.mxu0 %v8966_v34  ;;  %v537_v12 = vld [vmem:[#allocation2 + $0xc58] sm:$0xff]  ;;  %v8927_v24 = vcombine.high %v409_v11, %v413_v10  ;;  %v8926_v35 = vcombine.low %v409_v11, %v413_v10 }
 0x3b0   :  { %v7201_v19 = vpop.f32.mrf.mxu1  ;;  %v7161_v50 = vpop.f32.mrf.mxu0  ;;  %7454 = vmatprep.subr.bf16.mxu0 %v8959_v37  ;;  %v541_v17 = vld [vmem:[#allocation2 + $0xc78] sm:$0xff] }
 0x3b1   :  { %7494 = vmatpush1.bf16.msra.mxu1 %v9094_v38  ;;  %v9055_v25 = vcombine.high %v537_v12, %v541_v17  ;;  %v401_v47 = vld [vmem:[#allocation2 + $0x818] sm:$0xff]  ;;  %v9054_v38 = vcombine.low %v537_v12, %v541_v17  ;;  %v9167_v19 = vcombine.high %v649_v30, %v653_v58 }
 0x3b2   :  { %v7202_v41 = vpop.f32.mrf.mxu1  ;;  %7495 = vmatprep.subr.bf16.mxu1 %v9087_v16  ;;  %v405_v26 = vld [vmem:[#allocation2 + $0x838] sm:$0xff] }
 0x3b3   :  { %7455 = vmatpush1.bf16.msra.mxu0 %v8958_v59  ;;  %v529_v54 = vld [vmem:[#allocation2 + $0xc18] sm:$0xff]  ;;  %v8919_v37 = vcombine.high %v401_v47, %v405_v26  ;;  %v8918_v13 = vcombine.low %v401_v47, %v405_v26 }
 0x3b4   :  { %7456 = vmatprep.subr.bf16.mxu0 %v8951_v51  ;;  %v533_v34 = vld [vmem:[#allocation2 + $0xc38] sm:$0xff] }
 0x3b5   :  { %7496 = vmatpush1.bf16.msra.mxu1 %v9086_v33  ;;  %v9047_v44 = vcombine.high %v529_v54, %v533_v34  ;;  %v521_v45 = vld [vmem:[#allocation2 + $0xbd8] sm:$0xff]  ;;  %v9046_v20 = vcombine.low %v529_v54, %v533_v34 }
 0x3b6   :  { %7497 = vmatprep.subr.bf16.mxu1 %v9079_v31  ;;  %v525_v16 = vld [vmem:[#allocation2 + $0xbf8] sm:$0xff]  ;;  %v9166_v31 = vcombine.low %v649_v30, %v653_v58 }
 0x3b7   :  { %7457 = vmatpush1.bf16.msra.mxu0 %v8950_v62  ;;  %v9039_v14 = vcombine.high %v521_v45, %v525_v16  ;;  %v513_v59 = vld [vmem:[#allocation2 + $0xb98] sm:$0xff]  ;;  %v9038_v41 = vcombine.low %v521_v45, %v525_v16 }
 0x3b8   :  { %7458 = vmatprep.subr.bf16.mxu0 %v8943_v63  ;;  %v517_v50 = vld [vmem:[#allocation2 + $0xbb8] sm:$0xff] }
 0x3b9   :  { %7498 = vmatpush1.bf16.msra.mxu1 %v9078_v29  ;;  %v641_v33 = vld [vmem:[#allocation2 + $0xf98] sm:$0xff]  ;;  %v9031_v52 = vcombine.high %v513_v59, %v517_v50  ;;  %v9030_v63 = vcombine.low %v513_v59, %v517_v50 }
 0x3ba   :  { %7499 = vmatprep.subr.bf16.mxu1 %v9071_v42  ;;  %v645_v51 = vld [vmem:[#allocation2 + $0xfb8] sm:$0xff] }
 0x3bb   :  { %7459 = vmatpush1.bf16.msra.mxu0 %v8942_v7  ;;  %v9159_v28 = vcombine.high %v641_v33, %v645_v51  ;;  %v505_v56 = vld [vmem:[#allocation2 + $0xb58] sm:$0xff]  ;;  %v9158_v42 = vcombine.low %v641_v33, %v645_v51 }
 0x3bc   :  { %7460 = vmatprep.subr.bf16.mxu0 %v8935_v6  ;;  %v509_v60 = vld [vmem:[#allocation2 + $0xb78] sm:$0xff] }
 0x3bd   :  { %7500 = vmatpush1.bf16.msra.mxu1 %v9070_v22  ;;  %v633_v62 = vld [vmem:[#allocation2 + $0xf58] sm:$0xff]  ;;  %v9023_v0 = vcombine.high %v505_v56, %v509_v60  ;;  %v9022_v6 = vcombine.low %v505_v56, %v509_v60 }
 0x3be   :  { %7501 = vmatprep.subr.bf16.mxu1 %v9063_v9  ;;  %v637_v29 = vld [vmem:[#allocation2 + $0xf78] sm:$0xff] }
 0x3bf   :  { %7461 = vmatpush1.bf16.msra.mxu0 %v8934_v21  ;;  %v9151_v1 = vcombine.high %v633_v62, %v637_v29  ;;  %v497_v3 = vld [vmem:[#allocation2 + $0xb18] sm:$0xff]  ;;  %v9150_v9 = vcombine.low %v633_v62, %v637_v29 }
 0x3c0   :  { %7462 = vmatprep.subr.bf16.mxu0 %v8927_v24  ;;  %v501_v5 = vld [vmem:[#allocation2 + $0xb38] sm:$0xff] }
 0x3c1   :  { %7502 = vmatpush1.bf16.msra.mxu1 %v9062_v23  ;;  %v625_v7 = vld [vmem:[#allocation2 + $0xf18] sm:$0xff]  ;;  %v9015_v11 = vcombine.high %v497_v3, %v501_v5  ;;  %v9014_v24 = vcombine.low %v497_v3, %v501_v5 }
 0x3c2   :  { %7503 = vmatprep.subr.bf16.mxu1 %v9055_v25  ;;  %v629_v22 = vld [vmem:[#allocation2 + $0xf38] sm:$0xff] }
 0x3c3   :  { %7463 = vmatpush1.bf16.msra.mxu0 %v8926_v35  ;;  %v9143_v10 = vcombine.high %v625_v7, %v629_v22  ;;  %v489_v12 = vld [vmem:[#allocation2 + $0xad8] sm:$0xff]  ;;  %v9142_v25 = vcombine.low %v625_v7, %v629_v22 }
 0x3c4   :  { %7464 = vmatprep.subr.bf16.mxu0 %v8919_v37  ;;  %v493_v17 = vld [vmem:[#allocation2 + $0xaf8] sm:$0xff] }
 0x3c5   :  { %7504 = vmatpush1.bf16.msra.mxu1 %v9054_v38  ;;  %v617_v21 = vld [vmem:[#allocation2 + $0xed8] sm:$0xff]  ;;  %v9007_v47 = vcombine.high %v489_v12, %v493_v17  ;;  %v9006_v37 = vcombine.low %v489_v12, %v493_v17 }
 0x3c6   :  { %7505 = vmatprep.subr.bf16.mxu1 %v9047_v44  ;;  %v621_v23 = vld [vmem:[#allocation2 + $0xef8] sm:$0xff] }
 0x3c7   :  { %7465 = vmatpush1.bf16.msra.mxu0 %v8918_v13  ;;  %v9135_v26 = vcombine.high %v617_v21, %v621_v23  ;;  %v481_v54 = vld [vmem:[#allocation2 + $0xa98] sm:$0xff]  ;;  %v9134_v44 = vcombine.low %v617_v21, %v621_v23 }
 0x3c8   :  { %7466 = vmatprep.subr.bf16.mxu0 %v9039_v14  ;;  %v485_v34 = vld [vmem:[#allocation2 + $0xab8] sm:$0xff] }
 0x3c9   :  { %7506 = vmatpush1.bf16.msra.mxu1 %v9046_v20  ;;  %v609_v35 = vld [vmem:[#allocation2 + $0xe98] sm:$0xff]  ;;  %v8999_v45 = vcombine.high %v481_v54, %v485_v34  ;;  %v8998_v14 = vcombine.low %v481_v54, %v485_v34 }
 0x3ca   :  { %7507 = vmatprep.subr.bf16.mxu1 %v9167_v19  ;;  %v613_v38 = vld [vmem:[#allocation2 + $0xeb8] sm:$0xff] }
 0x3cb   :  { %7467 = vmatpush2.bf16.msra.mxu0 %v9038_v41  ;;  %v9127_v16 = vcombine.high %v609_v35, %v613_v38  ;;  %v473_v30 = vld [vmem:[#allocation2 + $0xa58] sm:$0xff]  ;;  %v9126_v19 = vcombine.low %v609_v35, %v613_v38 }
 0x3cc   :  { %7468 = vmatprep.subr.bf16.mxu0 %v9031_v52  ;;  %v477_v58 = vld [vmem:[#allocation2 + $0xa78] sm:$0xff] }
 0x3cd   :  { %7508 = vmatpush2.bf16.msra.mxu1 %v9166_v31  ;;  %v601_v13 = vld [vmem:[#allocation2 + $0xe58] sm:$0xff]  ;;  %v8991_v59 = vcombine.high %v473_v30, %v477_v58  ;;  %v8990_v52 = vcombine.low %v473_v30, %v477_v58 }
 0x3ce   :  { %7509 = vmatprep.subr.bf16.mxu1 %v9159_v28  ;;  %v605_v20 = vld [vmem:[#allocation2 + $0xe78] sm:$0xff] }
 0x3cf   :  { %7469 = vmatpush2.bf16.msra.mxu0 %v9030_v63  ;;  %v9119_v50 = vcombine.high %v601_v13, %v605_v20  ;;  %v465_v33 = vld [vmem:[#allocation2 + $0xa18] sm:$0xff]  ;;  %v9118_v28 = vcombine.low %v601_v13, %v605_v20 }
 0x3d0   :  { %7470 = vmatprep.subr.bf16.mxu0 %v9023_v0  ;;  %v469_v51 = vld [vmem:[#allocation2 + $0xa38] sm:$0xff] }
 0x3d1   :  { %7510 = vmatpush2.bf16.msra.mxu1 %v9158_v42  ;;  %v593_v41 = vld [vmem:[#allocation2 + $0xe18] sm:$0xff]  ;;  %v8983_v56 = vcombine.high %v465_v33, %v469_v51  ;;  %v8982_v0 = vcombine.low %v465_v33, %v469_v51 }
 0x3d2   :  { %7511 = vmatprep.subr.bf16.mxu1 %v9151_v1  ;;  %v597_v31 = vld [vmem:[#allocation2 + $0xe38] sm:$0xff] }
 0x3d3   :  { %7471 = vmatpush2.bf16.msra.mxu0 %v9022_v6  ;;  %v9111_v60 = vcombine.high %v593_v41, %v597_v31  ;;  %v713_v62 = vld [vmem:[#allocation2 + $0x11d8] sm:$0xff]  ;;  %v9110_v1 = vcombine.low %v593_v41, %v597_v31 }
 0x3d4   :  { %7472 = vmatprep.subr.bf16.mxu0 %v9015_v11  ;;  %v717_v29 = vld [vmem:[#allocation2 + $0x11f8] sm:$0xff] }
 0x3d5   :  { %7512 = vmatpush2.bf16.msra.mxu1 %v9150_v9  ;;  %v841_v63 = vld [vmem:[#allocation2 + $0x15d8] sm:$0xff]  ;;  %v9231_v3 = vcombine.high %v713_v62, %v717_v29  ;;  %v9230_v11 = vcombine.low %v713_v62, %v717_v29 }
 0x3d6   :  { %7513 = vmatprep.subr.bf16.mxu1 %v9143_v10  ;;  %v845_v42 = vld [vmem:[#allocation2 + $0x15f8] sm:$0xff] }
 0x3d7   :  { %7473 = vmatpush2.bf16.msra.mxu0 %v9014_v24  ;;  %v9359_v5 = vcombine.high %v841_v63, %v845_v42  ;;  %v705_v7 = vld [vmem:[#allocation2 + $0x1198] sm:$0xff]  ;;  %v9358_v10 = vcombine.low %v841_v63, %v845_v42 }
 0x3d8   :  { %7474 = vmatprep.subr.bf16.mxu0 %v9007_v47  ;;  %v709_v22 = vld [vmem:[#allocation2 + $0x11b8] sm:$0xff] }
 0x3d9   :  { %7514 = vmatpush2.bf16.msra.mxu1 %v9142_v25  ;;  %v833_v6 = vld [vmem:[#allocation2 + $0x1598] sm:$0xff]  ;;  %v9223_v12 = vcombine.high %v705_v7, %v709_v22  ;;  %v9222_v34 = vcombine.low %v705_v7, %v709_v22 }
 0x3da   :  { %7515 = vmatprep.subr.bf16.mxu1 %v9135_v26  ;;  %v837_v9 = vld [vmem:[#allocation2 + $0x15b8] sm:$0xff] }
 0x3db   :  { %7475 = vmatpush2.bf16.msra.mxu0 %v9006_v37  ;;  %v9351_v17 = vcombine.high %v833_v6, %v837_v9  ;;  %v697_v21 = vld [vmem:[#allocation2 + $0x1158] sm:$0xff]  ;;  %v9350_v38 = vcombine.low %v833_v6, %v837_v9 }
 0x3dc   :  { %7476 = vmatprep.subr.bf16.mxu0 %v8999_v45  ;;  %v701_v23 = vld [vmem:[#allocation2 + $0x1178] sm:$0xff] }
 0x3dd   :  { %7516 = vmatpush2.bf16.msra.mxu1 %v9134_v44  ;;  %v825_v25 = vld [vmem:[#allocation2 + $0x1558] sm:$0xff]  ;;  %v9215_v37 = vcombine.high %v697_v21, %v701_v23 }
 0x3de   :  { %7517 = vmatprep.subr.bf16.mxu1 %v9127_v16  ;;  %v829_v47 = vld [vmem:[#allocation2 + $0x1578] sm:$0xff] }
 0x3df   :  { %7477 = vmatpush2.bf16.msra.mxu0 %v8998_v14  ;;  %v689_v30 = vld [vmem:[#allocation2 + $0x1118] sm:$0xff] }
 0x3e0   :  { %7478 = vmatprep.subr.bf16.mxu0 %v8991_v59  ;;  %v693_v58 = vld [vmem:[#allocation2 + $0x1138] sm:$0xff] }
 0x3e1   :  { %7518 = vmatpush2.bf16.msra.mxu1 %v9126_v19  ;;  %v821_v13 = vld [vmem:[#allocation2 + $0x1538] sm:$0xff]  ;;  %v9214_v19 = vcombine.low %v697_v21, %v701_v23 }
 0x3e2   :  { %7519 = vmatprep.subr.bf16.mxu1 %v9119_v50  ;;  %v9207_v50 = vcombine.high %v689_v30, %v693_v58  ;;  %v681_v41 = vld [vmem:[#allocation2 + $0x10d8] sm:$0xff] }
 0x3e3   :  { %7479 = vmatpush2.bf16.msra.mxu0 %v8990_v52  ;;  %v809_v31 = vld [vmem:[#allocation2 + $0x14d8] sm:$0xff] }
 0x3e4   :  { %7480 = vmatprep.subr.bf16.mxu0 %v8983_v56  ;;  %v813_v52 = vld [vmem:[#allocation2 + $0x14f8] sm:$0xff] }
 0x3e5   :  { %7520 = vmatpush2.bf16.msra.mxu1 %v9118_v28  ;;  %v9206_v28 = vcombine.low %v689_v30, %v693_v58  ;;  %v673_v62 = vld [vmem:[#allocation2 + $0x1098] sm:$0xff] }
 0x3e6   :  { %7521 = vmatprep.subr.bf16.mxu1 %v9111_v60  ;;  %v9327_v60 = vcombine.high %v809_v31, %v813_v52  ;;  %v677_v29 = vld [vmem:[#allocation2 + $0x10b8] sm:$0xff] }
 0x3e7   :  { %7481 = vmatpush2.bf16.msra.mxu0 %v8982_v0  ;;  %v801_v63 = vld [vmem:[#allocation2 + $0x1498] sm:$0xff] }
 0x3e8   :  { %7532 = vmatprep.subr.bf16.mxu0 %v9231_v3  ;;  %v805_v42 = vld [vmem:[#allocation2 + $0x14b8] sm:$0xff]  ;;  %v9191_v3 = vcombine.high %v673_v62, %v677_v29 }
 0x3e9   :  { %7522 = vmatpush2.bf16.msra.mxu1 %v9110_v1  ;;  %v9326_v1 = vcombine.low %v809_v31, %v813_v52  ;;  %v665_v7 = vld [vmem:[#allocation2 + $0x1058] sm:$0xff] }
 0x3ea   :  { %7573 = vmatprep.subr.bf16.mxu1 %v9359_v5  ;;  %v7238_v24 = vpop.f32.mrf.mxu0  ;;  %7483 = vmatmul.mubr.bf16.vlgmr.msra.gmra.mxu0 %v10341_v39  ;;  %v9343_v39 = vcombine.high %v825_v25, %v829_v47  ;;  %v9319_v5 = vcombine.high %v801_v63, %v805_v42  ;;  %v669_v22 = vld [vmem:[#allocation2 + $0x1078] sm:$0xff] }
 0x3eb   :  { %v7239_v26 = vadd.f32 %v7238_v24, %v10498_v43  ;;  %7533 = vmatpush1.bf16.msra.mxu0 %v9230_v11  ;;  %7564 = vmatprep.mubr.bf16.mxu0 %v10354_v48  ;;  %v685_v48 = vld [vmem:[#allocation2 + $0x10f8] sm:$0xff]  ;;  %v9190_v11 = vcombine.low %v673_v62, %v677_v29 }
 0x3ec   :  { %v7279_v54 = vpop.f32.mrf.mxu1  ;;  %7524 = vmatmul.mubr.bf16.vlgmr.msra.gmra.mxu1 %v10345_v40  ;;  %v7240_v35 = vpop.f32.mrf.mxu0  ;;  %7534 = vmatprep.subr.bf16.mxu0 %v9223_v12  ;;  %v817_v40 = vld [vmem:[#allocation2 + $0x1518] sm:$0xff]  ;;  %v9199_v56 = vcombine.high %v681_v41, %v685_v48  ;;  %v9198_v0 = vcombine.low %v681_v41, %v685_v48  ;;  %v9183_v12 = vcombine.high %v665_v7, %v669_v22 }
 0x3ed   :  { %7574 = vmatpush1.bf16.msra.mxu1 %v9358_v10  ;;  %v10508_v44 = vadd.f32 %v7279_v54, %v7239_v26  ;;  %v7241_v45 = vadd.f32 %v7240_v35, %v10503_v27  ;;  %7605 = vmatprep.mubr.bf16.mxu1 %v10359_v49  ;;  %v9342_v27 = vcombine.low %v825_v25, %v829_v47  ;;  %v793_v6 = vld [vmem:[#allocation2 + $0x1458] sm:$0xff] }
 0x3ee   :  { %v7281_v16 = vpop.f32.mrf.mxu1  ;;  %7575 = vmatprep.subr.bf16.mxu1 %v9351_v17  ;;  %v7242_v43 = vpop.f32.mrf.mxu0  ;;  %v9335_v51 = vcombine.high %v817_v40, %v821_v13  ;;  %v9334_v49 = vcombine.low %v817_v40, %v821_v13  ;;  %v797_v9 = vld [vmem:[#allocation2 + $0x1478] sm:$0xff]  ;;  %v9318_v10 = vcombine.low %v801_v63, %v805_v42  ;;  %v9182_v47 = vcombine.low %v665_v7, %v669_v22 }
 0x3ef   :  { %v10513_v20 = vadd.f32 %v7281_v16, %v7241_v45  ;;  %7535 = vmatpush1.bf16.msra.mxu0 %v9222_v34  ;;  %v9311_v17 = vcombine.high %v793_v6, %v797_v9  ;;  %v657_v21 = vld [vmem:[#allocation2 + $0x1018] sm:$0xff]  ;;  %v9310_v26 = vcombine.low %v793_v6, %v797_v9 }
 0x3f0   :  { %v7283_v14 = vpop.f32.mrf.mxu1  ;;  %v7243_v59 = vpop.f32.mrf.mxu0  ;;  %7536 = vmatprep.subr.bf16.mxu0 %v9215_v37  ;;  %v661_v23 = vld [vmem:[#allocation2 + $0x1038] sm:$0xff] }
 0x3f1   :  { %7576 = vmatpush1.bf16.msra.mxu1 %v9350_v38  ;;  %v785_v24 = vld [vmem:[#allocation2 + $0x1418] sm:$0xff]  ;;  %v9175_v54 = vcombine.high %v657_v21, %v661_v23  ;;  %v9174_v16 = vcombine.low %v657_v21, %v661_v23 }
 0x3f2   :  { %v7284_v33 = vpop.f32.mrf.mxu1  ;;  %7577 = vmatprep.subr.bf16.mxu1 %v9343_v39  ;;  %v789_v25 = vld [vmem:[#allocation2 + $0x1438] sm:$0xff] }
 0x3f3   :  { %7537 = vmatpush1.bf16.msra.mxu0 %v9214_v19  ;;  %v9303_v34 = vcombine.high %v785_v24, %v789_v25  ;;  %v777_v35 = vld [vmem:[#allocation2 + $0x13d8] sm:$0xff]  ;;  %v9302_v39 = vcombine.low %v785_v24, %v789_v25 }
 0x3f4   :  { %7538 = vmatprep.subr.bf16.mxu0 %v9207_v50  ;;  %v781_v38 = vld [vmem:[#allocation2 + $0x13f8] sm:$0xff] }
 0x3f5   :  { %7578 = vmatpush1.bf16.msra.mxu1 %v9342_v27  ;;  %v905_v37 = vld [vmem:[#allocation2 + $0x17d8] sm:$0xff]  ;;  %v9295_v30 = vcombine.high %v777_v35, %v781_v38  ;;  %v9294_v19 = vcombine.low %v777_v35, %v781_v38 }
 0x3f6   :  { %7579 = vmatprep.subr.bf16.mxu1 %v9335_v51  ;;  %v909_v45 = vld [vmem:[#allocation2 + $0x17f8] sm:$0xff] }
 0x3f7   :  { %7539 = vmatpush1.bf16.msra.mxu0 %v9206_v28  ;;  %v9423_v58 = vcombine.high %v905_v37, %v909_v45  ;;  %v769_v43 = vld [vmem:[#allocation2 + $0x1398] sm:$0xff]  ;;  %v9422_v59 = vcombine.low %v905_v37, %v909_v45 }
 0x3f8   :  { %7540 = vmatprep.subr.bf16.mxu0 %v9199_v56  ;;  %v773_v40 = vld [vmem:[#allocation2 + $0x13b8] sm:$0xff] }
 0x3f9   :  { %7580 = vmatpush1.bf16.msra.mxu1 %v9334_v49  ;;  %v897_v13 = vld [vmem:[#allocation2 + $0x1798] sm:$0xff]  ;;  %v9287_v27 = vcombine.high %v769_v43, %v773_v40  ;;  %v9286_v31 = vcombine.low %v769_v43, %v773_v40 }
 0x3fa   :  { %7581 = vmatprep.subr.bf16.mxu1 %v9327_v60  ;;  %v901_v14 = vld [vmem:[#allocation2 + $0x17b8] sm:$0xff] }
 0x3fb   :  { %7541 = vmatpush1.bf16.msra.mxu0 %v9198_v0  ;;  %v9415_v50 = vcombine.high %v897_v13, %v901_v14  ;;  %v761_v33 = vld [vmem:[#allocation2 + $0x1358] sm:$0xff]  ;;  %v9414_v52 = vcombine.low %v897_v13, %v901_v14 }
 0x3fc   :  { %7542 = vmatprep.subr.bf16.mxu0 %v9191_v3  ;;  %v765_v51 = vld [vmem:[#allocation2 + $0x1378] sm:$0xff] }
 0x3fd   :  { %7582 = vmatpush1.bf16.msra.mxu1 %v9326_v1  ;;  %v889_v41 = vld [vmem:[#allocation2 + $0x1758] sm:$0xff]  ;;  %v9279_v28 = vcombine.high %v761_v33, %v765_v51  ;;  %v9278_v63 = vcombine.low %v761_v33, %v765_v51 }
 0x3fe   :  { %7583 = vmatprep.subr.bf16.mxu1 %v9319_v5  ;;  %v893_v48 = vld [vmem:[#allocation2 + $0x1778] sm:$0xff] }
 0x3ff   :  { %7543 = vmatpush1.bf16.msra.mxu0 %v9190_v11  ;;  %v9407_v49 = vcombine.high %v889_v41, %v893_v48  ;;  %v753_v56 = vld [vmem:[#allocation2 + $0x1318] sm:$0xff]  ;;  %v9406_v42 = vcombine.low %v889_v41, %v893_v48 }
 0x400   :  { %7544 = vmatprep.subr.bf16.mxu0 %v9183_v12  ;;  %v757_v60 = vld [vmem:[#allocation2 + $0x1338] sm:$0xff] }
 0x401   :  { %7584 = vmatpush1.bf16.msra.mxu1 %v9318_v10  ;;  %v881_v62 = vld [vmem:[#allocation2 + $0x1718] sm:$0xff]  ;;  %v9271_v0 = vcombine.high %v753_v56, %v757_v60  ;;  %v9270_v6 = vcombine.low %v753_v56, %v757_v60 }
 0x402   :  { %7585 = vmatprep.subr.bf16.mxu1 %v9311_v17  ;;  %v885_v29 = vld [vmem:[#allocation2 + $0x1738] sm:$0xff] }
 0x403   :  { %7545 = vmatpush1.bf16.msra.mxu0 %v9182_v47  ;;  %v9399_v1 = vcombine.high %v881_v62, %v885_v29  ;;  %v745_v3 = vld [vmem:[#allocation2 + $0x12d8] sm:$0xff]  ;;  %v9398_v9 = vcombine.low %v881_v62, %v885_v29 }
 0x404   :  { %7546 = vmatprep.subr.bf16.mxu0 %v9175_v54  ;;  %v749_v5 = vld [vmem:[#allocation2 + $0x12f8] sm:$0xff] }
 0x405   :  { %7586 = vmatpush1.bf16.msra.mxu1 %v9310_v26  ;;  %v873_v7 = vld [vmem:[#allocation2 + $0x16d8] sm:$0xff]  ;;  %v9263_v11 = vcombine.high %v745_v3, %v749_v5  ;;  %v9262_v24 = vcombine.low %v745_v3, %v749_v5 }
 0x406   :  { %7587 = vmatprep.subr.bf16.mxu1 %v9303_v34  ;;  %v877_v22 = vld [vmem:[#allocation2 + $0x16f8] sm:$0xff] }
 0x407   :  { %7547 = vmatpush1.bf16.msra.mxu0 %v9174_v16  ;;  %v9391_v10 = vcombine.high %v873_v7, %v877_v22  ;;  %v737_v12 = vld [vmem:[#allocation2 + $0x1298] sm:$0xff]  ;;  %v9390_v25 = vcombine.low %v873_v7, %v877_v22 }
 0x408   :  { %7548 = vmatprep.subr.bf16.mxu0 %v9295_v30  ;;  %v741_v17 = vld [vmem:[#allocation2 + $0x12b8] sm:$0xff] }
 0x409   :  { %7588 = vmatpush1.bf16.msra.mxu1 %v9302_v39  ;;  %v865_v21 = vld [vmem:[#allocation2 + $0x1698] sm:$0xff]  ;;  %v9255_v47 = vcombine.high %v737_v12, %v741_v17  ;;  %v9254_v37 = vcombine.low %v737_v12, %v741_v17 }
 0x40a   :  { %7589 = vmatprep.subr.bf16.mxu1 %v9423_v58  ;;  %v869_v23 = vld [vmem:[#allocation2 + $0x16b8] sm:$0xff] }
 0x40b   :  { %7549 = vmatpush2.bf16.msra.mxu0 %v9294_v19  ;;  %v9383_v26 = vcombine.high %v865_v21, %v869_v23  ;;  %v729_v54 = vld [vmem:[#allocation2 + $0x1258] sm:$0xff]  ;;  %v9382_v45 = vcombine.low %v865_v21, %v869_v23 }
 0x40c   :  { %7550 = vmatprep.subr.bf16.mxu0 %v9287_v27  ;;  %v733_v34 = vld [vmem:[#allocation2 + $0x1278] sm:$0xff] }
 0x40d   :  { %7590 = vmatpush2.bf16.msra.mxu1 %v9422_v59  ;;  %v857_v35 = vld [vmem:[#allocation2 + $0x1658] sm:$0xff]  ;;  %v9247_v16 = vcombine.high %v729_v54, %v733_v34  ;;  %v9246_v13 = vcombine.low %v729_v54, %v733_v34 }
 0x40e   :  { %7591 = vmatprep.subr.bf16.mxu1 %v9415_v50  ;;  %v861_v38 = vld [vmem:[#allocation2 + $0x1678] sm:$0xff] }
 0x40f   :  { %7551 = vmatpush2.bf16.msra.mxu0 %v9286_v31  ;;  %v9375_v39 = vcombine.high %v857_v35, %v861_v38  ;;  %v721_v30 = vld [vmem:[#allocation2 + $0x1218] sm:$0xff]  ;;  %v9374_v14 = vcombine.low %v857_v35, %v861_v38 }
 0x410   :  { %7552 = vmatprep.subr.bf16.mxu0 %v9279_v28  ;;  %v725_v58 = vld [vmem:[#allocation2 + $0x1238] sm:$0xff] }
 0x411   :  { %7592 = vmatpush2.bf16.msra.mxu1 %v9414_v52  ;;  %v849_v43 = vld [vmem:[#allocation2 + $0x1618] sm:$0xff]  ;;  %v9239_v19 = vcombine.high %v721_v30, %v725_v58  ;;  %v9238_v41 = vcombine.low %v721_v30, %v725_v58 }
 0x412   :  { %7593 = vmatprep.subr.bf16.mxu1 %v9407_v49  ;;  %v853_v40 = vld [vmem:[#allocation2 + $0x1638] sm:$0xff] }
 0x413   :  { %7553 = vmatpush2.bf16.msra.mxu0 %v9278_v63  ;;  %v9367_v59 = vcombine.high %v849_v43, %v853_v40  ;;  %v969_v27 = vld [vmem:[#allocation2 + $0x19d8] sm:$0xff]  ;;  %v9366_v48 = vcombine.low %v849_v43, %v853_v40 }
 0x414   :  { %7554 = vmatprep.subr.bf16.mxu0 %v9271_v0  ;;  %v973_v50 = vld [vmem:[#allocation2 + $0x19f8] sm:$0xff] }
 0x415   :  { %7594 = vmatpush2.bf16.msra.mxu1 %v9406_v42  ;;  %v1097_v33 = vld [vmem:[#allocation2 + $0x1dd8] sm:$0xff]  ;;  %v9487_v31 = vcombine.high %v969_v27, %v973_v50  ;;  %v9486_v62 = vcombine.low %v969_v27, %v973_v50 }
 0x416   :  { %7595 = vmatprep.subr.bf16.mxu1 %v9399_v1  ;;  %v1101_v51 = vld [vmem:[#allocation2 + $0x1df8] sm:$0xff] }
 0x417   :  { %7555 = vmatpush2.bf16.msra.mxu0 %v9270_v6  ;;  %v9615_v52 = vcombine.high %v1097_v33, %v1101_v51  ;;  %v961_v28 = vld [vmem:[#allocation2 + $0x1998] sm:$0xff]  ;;  %v9614_v29 = vcombine.low %v1097_v33, %v1101_v51 }
 0x418   :  { %7556 = vmatprep.subr.bf16.mxu0 %v9263_v11  ;;  %v965_v49 = vld [vmem:[#allocation2 + $0x19b8] sm:$0xff] }
 0x419   :  { %7596 = vmatpush2.bf16.msra.mxu1 %v9398_v9  ;;  %v1089_v56 = vld [vmem:[#allocation2 + $0x1d98] sm:$0xff]  ;;  %v9479_v63 = vcombine.high %v961_v28, %v965_v49  ;;  %v9478_v9 = vcombine.low %v961_v28, %v965_v49 }
 0x41a   :  { %7597 = vmatprep.subr.bf16.mxu1 %v9391_v10  ;;  %v1093_v60 = vld [vmem:[#allocation2 + $0x1db8] sm:$0xff] }
 0x41b   :  { %7557 = vmatpush2.bf16.msra.mxu0 %v9262_v24  ;;  %v9607_v42 = vcombine.high %v1089_v56, %v1093_v60  ;;  %v953_v0 = vld [vmem:[#allocation2 + $0x1958] sm:$0xff]  ;;  %v9606_v10 = vcombine.low %v1089_v56, %v1093_v60 }
 0x41c   :  { %7558 = vmatprep.subr.bf16.mxu0 %v9255_v47  ;;  %v957_v1 = vld [vmem:[#allocation2 + $0x1978] sm:$0xff] }
 0x41d   :  { %7598 = vmatpush2.bf16.msra.mxu1 %v9390_v25  ;;  %v1081_v5 = vld [vmem:[#allocation2 + $0x1d58] sm:$0xff]  ;;  %v9471_v12 = vcombine.high %v953_v0, %v957_v1  ;;  %v9470_v34 = vcombine.low %v953_v0, %v957_v1 }
 0x41e   :  { %7599 = vmatprep.subr.bf16.mxu1 %v9383_v26  ;;  %v1085_v7 = vld [vmem:[#allocation2 + $0x1d78] sm:$0xff] }
 0x41f   :  { %7559 = vmatpush2.bf16.msra.mxu0 %v9254_v37  ;;  %v945_v24 = vld [vmem:[#allocation2 + $0x1918] sm:$0xff] }
 0x420   :  { %7560 = vmatprep.subr.bf16.mxu0 %v9247_v16  ;;  %v949_v25 = vld [vmem:[#allocation2 + $0x1938] sm:$0xff] }
 0x421   :  { %7600 = vmatpush2.bf16.msra.mxu1 %v9382_v45  ;;  %v1077_v47 = vld [vmem:[#allocation2 + $0x1d38] sm:$0xff]  ;;  %v9463_v38 = vcombine.high %v945_v24, %v949_v25  ;;  %v9462_v58 = vcombine.low %v945_v24, %v949_v25 }
 0x422   :  { %7601 = vmatprep.subr.bf16.mxu1 %v9375_v39  ;;  %v937_v16 = vld [vmem:[#allocation2 + $0x18d8] sm:$0xff] }
 0x423   :  { %7561 = vmatpush2.bf16.msra.mxu0 %v9246_v13  ;;  %v1065_v39 = vld [vmem:[#allocation2 + $0x1cd8] sm:$0xff] }
 0x424   :  { %7562 = vmatprep.subr.bf16.mxu0 %v9239_v19  ;;  %v1069_v30 = vld [vmem:[#allocation2 + $0x1cf8] sm:$0xff] }
 0x425   :  { %7602 = vmatpush2.bf16.msra.mxu1 %v9374_v14  ;;  %v9583_v40 = vcombine.high %v1065_v39, %v1069_v30  ;;  %v929_v13 = vld [vmem:[#allocation2 + $0x1898] sm:$0xff]  ;;  %v9582_v50 = vcombine.low %v1065_v39, %v1069_v30 }
 0x426   :  { %7603 = vmatprep.subr.bf16.mxu1 %v9367_v59  ;;  %v933_v14 = vld [vmem:[#allocation2 + $0x18b8] sm:$0xff] }
 0x427   :  { %7563 = vmatpush2.bf16.msra.mxu0 %v9238_v41  ;;  %v1057_v19 = vld [vmem:[#allocation2 + $0x1c98] sm:$0xff]  ;;  %v9447_v33 = vcombine.high %v929_v13, %v933_v14  ;;  %v9446_v28 = vcombine.low %v929_v13, %v933_v14 }
 0x428   :  { %7614 = vmatprep.subr.bf16.mxu0 %v9487_v31  ;;  %v1061_v59 = vld [vmem:[#allocation2 + $0x1cb8] sm:$0xff] }
 0x429   :  { %7604 = vmatpush2.bf16.msra.mxu1 %v9366_v48  ;;  %v9575_v51 = vcombine.high %v1057_v19, %v1061_v59  ;;  %v921_v41 = vld [vmem:[#allocation2 + $0x1858] sm:$0xff]  ;;  %v9574_v49 = vcombine.low %v1057_v19, %v1061_v59 }
 0x42a   :  { %7655 = vmatprep.subr.bf16.mxu1 %v9615_v52  ;;  %v7320_v3 = vpop.f32.mrf.mxu0  ;;  %7565 = vmatmul.mubr.bf16.vlgmr.msra.gmra.mxu0 %v10366_v4  ;;  %v9599_v4 = vcombine.high %v1081_v5, %v1085_v7  ;;  %v925_v48 = vld [vmem:[#allocation2 + $0x1878] sm:$0xff] }
 0x42b   :  { %v7321_v22 = vadd.f32 %v7320_v3, %v10508_v44  ;;  %7615 = vmatpush1.bf16.msra.mxu0 %v9486_v62  ;;  %7646 = vmatprep.mubr.bf16.mxu0 %v10384_v15  ;;  %v941_v15 = vld [vmem:[#allocation2 + $0x18f8] sm:$0xff]  ;;  %v9439_v56 = vcombine.high %v921_v41, %v925_v48  ;;  %v9438_v0 = vcombine.low %v921_v41, %v925_v48 }
 0x42c   :  { %v7361_v6 = vpop.f32.mrf.mxu1  ;;  %7606 = vmatmul.mubr.bf16.vlgmr.msra.gmra.mxu1 %v10375_v8  ;;  %v7322_v11 = vpop.f32.mrf.mxu0  ;;  %7616 = vmatprep.subr.bf16.mxu0 %v9479_v63  ;;  %v1073_v8 = vld [vmem:[#allocation2 + $0x1d18] sm:$0xff]  ;;  %v9455_v43 = vcombine.high %v937_v16, %v941_v15  ;;  %v9454_v27 = vcombine.low %v937_v16, %v941_v15 }
 0x42d   :  { %7656 = vmatpush1.bf16.msra.mxu1 %v9614_v29  ;;  %v10518_v17 = vadd.f32 %v7361_v6, %v7321_v22  ;;  %v7323_v21 = vadd.f32 %v7322_v11, %v10513_v20  ;;  %7687 = vmatprep.mubr.bf16.mxu1 %v10389_v18  ;;  %v9598_v20 = vcombine.low %v1081_v5, %v1085_v7  ;;  %v1049_v31 = vld [vmem:[#allocation2 + $0x1c58] sm:$0xff] }
 0x42e   :  { %v7363_v23 = vpop.f32.mrf.mxu1  ;;  %7657 = vmatprep.subr.bf16.mxu1 %v9607_v42  ;;  %v7324_v44 = vpop.f32.mrf.mxu0  ;;  %v9591_v45 = vcombine.high %v1073_v8, %v1077_v47  ;;  %v9590_v18 = vcombine.low %v1073_v8, %v1077_v47  ;;  %v1053_v52 = vld [vmem:[#allocation2 + $0x1c78] sm:$0xff] }
 0x42f   :  { %v10523_v26 = vadd.f32 %v7363_v23, %v7323_v21  ;;  %7617 = vmatpush1.bf16.msra.mxu0 %v9478_v9  ;;  %v9567_v60 = vcombine.high %v1049_v31, %v1053_v52  ;;  %v913_v62 = vld [vmem:[#allocation2 + $0x1818] sm:$0xff]  ;;  %v9566_v1 = vcombine.low %v1049_v31, %v1053_v52 }
 0x430   :  { %v7365_v54 = vpop.f32.mrf.mxu1  ;;  %v7325_v35 = vpop.f32.mrf.mxu0  ;;  %7618 = vmatprep.subr.bf16.mxu0 %v9471_v12  ;;  %v917_v29 = vld [vmem:[#allocation2 + $0x1838] sm:$0xff] }
 0x431   :  { %7658 = vmatpush1.bf16.msra.mxu1 %v9606_v10  ;;  %v1041_v63 = vld [vmem:[#allocation2 + $0x1c18] sm:$0xff]  ;;  %v9431_v3 = vcombine.high %v913_v62, %v917_v29  ;;  %v9430_v11 = vcombine.low %v913_v62, %v917_v29 }
 0x432   :  { %v7366_v37 = vpop.f32.mrf.mxu1  ;;  %7659 = vmatprep.subr.bf16.mxu1 %v9599_v4  ;;  %v1045_v42 = vld [vmem:[#allocation2 + $0x1c38] sm:$0xff] }
 0x433   :  { %7619 = vmatpush1.bf16.msra.mxu0 %v9470_v34  ;;  %v9559_v5 = vcombine.high %v1041_v63, %v1045_v42  ;;  %v1033_v7 = vld [vmem:[#allocation2 + $0x1bd8] sm:$0xff]  ;;  %v9558_v10 = vcombine.low %v1041_v63, %v1045_v42 }
 0x434   :  { %7620 = vmatprep.subr.bf16.mxu0 %v9463_v38  ;;  %v1037_v22 = vld [vmem:[#allocation2 + $0x1bf8] sm:$0xff] }
 0x435   :  { %7660 = vmatpush1.bf16.msra.mxu1 %v9598_v20  ;;  %v1161_v6 = vld [vmem:[#allocation2 + $0x1fd8] sm:$0xff]  ;;  %v9551_v12 = vcombine.high %v1033_v7, %v1037_v22  ;;  %v9550_v44 = vcombine.low %v1033_v7, %v1037_v22 }
 0x436   :  { %7661 = vmatprep.subr.bf16.mxu1 %v9591_v45  ;;  %v1165_v9 = vld [vmem:[#allocation2 + $0x1ff8] sm:$0xff] }
 0x437   :  { %7621 = vmatpush1.bf16.msra.mxu0 %v9462_v58  ;;  %v9679_v21 = vcombine.high %v1161_v6, %v1165_v9  ;;  %v1025_v23 = vld [vmem:[#allocation2 + $0x1b98] sm:$0xff]  ;;  %v9678_v8 = vcombine.low %v1161_v6, %v1165_v9 }
 0x438   :  { %7622 = vmatprep.subr.bf16.mxu0 %v9455_v43  ;;  %v1029_v4 = vld [vmem:[#allocation2 + $0x1bb8] sm:$0xff] }
 0x439   :  { %7662 = vmatpush1.bf16.msra.mxu1 %v9590_v18  ;;  %v1153_v24 = vld [vmem:[#allocation2 + $0x1f98] sm:$0xff]  ;;  %v9543_v47 = vcombine.high %v1025_v23, %v1029_v4  ;;  %v9542_v37 = vcombine.low %v1025_v23, %v1029_v4 }
 0x43a   :  { %7663 = vmatprep.subr.bf16.mxu1 %v9583_v40  ;;  %v1157_v25 = vld [vmem:[#allocation2 + $0x1fb8] sm:$0xff] }
 0x43b   :  { %7623 = vmatpush1.bf16.msra.mxu0 %v9454_v27  ;;  %v9671_v54 = vcombine.high %v1153_v24, %v1157_v25  ;;  %v1017_v34 = vld [vmem:[#allocation2 + $0x1b58] sm:$0xff]  ;;  %v9670_v45 = vcombine.low %v1153_v24, %v1157_v25  ;;  %v1194_v25 = vsub.s32 6, %v10395_v32 }
 0x43c   :  { %7624 = vmatprep.subr.bf16.mxu0 %v9447_v33  ;;  %v1021_v35 = vld [vmem:[#allocation2 + $0x1b78] sm:$0xff] }
 0x43d   :  { %7664 = vmatpush1.bf16.msra.mxu1 %v9582_v50  ;;  %v1145_v20 = vld [vmem:[#allocation2 + $0x1f58] sm:$0xff]  ;;  %v9535_v16 = vcombine.high %v1017_v34, %v1021_v35  ;;  %v9534_v43 = vcombine.low %v1017_v34, %v1021_v35  ;;  %v7697_v34 = vmax.f32 %v10443_v57, 0.0  ;;  %v7699_v35 = vmax.f32 %v10483_v2, 0.0 }
 0x43e   :  { %7665 = vmatprep.subr.bf16.mxu1 %v9575_v51  ;;  %v1149_v38 = vld [vmem:[#allocation2 + $0x1f78] sm:$0xff] }
 0x43f   :  { %7625 = vmatpush1.bf16.msra.mxu0 %v9446_v28  ;;  %v9663_v15 = vcombine.high %v1145_v20, %v1149_v38  ;;  %v1009_v39 = vld [vmem:[#allocation2 + $0x1b18] sm:$0xff]  ;;  %v9662_v40 = vcombine.low %v1145_v20, %v1149_v38  ;;  %v10025_v20 = vld [vmem:[#allocation4] sm:$0xff] }
 0x440   :  { %7626 = vmatprep.subr.bf16.mxu0 %v9439_v56  ;;  %v1013_v30 = vld [vmem:[#allocation2 + $0x1b38] sm:$0xff]  ;;  %v1195_v38 = vrot.slane %v10025_v20, %v1194_v25  ;;  %v9972_v25 = vld [vmem:[#allocation6 + $0x138] sm:$0xff]  }
 0x441   :  { %7666 = vmatpush1.bf16.msra.mxu1 %v9574_v49  ;;  %v1137_v58 = vld [vmem:[#allocation2 + $0x1f18] sm:$0xff]  ;;  %v9527_v13 = vcombine.high %v1009_v39, %v1013_v30  ;;  %v9526_v33 = vcombine.low %v1009_v39, %v1013_v30  ;;  %v7705_v39 = vpack.c.bf16 %v7697_v34, %v7697_v34 }
 0x442   :  { %7667 = vmatprep.subr.bf16.mxu1 %v9567_v60  ;;  %v1141_v18 = vld [vmem:[#allocation2 + $0x1f38] sm:$0xff] }
 0x443   :  { %7627 = vmatpush1.bf16.msra.mxu0 %v9438_v0  ;;  %v9655_v14 = vcombine.high %v1137_v58, %v1141_v18  ;;  %v1001_v19 = vld [vmem:[#allocation2 + $0x1ad8] sm:$0xff]  ;;  %v9654_v51 = vcombine.low %v1137_v58, %v1141_v18 }
 0x444   :  { %7628 = vmatprep.subr.bf16.mxu0 %v9431_v3  ;;  %v1005_v59 = vld [vmem:[#allocation2 + $0x1af8] sm:$0xff] }
 0x445   :  { %7668 = vmatpush1.bf16.msra.mxu1 %v9566_v1  ;;  %v1129_v27 = vld [vmem:[#allocation2 + $0x1ed8] sm:$0xff]  ;;  %v9519_v41 = vcombine.high %v1001_v19, %v1005_v59  ;;  %v9518_v56 = vcombine.low %v1001_v19, %v1005_v59 }
 0x446   :  { %7669 = vmatprep.subr.bf16.mxu1 %v9559_v5  ;;  %v1133_v50 = vld [vmem:[#allocation2 + $0x1ef8] sm:$0xff] }
 0x447   :  { %7629 = vmatpush1.bf16.msra.mxu0 %v9430_v11  ;;  %v9647_v48 = vcombine.high %v1129_v27, %v1133_v50  ;;  %v993_v31 = vld [vmem:[#allocation2 + $0x1a98] sm:$0xff]  ;;  %v9646_v60 = vcombine.low %v1129_v27, %v1133_v50 }
 0x448   :  { %7630 = vmatprep.subr.bf16.mxu0 %v9551_v12  ;;  %v997_v52 = vld [vmem:[#allocation2 + $0x1ab8] sm:$0xff] }
 0x449   :  { %7670 = vmatpush1.bf16.msra.mxu1 %v9558_v10  ;;  %v1121_v28 = vld [vmem:[#allocation2 + $0x1e98] sm:$0xff]  ;;  %v9511_v62 = vcombine.high %v993_v31, %v997_v52  ;;  %v9510_v3 = vcombine.low %v993_v31, %v997_v52  ;;  %v9952_v52 = vld [vmem:[#allocation6 + $0xe0] sm:$0xff]  }
 0x44a   :  { %7671 = vmatprep.subr.bf16.mxu1 %v9679_v21  ;;  %v1125_v49 = vld [vmem:[#allocation2 + $0x1eb8] sm:$0xff] }
 0x44b   :  { %7631 = vmatpush2.bf16.msra.mxu0 %v9550_v44  ;;  %v9639_v29 = vcombine.high %v1121_v28, %v1125_v49  ;;  %v985_v63 = vld [vmem:[#allocation2 + $0x1a58] sm:$0xff]  ;;  %v9638_v5 = vcombine.low %v1121_v28, %v1125_v49  ;;  %v9953_v28 = vld [vmem:[#allocation6 + $0x20] sm:$0xff]  }
 0x44c   :  { %7632 = vmatprep.subr.bf16.mxu0 %v9543_v47  ;;  %v989_v42 = vld [vmem:[#allocation2 + $0x1a78] sm:$0xff]  ;;  %v9940_v47 = vld [vmem:[#allocation6 + $0xf8] sm:$0xff]   ;;  %v9954_v49 = vld [vmem:[#allocation6 + $0xa0] sm:$0xff]  }
 0x44d   :  { %7672 = vmatpush2.bf16.msra.mxu1 %v9678_v8  ;;  %v1113_v0 = vld [vmem:[#allocation2 + $0x1e58] sm:$0xff]  ;;  %v9503_v7 = vcombine.high %v985_v63, %v989_v42  ;;  %v9502_v12 = vcombine.low %v985_v63, %v989_v42  ;;  %v9939_v8 = vld [vmem:[#allocation6 + $0x78] sm:$0xff]  }
 0x44e   :  { %7673 = vmatprep.subr.bf16.mxu1 %v9671_v54  ;;  %v1117_v1 = vld [vmem:[#allocation2 + $0x1e78] sm:$0xff]  ;;  %v1198_v54 = vsub.s32 7, %v10395_v32  ;;  %v7707_v32 = vpack.c.bf16 %v7699_v35, %v7699_v35 }
 0x44f   :  { %7633 = vmatpush2.bf16.msra.mxu0 %v9542_v37  ;;  %v9631_v22 = vcombine.high %v1113_v0, %v1117_v1  ;;  %v977_v6 = vld [vmem:[#allocation2 + $0x1a18] sm:$0xff]  ;;  %v9630_v21 = vcombine.low %v1113_v0, %v1117_v1  ;;  %v9941_v37 = vld [vmem:[#allocation6 + $0x38] sm:$0xff]  }
 0x450   :  { %7634 = vmatprep.subr.bf16.mxu0 %v9535_v16  ;;  %v981_v9 = vld [vmem:[#allocation2 + $0x1a38] sm:$0xff]  ;;  %v1199_v16 = vrot.slane %v10025_v20, %v1198_v54  ;;  %v9988_v54 = vld [vmem:[#allocation6 + $0x1b8] sm:$0xff]   ;;  %v9991_v20 = vld [vmem:[#allocation6 + $0x1e8] sm:$0xff]  }
 0x451   :  { %7674 = vmatpush2.bf16.msra.mxu1 %v9670_v45  ;;  %v1105_v11 = vld [vmem:[#allocation2 + $0x1e18] sm:$0xff]  ;;  %v9495_v23 = vcombine.high %v977_v6, %v981_v9  ;;  %v9494_v24 = vcombine.low %v977_v6, %v981_v9  ;;  %v9942_v45 = vld [vmem:[#allocation6 + $0xb8] sm:$0xff]   ;;  %v9967_v6 = vld [vmem:[#allocation6 + $0x40] sm:$0xff]  }
 0x452   :  { %7675 = vmatprep.subr.bf16.mxu1 %v9663_v15  ;;  %v1109_v10 = vld [vmem:[#allocation2 + $0x1e38] sm:$0xff]  ;;  %v9968_v9 = vld [vmem:[#allocation6 + $0xc0] sm:$0xff]  }
 0x453   :  { %7635 = vmatpush2.bf16.msra.mxu0 %v9534_v43  ;;  %v9623_v4 = vcombine.high %v1105_v11, %v1109_v10  ;;  %v9622_v44 = vcombine.low %v1105_v11, %v1109_v10  ;;  %v9943_v15 = vld [vmem:[#allocation6 + $0x70] sm:$0xff]   ;;  %v9969_v11 = vld [vmem:[#allocation6] sm:$0xff]   ;;  %v7696_v10 = vmax.f32 %v10438_v46, 0.0 }
 0x454   :  { %7636 = vmatprep.subr.bf16.mxu0 %v9527_v13  ;;  %v9944_v58 = vld [vmem:[#allocation6 + $0xf0] sm:$0xff]   ;;  %v9947_v13 = vld [vmem:[#allocation6 + $0x68] sm:$0xff]  }
 0x455   :  { %7676 = vmatpush2.bf16.msra.mxu1 %v9662_v40  ;;  %v9945_v2 = vld [vmem:[#allocation6 + $0x30] sm:$0xff]  }
 0x456   :  { %7677 = vmatprep.subr.bf16.mxu1 %v9655_v14  ;;  %v9946_v40 = vld [vmem:[#allocation6 + $0xb0] sm:$0xff]  }
 0x457   :  { %7637 = vmatpush2.bf16.msra.mxu0 %v9526_v33  ;;  %v9959_v63 = vld [vmem:[#allocation6 + $0x50] sm:$0xff]  }
 0x458   :  { %7638 = vmatprep.subr.bf16.mxu0 %v9519_v41  ;;  %v9950_v41 = vld [vmem:[#allocation6 + $0xa8] sm:$0xff]   ;;  %v9960_v42 = vld [vmem:[#allocation6 + $0xd0] sm:$0xff]  }
 0x459   :  { %7678 = vmatpush2.bf16.msra.mxu1 %v9654_v51  ;;  %v9961_v0 = vld [vmem:[#allocation6 + $0x10] sm:$0xff]  }
 0x45a   :  { %7679 = vmatprep.subr.bf16.mxu1 %v9647_v48  ;;  %v9951_v48 = vld [vmem:[#allocation6 + $0x60] sm:$0xff]   ;;  %v9962_v1 = vld [vmem:[#allocation6 + $0x90] sm:$0xff]  }
 0x45b   :  { %7639 = vmatpush2.bf16.msra.mxu0 %v9518_v56  ;;  %v9955_v56 = vld [vmem:[#allocation6 + $0x58] sm:$0xff]   ;;  %v9989_v34 = vld [vmem:[#allocation6 + $0x1f0] sm:$0xff]  }
 0x45c   :  { %7640 = vmatprep.subr.bf16.mxu0 %v9511_v62  ;;  %v9957_v62 = vld [vmem:[#allocation6 + $0x18] sm:$0xff]   ;;  %v9974_v35 = vld [vmem:[#allocation6 + $0x130] sm:$0xff]  }
 0x45d   :  { %7680 = vmatpush2.bf16.msra.mxu1 %v9646_v60  ;;  %v9956_v60 = vld [vmem:[#allocation6 + $0xd8] sm:$0xff]  }
 0x45e   :  { %7681 = vmatprep.subr.bf16.mxu1 %v9639_v29  ;;  %v9958_v29 = vld [vmem:[#allocation6 + $0x98] sm:$0xff]  }
 0x45f   :  { %7641 = vmatpush2.bf16.msra.mxu0 %v9510_v3  ;;  %v9963_v3 = vld [vmem:[#allocation6 + $0x48] sm:$0xff]  }
 0x460   :  { %7642 = vmatprep.subr.bf16.mxu0 %v9503_v7  ;;  %v9965_v7 = vld [vmem:[#allocation6 + $0x8] sm:$0xff]  }
 0x461   :  { %7682 = vmatpush2.bf16.msra.mxu1 %v9638_v5  ;;  %v9964_v5 = vld [vmem:[#allocation6 + $0xc8] sm:$0xff]  }
 0x462   :  { %7683 = vmatprep.subr.bf16.mxu1 %v9631_v22  ;;  %v9966_v22 = vld [vmem:[#allocation6 + $0x88] sm:$0xff]  }
 0x463   :  { %7643 = vmatpush2.bf16.msra.mxu0 %v9502_v12  ;;  %v9970_v12 = vld [vmem:[#allocation6 + $0x80] sm:$0xff]  }
 0x464   :  { %7644 = vmatprep.subr.bf16.mxu0 %v9495_v23  ;;  %v7698_v23 = vmax.f32 %v10478_v36, 0.0  ;;  %v9975_v36 = vld [vmem:[#allocation6 + $0x168] sm:$0xff]  }
 0x465   :  { %7684 = vmatpush2.bf16.msra.mxu1 %v9630_v21  ;;  %v9971_v21 = vld [vmem:[#allocation6 + $0x178] sm:$0xff]  }
 0x466   :  { %7685 = vmatprep.subr.bf16.mxu1 %v9623_v4  ;;  %v9987_v4 = vld [vmem:[#allocation6 + $0x1f8] sm:$0xff]  }
 0x467   :  { %7645 = vmatpush2.bf16.msra.mxu0 %v9494_v24  ;;  %v7701_v24 = vmax.f32 %v10523_v26, 0.0  ;;  %v9990_v26 = vld [vmem:[#allocation6 + $0x1b0] sm:$0xff]  }
 0x468   :  { %9763 = vmatprep.subr.bf16.mxu0 %v9939_v8  ;;  %v9973_v8 = vld [vmem:[#allocation6 + $0x170] sm:$0xff]  }
 0x469   :  { %7686 = vmatpush2.bf16.msra.mxu1 %v9622_v44  ;;  %v7704_v44 = vpack.c.bf16 %v7696_v10, %v7696_v10  ;;  %v7709_v46 = vpack.c.bf16 %v7701_v24, %v7701_v24  ;;  %v10007_v24 = vld [vmem:[#allocation9 + $0x18] sm:$0xff]  }
 0x46a   :  { %9785 = vmatprep.subr.bf16.mxu1 %v9940_v47  ;;  %v7402_v30 = vpop.f32.mrf.mxu0  ;;  %7647 = vmatmul.mubr.bf16.vlgmr.msra.gmra.mxu0 %v10401_v55  ;;  %v9948_v55 = vld [vmem:[#allocation6 + $0xe8] sm:$0xff]   ;;  %v7706_v47 = vpack.c.bf16 %v7698_v23, %v7698_v23 }
 0x46b   :  { %v7403_v18 = vadd.f32 %v7402_v30, %v1195_v38  ;;  %9764 = vmatpush3.bf16.msra.mxu0 %v9941_v37  ;;  %8263 = vmatprep.mubr.bf16.mxu0 %v7705_v39  ;;  %v9976_v38 = vld [vmem:[#allocation6 + $0x128] sm:$0xff]   ;;  %v9977_v37 = vld [vmem:[#allocation6 + $0x160] sm:$0xff]   ;;  %v9979_v39 = vld [vmem:[#allocation6 + $0x158] sm:$0xff]  }
 0x46c   :  { %v7443_v57 = vpop.f32.mrf.mxu1  ;;  %7688 = vmatmul.mubr.bf16.vlgmr.msra.gmra.mxu1 %v10405_v61  ;;  %v7404_v43 = vpop.f32.mrf.mxu0  ;;  %9765 = vmatprep.subr.bf16.mxu0 %v9943_v15  ;;  %v9949_v61 = vld [vmem:[#allocation6 + $0x28] sm:$0xff]   ;;  %v9978_v15 = vld [vmem:[#allocation6 + $0x120] sm:$0xff]  }
 0x46d   :  { %9786 = vmatpush3.bf16.msra.mxu1 %v9942_v45  ;;  %v10531_v14 = vadd.f32 %v7443_v57, %v7403_v18  ;;  %8303 = vmatprep.mubr.bf16.mxu1 %v7707_v32  ;;  %v7405_v19 = vadd.f32 %v7404_v43, %v1199_v16  ;;  %v9992_v45 = vld [vmem:[#allocation6 + $0x1a8] sm:$0xff]   ;;  %v9993_v16 = vld [vmem:[#allocation6 + $0x1e0] sm:$0xff]   ;;  %v9980_v32 = vld [vmem:[#allocation6 + $0x118] sm:$0xff]  }
 0x46e   :  { %v7445_v59 = vpop.f32.mrf.mxu1  ;;  %v7406_v27 = vpop.f32.mrf.mxu0  ;;  %9787 = vmatprep.subr.bf16.mxu1 %v9944_v58  ;;  %v9994_v30 = vld [vmem:[#allocation6 + $0x1a0] sm:$0xff]   ;;  %v9995_v58 = vld [vmem:[#allocation6 + $0x1d8] sm:$0xff]   ;;  %v9981_v18 = vld [vmem:[#allocation6 + $0x150] sm:$0xff]  }
 0x46f   :  { %v10533_v50 = vadd.f32 %v7445_v59, %v7405_v19  ;;  %9766 = vmatpush3.bf16.msra.mxu0 %v9945_v2  ;;  %v9996_v57 = vld [vmem:[#allocation6 + $0x198] sm:$0xff]   ;;  %v9982_v2 = vld [vmem:[#allocation6 + $0x110] sm:$0xff]   ;;  %v9983_v43 = vld [vmem:[#allocation6 + $0x148] sm:$0xff]   ;;  %v7700_v59 = vmax.f32 %v10518_v17, 0.0 }
 0x470   :  { %v7447_v33 = vpop.f32.mrf.mxu1  ;;  %v7407_v51 = vpop.f32.mrf.mxu0  ;;  %9767 = vmatprep.subr.bf16.mxu0 %v9947_v13  ;;  %v9985_v13 = vld [vmem:[#allocation6 + $0x140] sm:$0xff]   ;;  %v10005_v23 = vld [vmem:[#allocation9 + $0x28] sm:$0xff]  }
 0x471   :  { %9788 = vmatpush3.bf16.msra.mxu1 %v9946_v40  ;;  %v9984_v40 = vld [vmem:[#allocation6 + $0x108] sm:$0xff]   ;;  %v9986_v19 = vld [vmem:[#allocation6 + $0x100] sm:$0xff]   ;;  %v9997_v33 = vld [vmem:[#allocation6 + $0x1d0] sm:$0xff]  }
 0x472   :  { %v7448_v31 = vpop.f32.mrf.mxu1  ;;  %9789 = vmatprep.subr.bf16.mxu1 %v9948_v55  ;;  %v7708_v55 = vpack.c.bf16 %v7700_v59, %v7700_v59 }
 0x473   :  { %9768 = vmatpush3.bf16.msra.mxu0 %v9949_v61 }
 0x474   :  { %9769 = vmatprep.subr.bf16.mxu0 %v9951_v48 }
 0x475   :  { %9790 = vmatpush3.bf16.msra.mxu1 %v9950_v41  ;;  %v9998_v41 = vld [vmem:[#allocation6 + $0x190] sm:$0xff]  }
 0x476   :  { %9791 = vmatprep.subr.bf16.mxu1 %v9952_v52 }
 0x477   :  { %9770 = vmatpush3.bf16.msra.mxu0 %v9953_v28 }
 0x478   :  { %9771 = vmatprep.subr.bf16.mxu0 %v9955_v56  ;;  %v9999_v56 = vld [vmem:[#allocation6 + $0x1c8] sm:$0xff]  }
 0x479   :  { %9792 = vmatpush3.bf16.msra.mxu1 %v9954_v49 }
 0x47a   :  { %9793 = vmatprep.subr.bf16.mxu1 %v9956_v60 }
 0x47b   :  { %9772 = vmatpush3.bf16.msra.mxu0 %v9957_v62  ;;  %v10000_v62 = vld [vmem:[#allocation6 + $0x188] sm:$0xff]  }
 0x47c   :  { %9773 = vmatprep.subr.bf16.mxu0 %v9959_v63 }
 0x47d   :  { %9794 = vmatpush3.bf16.msra.mxu1 %v9958_v29 }
 0x47e   :  { %9795 = vmatprep.subr.bf16.mxu1 %v9960_v42  ;;  %v10001_v42 = vld [vmem:[#allocation6 + $0x1c0] sm:$0xff]  }
 0x47f   :  { %9774 = vmatpush3.bf16.msra.mxu0 %v9961_v0 }
 0x480   :  { %9775 = vmatprep.subr.bf16.mxu0 %v9963_v3 }
 0x481   :  { %9796 = vmatpush3.bf16.msra.mxu1 %v9962_v1 }
 0x482   :  { %9797 = vmatprep.subr.bf16.mxu1 %v9964_v5 }
 0x483   :  { %9776 = vmatpush3.bf16.msra.mxu0 %v9965_v7 }
 0x484   :  { %9777 = vmatprep.subr.bf16.mxu0 %v9967_v6 }
 0x485   :  { %9798 = vmatpush3.bf16.msra.mxu1 %v9966_v22 }
 0x486   :  { %9799 = vmatprep.subr.bf16.mxu1 %v9968_v9 }
 0x487   :  { %9778 = vmatpush3.bf16.msra.mxu0 %v9969_v11  ;;  %v10003_v11 = vld [vmem:[#allocation9 + $0x38] sm:$0xff]  }
 0x488   :  { %9807 = vmatprep.subr.bf16.mxu0 %v9971_v21  ;;  %v10004_v21 = vld [vmem:[#allocation9 + $0x30] sm:$0xff]  }
 0x489   :  { %9800 = vmatpush3.bf16.msra.mxu1 %v9970_v12  ;;  %v10208_v12 = vmov 0.0  }
 0x48a   :  { %9829 = vmatprep.subr.bf16.mxu1 %v9987_v4  ;;  %8264 = vmatmul.mubr.bf16.vlgmr.msra.gmra.mxu0 %v7704_v44  ;;  %v10006_v4 = vld [vmem:[#allocation9 + $0x20] sm:$0xff]  }
 0x48b   :  { %9808 = vmatpush3.bf16.msra.mxu0 %v9972_v25  ;;  %8343 = vmatprep.mubr.bf16.mxu0 %v7709_v46 }
 0x48c   :  { %8304 = vmatmul.mubr.bf16.vlgmr.msra.gmra.mxu1 %v7706_v47  ;;  %9809 = vmatprep.subr.bf16.mxu0 %v9973_v8 }
 0x48d   :  { %9830 = vmatpush3.bf16.msra.mxu1 %v9988_v54 }
 0x48e   :  { %9831 = vmatprep.subr.bf16.mxu1 %v9989_v34 }
 0x48f   :  { %9810 = vmatpush3.bf16.msra.mxu0 %v9974_v35 }
 0x490   :  { %9811 = vmatprep.subr.bf16.mxu0 %v9975_v36 }
 0x491   :  { %9832 = vmatpush3.bf16.msra.mxu1 %v9990_v26 }
 0x492   :  { %9833 = vmatprep.subr.bf16.mxu1 %v9991_v20 }
 0x493   :  { %9812 = vmatpush3.bf16.msra.mxu0 %v9976_v38 }
 0x494   :  { %9813 = vmatprep.subr.bf16.mxu0 %v9977_v37 }
 0x495   :  { %9834 = vmatpush3.bf16.msra.mxu1 %v9992_v45 }
 0x496   :  { %9835 = vmatprep.subr.bf16.mxu1 %v9993_v16 }
 0x497   :  { %9814 = vmatpush3.bf16.msra.mxu0 %v9978_v15 }
 0x498   :  { %9815 = vmatprep.subr.bf16.mxu0 %v9979_v39 }
 0x499   :  { %9836 = vmatpush3.bf16.msra.mxu1 %v9994_v30 }
 0x49a   :  { %9837 = vmatprep.subr.bf16.mxu1 %v9995_v58 }
 0x49b   :  { %9816 = vmatpush3.bf16.msra.mxu0 %v9980_v32 }
 0x49c   :  { %9817 = vmatprep.subr.bf16.mxu0 %v9981_v18  ;;  %v9680_v18 = vld [vmem:[#allocation7] ss:$0 sm:$0xff] }
 0x49d   :  { %9838 = vmatpush3.bf16.msra.mxu1 %v9996_v57 }
 0x49e   :  { %9839 = vmatprep.subr.bf16.mxu1 %v9997_v33 }
 0x49f   :  { %9818 = vmatpush3.bf16.msra.mxu0 %v9982_v2 }
 0x4a0   :  { %9819 = vmatprep.subr.bf16.mxu0 %v9983_v43 }
 0x4a1   :  { %9840 = vmatpush3.bf16.msra.mxu1 %v9998_v41 }
 0x4a2   :  { %9841 = vmatprep.subr.bf16.mxu1 %v9999_v56  ;;  %v10010_v56 = vld [vmem:[#allocation9] sm:$0xff]  }
 0x4a3   :  { %9820 = vmatpush3.bf16.msra.mxu0 %v9984_v40 }
 0x4a4   :  { %9821 = vmatprep.subr.bf16.mxu0 %v9985_v13 }
 0x4a5   :  { %9842 = vmatpush3.bf16.msra.mxu1 %v10000_v62  ;;  %v10013_v62 = vld [vmem:[#allocation12 + $0x28] sm:$0xff]  }
 0x4a6   :  { %9843 = vmatprep.subr.bf16.mxu1 %v10001_v42  ;;  %v10016_v42 = vld [vmem:[#allocation12 + $0x10] sm:$0xff]  }
 0x4a7   :  { %9822 = vmatpush3.bf16.msra.mxu0 %v9986_v19 }
 0x4a8   :  { %9869 = vmatprep.subr.bf16.mxu0 %v10208_v12 }
 0x4aa   :  { %v7484_v27 = vpop.f32.mrf.mxu0  ;;  %8344 = vmatmul.mubr.bf16.vlgmr.msra.gmra.mxu0 %v7708_v55 }
 0x4ab   :  { %v7485_v61 = vadd.f32 %v7484_v27, %v10531_v14  ;;  %v10002_v14 = vld [vmem:[#allocation6 + $0x180] sm:$0xff]   ;;  %9870 = vmatpush3.bf16.msra.mxu0 %v10003_v11  ;;  %9885 = vmatprep.mubr.msk.bf16.mxu0 %vm10209_vm0, %v10208_v12 }
 0x4ac   :  { %v7525_v51 = vpop.f32.mrf.mxu1  ;;  %v7486_v48 = vpop.f32.mrf.mxu0  ;;  %9844 = vmatpush3.bf16.msra.mxu1 %v10002_v14  ;;  %9871 = vmatprep.subr.bf16.mxu0 %v10208_v12  ;;  %v9745_v11 = vld [vmem:[#allocation10] ss:$0 sm:$0xff] }
 0x4ad   :  { %v7526_v31 = vadd.f32 %v7525_v51, %v7485_v61  ;;  %v7487_v52 = vadd.f32 %v7486_v48, %v10533_v50  ;;  %9889 = vmatprep.subr.bf16.mxu1 %v10208_v12 }
 0x4ae   :  { %v7527_v28 = vpop.f32.mrf.mxu1  ;;  %v7488_v49 = vpop.f32.mrf.mxu0 }
 0x4af   :  { %v7528_v17 = vadd.f32 %v7527_v28, %v7487_v52  ;;  %9872 = vmatpush3.bf16.msra.mxu0 %v10004_v21  ;;  %v10008_v28 = vld [vmem:[#allocation9 + $0x10] sm:$0xff]   ;;  %v10009_v49 = vld [vmem:[#allocation9 + $0x8] sm:$0xff]  }
 0x4b0   :  { %v7529_v60 = vpop.f32.mrf.mxu1  ;;  %v7489_v29 = vpop.f32.mrf.mxu0  ;;  %9873 = vmatprep.subr.bf16.mxu0 %v10208_v12 }
 0x4b1   :  { %v10012_v60 = vld [vmem:[#allocation12 + $0x30] sm:$0xff]   ;;  %v10014_v29 = vld [vmem:[#allocation12 + $0x20] sm:$0xff]  }
 0x4b2   :  { %v7530_v63 = vpop.f32.mrf.mxu1 }
 0x4b3   :  { %9874 = vmatpush3.bf16.msra.mxu0 %v10005_v23  ;;  %v10015_v63 = vld [vmem:[#allocation12 + $0x18] sm:$0xff]  }
 0x4b4   :  { %9875 = vmatprep.subr.bf16.mxu0 %v10208_v12 }
 0x4b7   :  { %9876 = vmatpush3.bf16.msra.mxu0 %v10006_v4 }
 0x4b8   :  { %9877 = vmatprep.subr.bf16.mxu0 %v10208_v12 }
 0x4bb   :  { %9878 = vmatpush3.bf16.msra.mxu0 %v10007_v24 }
 0x4bc   :  { %9879 = vmatprep.subr.bf16.mxu0 %v10208_v12 }
 0x4bf   :  { %9880 = vmatpush3.bf16.msra.mxu0 %v10008_v28 }
 0x4c0   :  { %9881 = vmatprep.subr.bf16.mxu0 %v10208_v12 }
 0x4c3   :  { %9882 = vmatpush3.bf16.msra.mxu0 %v10009_v49 }
 0x4c4   :  { %9883 = vmatprep.subr.bf16.mxu0 %v10208_v12 }
 0x4c7   :  { %9884 = vmatpush3.bf16.msra.mxu0 %v10010_v56 }
 0x4ea   :  { %v7566_v0 = vpop.f32.mrf.mxu0 }
 0x4eb   :  { %v7567_v1 = vadd.f32 %v7566_v0, %v7526_v31 }
 0x4ec   :  { %v7607_v3 = vpop.f32.mrf.mxu1  ;;  %v7568_v5 = vpop.f32.mrf.mxu0 }
 0x4ed   :  { %v7608_v50 = vadd.f32 %v7607_v3, %v7567_v1  ;;  %v7569_v25 = vadd.f32 %v7568_v5, %v7528_v17  ;;  %v10011_v17 = vld [vmem:[#allocation12 + $0x38] sm:$0xff]  }
 0x4ee   :  { %v7609_v7 = vpop.f32.mrf.mxu1  ;;  %v7570_v22 = vpop.f32.mrf.mxu0 }
 0x4ef   :  { %v7610_v8 = vadd.f32 %v7609_v7, %v7569_v25 }
 0x4f0   :  { %v7611_v6 = vpop.f32.mrf.mxu1  ;;  %v7571_v9 = vpop.f32.mrf.mxu0 }
 0x4f1   :  { %v10017_v6 = vld [vmem:[#allocation12 + $0x8] sm:$0xff]   ;;  %v10018_v9 = vld [vmem:[#allocation12] sm:$0xff]  }
 0x4f2   :  { %v7612_v10 = vpop.f32.mrf.mxu1 }
 0x52a   :  { %v7648_v44 = vpop.f32.mrf.mxu0 }
 0x52b   :  { %v7649_v47 = vadd.f32 %v7648_v44, %v7608_v50 }
 0x52c   :  { %v7689_v54 = vpop.f32.mrf.mxu1  ;;  %v7650_v46 = vpop.f32.mrf.mxu0 }
 0x52d   :  { %v7690_v34 = vadd.f32 %v7689_v54, %v7649_v47  ;;  %v7651_v35 = vadd.f32 %v7650_v46, %v7610_v8  ;;  %v8618_v8 = vand.u32 127, %v1168_v53  ;;  %v9754_v47 = vld [vmem:[#allocation13] ss:$0 sm:$0xff] }
 0x52e   :  { %v7691_v36 = vpop.f32.mrf.mxu1  ;;  %v7652_v26 = vpop.f32.mrf.mxu0 }
 0x52f   :  { %v7692_v20 = vadd.f32 %v7691_v36, %v7651_v35  ;;  %v7702_v37 = vmax.f32 %v7690_v34, 0.0  ;;  %vm8619_vm1 = vcmp.lt.s32.totalorder %v8618_v8, 5 }
 0x530   :  { %v7693_v38 = vpop.f32.mrf.mxu1  ;;  %v7653_v45 = vpop.f32.mrf.mxu0 }
 0x531   :  { %v7703_v16 = vmax.f32 %v7692_v20, 0.0  ;;  %v7710_v30 = vpack.c.bf16 %v7702_v37, %v7702_v37 }
 0x532   :  { %v7694_v15 = vpop.f32.mrf.mxu1 }
 0x533   :  { %v7711_v39 = vpack.c.bf16 %v7703_v16, %v7703_v16 }
 0x535   :  { %8383 = vmatprep.mubr.bf16.mxu1 %v7711_v39 }
 0x536   :  { %8384 = vmatmul.mubr.bf16.vlgmr.msra.gmra.mxu1 %v7710_v30 }
 0x537   :  { %9905 = vmatprep.mubr.msk.bf16.mxu1 %vm10209_vm0, %v10208_v12  ;;  %9890 = vmatpush3.bf16.msra.mxu1 %v10011_v17 }
 0x538   :  { %9891 = vmatprep.subr.bf16.mxu1 %v10208_v12 }
 0x53b   :  { %9892 = vmatpush3.bf16.msra.mxu1 %v10012_v60 }
 0x53c   :  { %9893 = vmatprep.subr.bf16.mxu1 %v10208_v12 }
 0x53f   :  { %9894 = vmatpush3.bf16.msra.mxu1 %v10013_v62 }
 0x540   :  { %9895 = vmatprep.subr.bf16.mxu1 %v10208_v12 }
 0x543   :  { %9896 = vmatpush3.bf16.msra.mxu1 %v10014_v29 }
 0x544   :  { %9897 = vmatprep.subr.bf16.mxu1 %v10208_v12 }
 0x547   :  { %9898 = vmatpush3.bf16.msra.mxu1 %v10015_v63 }
 0x548   :  { %9899 = vmatprep.subr.bf16.mxu1 %v10208_v12 }
 0x54a   :  { %v9779_v58 = vpop.f32.mrf.mxu0 }
 0x54b   :  { %9900 = vmatpush3.bf16.msra.mxu1 %v10016_v42 }
 0x54c   :  { %v9801_v32 = vpop.f32.mrf.mxu1  ;;  %v9780_v57 = vpop.f32.mrf.mxu0  ;;  %9901 = vmatprep.subr.bf16.mxu1 %v10208_v12 }
 0x54d   :  { %v9781_v2 = vadd.f32 %v9780_v57, %v9779_v58 }
 0x54e   :  { %v9802_v43 = vpop.f32.mrf.mxu1  ;;  %v9782_v13 = vpop.f32.mrf.mxu0 }
 0x54f   :  { %v9803_v40 = vadd.f32 %v9802_v43, %v9801_v32  ;;  %v8266_v19 = vadd.f32 %v9781_v2, %v9680_v18  ;;  %9902 = vmatpush3.bf16.msra.mxu1 %v10017_v6 }
 0x550   :  { %v9804_v59 = vpop.f32.mrf.mxu1  ;;  %v9783_v55 = vpop.f32.mrf.mxu0  ;;  %9903 = vmatprep.subr.bf16.mxu1 %v10208_v12 }
 0x551   :  { %v8306_v27 = vadd.f32 %v9803_v40, %v8266_v19 }
 0x552   :  { %v9805_v33 = vpop.f32.mrf.mxu1 }
 0x553   :  { %9904 = vmatpush3.bf16.msra.mxu1 %v10018_v9 }
 0x56a   :  { %v9823_v61 = vpop.f32.mrf.mxu0 }
 0x56c   :  { %v9824_v51 = vpop.f32.mrf.mxu0 }
 0x56d   :  { %v9825_v41 = vadd.f32 %v9824_v51, %v9823_v61 }
 0x56e   :  { %v9826_v48 = vpop.f32.mrf.mxu0 }
 0x56f   :  { %v8346_v31 = vadd.f32 %v9825_v41, %v8306_v27 }
 0x570   :  { %v9827_v52 = vpop.f32.mrf.mxu0 }
 0x5f6   :  { %v9845_v14 = vpop.f32.mrf.mxu1 }
 0x5f8   :  { %v9846_v0 = vpop.f32.mrf.mxu1 }
 0x5f9   :  { %v9847_v1 = vadd.f32 %v9846_v0, %v9845_v14 }
 0x5fa   :  { %v9848_v3 = vpop.f32.mrf.mxu1 }
 0x5fb   :  { %v8386_v5 = vadd.f32 %v9847_v1, %v8346_v31 }
 0x5fc   :  { %v9849_v50 = vpop.f32.mrf.mxu1 }
 0x5fd   :  { %v8391_v7 = vmax.f32 %v8386_v5, 0.0 }
 0x5ff   :  { %v8392_v22 = vpack.c.bf16 %v8391_v7, %v8391_v7 }
 0x601   :  { %9886 = vmatmul.mubr.bf16.vlgmr.msra.gmra.mxu0 %v8392_v22 }
 0x6c1   :  { %v8498_v10 = vpop.f32.mrf.mxu0 }
 0x6c2   :  { %v8499_v21 = vadd.f32 %v9745_v11, %v8498_v10 }
 0x6c3   :  { %v9887_v23 = vpop.f32.mrf.mxu0 }
 0x6c4   :  { %v8504_v4 = vmax.f32 %v8499_v21, 0.0 }
 0x6c5   :  { %v8501_v24 = vpop.f32.mrf.mxu0 }
 0x6c6   :  { %v8505_v25 = vpack.c.bf16 %v8504_v4, %v8504_v4 }
 0x6c7   :  { %v9888_v44 = vpop.f32.mrf.mxu0 }
 0x6c8   :  { %9906 = vmatmul.mubr.bf16.vlgmr.msra.gmra.mxu1 %v8505_v25 }
 0x788   :  { %v8611_v54 = vpop.f32.mrf.mxu1 }
 0x789   :  { %v8612_v46 = vadd.f32 %v9754_v47, %v8611_v54 }
 0x78a   :  { %v9907_v34 = vpop.f32.mrf.mxu1 }
 0x78b   :  { %v8620_v35 = vsel %vm8619_vm1, %v8612_v46, -inf }
 0x78c   :  { %8621 = vmax.xlane.f32.xlu0 %v8620_v35  ;;  %v8614_v12 = vpop.f32.mrf.mxu1 }
 0x78e   :  { %v9908_v36 = vpop.f32.mrf.mxu1 }
 0x815   :  { %v8622_v26 = vpop.xlane.xlu0 %8621 }
 0x816   :  { %v8623_v20 = vsub.f32 %v8620_v35, %v8622_v26 }
 0x818   :  { %v8624_v38 = vmul.f32 1.442695, %v8623_v20 }
 0x81a   :  { %10019 = vpow2.f32 %v8624_v38 }
 0x827   :  { %v10020_v37 = vpop.eup %10019 }
 0x828   :  { %8626 = vadd.xlane.f32.xlu0 %v10020_v37 }
 0x8b1   :  { %v8627_v45 = vpop.xlane.xlu0 %8626 }
 0x8b2   :  { %10021 = vrcp.f32 %v8627_v45 }
 0x8bf   :  { %v10022_v16 = vpop.eup %10021 }
 0x8c0   :  { %v8629_v15 = vmul.f32 %v10022_v16, %v10020_v37 }
 0x8c2   :  { %8630 = vst [vmem:[%s10572_s9] sm:$0xff] %v8629_v15 }
 0x8c3   :  { %8635 = vsyncpa [#allocation3], 1 }
 0x8c4   :  { %8636 = vsyncpa [#allocation5], 1 }
 0x8c5   :  { %8637 = vsyncpa [#allocation8], 1 }
 0x8c6   :  { %8638 = vsyncpa [#allocation11], 1 }
 0x8c7   :  { %8639 = vsyncpa [#allocation14], 1 }

</bundles_post_ra>
